<compile_context>
chip_gen: v7x
topology: tpu7x:2x2x1
jax: 0.10.0
libtpu: 0.0.40
codegen_flags: <defaults>
</compile_context>

<pallas_src>
import functools
import math

import jax
import jax.numpy as jnp
from jax import lax
from jax.experimental import pallas as pl
from jax.experimental.pallas import tpu as pltpu

# gpt-nano-ish config, small shapes
N_LAYER = 3
N_HEAD = 3
N_EMBD = 48
VOCAB = 65
VOCAB_PAD = 128          # lane-dense logits width; padded columns are sliced off outside
BLOCK_SIZE = 16
LN_EPS = 1e-5
NEG_INF = -1e30


def _layernorm(x, w, b):
    mu = jnp.mean(x, axis=-1, keepdims=True)
    var = jnp.mean((x - mu) ** 2, axis=-1, keepdims=True)
    return (x - mu) * lax.rsqrt(var + LN_EPS) * w + b


# ----------------------------------------------------------------------------
# Fused Pallas kernel: full transformer stack + final LN + generator
# One grid step processes one batch tile of (batch_tile*T, D) tokens.
# ----------------------------------------------------------------------------
def gpt_fused_kernel(x_ref, bias_ref, wqkv_ref, bqkv_ref, wo_ref,
                     w1_ref, b1_ref, w2_ref, vecs_ref, wg_ref, bg_ref,
                     out_ref, *, n_layer, n_head):
    x = x_ref[...]                              # (m, D) f32 residual stream
    attn_bias = bias_ref[...]                   # (m, m) additive causal mask (0 / -1e30)

    for l in range(n_layer):                    # static unrolled loop over layers
        vb = 6 * l
        # --- pre-norm multi-head causal self attention ---
        z = _layernorm(x, vecs_ref[vb + 0], vecs_ref[vb + 1]).astype(jnp.bfloat16)
        attn = jnp.zeros_like(x)
        for h in range(n_head):                 # static unrolled loop over heads
            r = (l * n_head + h) * 3            # per-head weights on the leading axis
            q = jnp.dot(z, wqkv_ref[r + 0],     # 1/sqrt(dk) folded into wq/bq at pack time
                        preferred_element_type=jnp.float32) + bqkv_ref[r + 0]
            k = jnp.dot(z, wqkv_ref[r + 1],
                        preferred_element_type=jnp.float32) + bqkv_ref[r + 1]
            v = jnp.dot(z, wqkv_ref[r + 2],
                        preferred_element_type=jnp.float32) + bqkv_ref[r + 2]
            # q . k^T without an explicit in-kernel transpose; additive mask bias
            s = lax.dot_general(q.astype(jnp.bfloat16), k.astype(jnp.bfloat16),
                                (((1,), (1,)), ((), ())),
                                preferred_element_type=jnp.float32) + attn_bias
            mx = jnp.max(s, axis=-1, keepdims=True)
            p = jnp.exp(s - mx)                  # softmax stats stay f32
            p = p * pl.reciprocal(jnp.sum(p, axis=-1, keepdims=True), approx=True)
            o = jnp.dot(p.astype(jnp.bfloat16), v.astype(jnp.bfloat16),
                        preferred_element_type=jnp.float32)          # (m, dk)
            # output projection absorbs the head concat
            attn = attn + jnp.dot(o.astype(jnp.bfloat16), wo_ref[l * n_head + h],
                                  preferred_element_type=jnp.float32)
        x = x + attn + vecs_ref[vb + 4]          # residual + bo (dropout == identity)

        # --- pre-norm feed forward ---
        z2 = _layernorm(x, vecs_ref[vb + 2], vecs_ref[vb + 3]).astype(jnp.bfloat16)
        h1 = jnp.maximum(
            jnp.dot(z2, w1_ref[l], preferred_element_type=jnp.float32) + b1_ref[l],
            0.0)
        x = x + jnp.dot(h1.astype(jnp.bfloat16), w2_ref[l],
                        preferred_element_type=jnp.float32) + vecs_ref[vb + 5]

    # --- final LayerNorm + generator projection (vocab padded to 128 lanes) ---
    zf = _layernorm(x, vecs_ref[6 * n_layer], vecs_ref[6 * n_layer + 1]).astype(jnp.bfloat16)
    out_ref[...] = jnp.dot(zf, wg_ref[...],
                           preferred_element_type=jnp.float32) + bg_ref[...]


# ----------------------------------------------------------------------------
# Wrapper: embeddings (glue) + gridded pallas_call
# ----------------------------------------------------------------------------
def gpt_forward(idx, params, packed, batch_tile=1):
    B, T = idx.shape
    assert T <= BLOCK_SIZE
    assert B % batch_tile == 0
    D = N_EMBD
    bt_tile = batch_tile * T
    assert bt_tile % 8 == 0 or batch_tile == B, "tile rows must be sublane aligned"

    # embedding gather + positional embedding (plain JAX glue), flattened to (B*T, D)
    x = (params['wte'][idx] + params['wpe'][:T][None, :, :]).reshape(B * T, D)
    x = x.astype(jnp.float32)

    # precomputed block-diagonal causal mask as additive f32 bias (0 / -1e30)
    r = jnp.arange(bt_tile)[:, None]
    c = jnp.arange(bt_tile)[None, :]
    ok = jnp.logical_and(r // T == c // T, c % T <= r % T)
    attn_bias = jnp.where(ok, 0.0, NEG_INF).astype(jnp.float32)

    args = (x, attn_bias,
            packed['wqkv'], packed['bqkv'], packed['wo'],
            packed['w1'], packed['b1'], packed['w2'],
            packed['vecs'], packed['wg'], packed['bg'])

    def full_spec(a):
        return pl.BlockSpec(a.shape, lambda b, _nd=a.ndim: (0,) * _nd)

    in_specs = [pl.BlockSpec((bt_tile, D), lambda b: (b, 0)),     # activations, tiled
                full_spec(attn_bias)] + [full_spec(a) for a in args[2:]]

    out = pl.pallas_call(
        functools.partial(gpt_fused_kernel, n_layer=N_LAYER, n_head=N_HEAD),
        grid=(B // batch_tile,),
        out_shape=jax.ShapeDtypeStruct((B * T, VOCAB_PAD), jnp.float32),
        in_specs=in_specs,
        out_specs=pl.BlockSpec((bt_tile, VOCAB_PAD), lambda b: (b, 0)),
        compiler_params=pltpu.CompilerParams(
            dimension_semantics=("parallel",)),                   # v7x: 2 TCs
    )(*args)

    # drop lane-padding, restore (B, T, vocab) exactly as the PyTorch module returns
    return out.reshape(B, T, VOCAB_PAD)[:, :, :VOCAB]


# ----------------------------------------------------------------------------
# Parameters (deterministic init mirroring GPT._init_weights) + kernel packing
# ----------------------------------------------------------------------------
def init_params(key):
    keys = iter(jax.random.split(key, 64))
    std = 0.02
    std_resid = 0.02 / math.sqrt(2 * N_LAYER)   # output.weight / layer2.weight

    def normal(shape, s):
        return jax.random.normal(next(keys), shape, jnp.float32) * s

    p = {
        'wte': normal((VOCAB, N_EMBD), std),          # token embedding
        'wpe': normal((BLOCK_SIZE, N_EMBD), std),     # position embedding
        'layers': [],
        'lnf_w': jnp.ones((N_EMBD,), jnp.float32),    # Encoder final LayerNorm
        'lnf_b': jnp.zeros((N_EMBD,), jnp.float32),
    }
    for _ in range(N_LAYER):
        p['layers'].append(dict(
            ln1w=jnp.ones((N_EMBD,), jnp.float32),
            ln1b=jnp.zeros((N_EMBD,), jnp.float32),
            wq=normal((N_EMBD, N_EMBD), std), bq=jnp.zeros((N_EMBD,), jnp.float32),
            wk=normal((N_EMBD, N_EMBD), std), bk=jnp.zeros((N_EMBD,), jnp.float32),
            wv=normal((N_EMBD, N_EMBD), std), bv=jnp.zeros((N_EMBD,), jnp.float32),
            wo=normal((N_EMBD, N_EMBD), std_resid), bo=jnp.zeros((N_EMBD,), jnp.float32),
            ln2w=jnp.ones((N_EMBD,), jnp.float32),
            ln2b=jnp.zeros((N_EMBD,), jnp.float32),
            w1=normal((4 * N_EMBD, N_EMBD), std), b1=jnp.zeros((4 * N_EMBD,), jnp.float32),
            w2=normal((N_EMBD, 4 * N_EMBD), std_resid), b2=jnp.zeros((N_EMBD,), jnp.float32),
        ))
    p['wg'] = normal((VOCAB, N_EMBD), std)            # Generator projection
    p['bg'] = jnp.zeros((VOCAB,), jnp.float32)
    return p


def pack_params(p):
    """Per-head leading-axis weight layout, folded attention scale, consolidated 1-D
    params, pre-transposed (in, out) weights in bf16, padded vocab."""
    Ls = p['layers']
    D, H = N_EMBD, N_HEAD
    dk = D // H
    scale = 1.0 / math.sqrt(dk)

    wqkv_rows, bqkv_rows, wo_rows = [], [], []
    vec_rows, w1_rows, b1_rows, w2_rows = [], [], [], []
    for lp in Ls:
        wq_t = (lp['wq'] * scale).T               # (D_in, D_out), scale folded into Q
        wk_t = lp['wk'].T
        wv_t = lp['wv'].T
        bq = lp['bq'] * scale
        for h in range(H):
            sl = slice(h * dk, (h + 1) * dk)
            wqkv_rows += [wq_t[:, sl], wk_t[:, sl], wv_t[:, sl]]   # each (D, dk)
            bqkv_rows += [bq[sl], lp['bk'][sl], lp['bv'][sl]]      # each (dk,)
        wo_t = lp['wo'].T                          # (D_in = concat heads, D_out)
        for h in range(H):
            wo_rows.append(wo_t[h * dk:(h + 1) * dk, :])           # (dk, D)
        vec_rows += [lp['ln1w'], lp['ln1b'], lp['ln2w'], lp['ln2b'],
                     lp['bo'], lp['b2']]
        w1_rows.append(lp['w1'].T)                 # (D, 4D)
        b1_rows.append(lp['b1'])
        w2_rows.append(lp['w2'].T)                 # (4D, D)
    vec_rows += [p['lnf_w'], p['lnf_b']]

    packed = dict(
        wqkv=jnp.stack(wqkv_rows).astype(jnp.bfloat16),   # (L*H*3, D, dk)
        bqkv=jnp.stack(bqkv_rows).astype(jnp.float32),    # (L*H*3, dk)
        wo=jnp.stack(wo_rows).astype(jnp.bfloat16),       # (L*H, dk, D)
        w1=jnp.stack(w1_rows).astype(jnp.bfloat16),       # (L, D, 4D)
        b1=jnp.stack(b1_rows).astype(jnp.float32),        # (L, 4D)
        w2=jnp.stack(w2_rows).astype(jnp.bfloat16),       # (L, 4D, D)
        vecs=jnp.stack(vec_rows).astype(jnp.float32),     # (6L+2, D)
        wg=jnp.pad(p['wg'].T, ((0, 0), (0, VOCAB_PAD - VOCAB))).astype(jnp.bfloat16),
        bg=jnp.pad(p['bg'], (0, VOCAB_PAD - VOCAB))[None, :].astype(jnp.float32),
    )
    return packed


# ----------------------------------------------------------------------------
# Pure-JAX f32 reference (same math, un-packed weights) for correctness check
# ----------------------------------------------------------------------------
def gpt_forward_ref(idx, params):
    B, T = idx.shape
    x = params['wte'][idx] + params['wpe'][:T][None]
    row = jnp.arange(T)[:, None]
    col = jnp.arange(T)[None, :]
    causal = col <= row
    dk = N_EMBD // N_HEAD
    scale = 1.0 / math.sqrt(dk)
    for lp in params['layers']:
        z = _layernorm(x, lp['ln1w'], lp['ln1b'])
        q = z @ lp['wq'].T + lp['bq']
        k = z @ lp['wk'].T + lp['bk']
        v = z @ lp['wv'].T + lp['bv']
        q = q.reshape(B, T, N_HEAD, dk)
        k = k.reshape(B, T, N_HEAD, dk)
        v = v.reshape(B, T, N_HEAD, dk)
        s = jnp.einsum('bihd,bjhd->bhij', q, k) * scale
        s = jnp.where(causal[None, None], s, NEG_INF)
        p = jax.nn.softmax(s, axis=-1)
        o = jnp.einsum('bhij,bjhd->bihd', p, v).reshape(B, T, N_EMBD)
        x = x + (o @ lp['wo'].T + lp['bo'])
        z2 = _layernorm(x, lp['ln2w'], lp['ln2b'])
        h1 = jnp.maximum(z2 @ lp['w1'].T + lp['b1'], 0.0)
        x = x + (h1 @ lp['w2'].T + lp['b2'])
    z = _layernorm(x, params['lnf_w'], params['lnf_b'])
    return z @ params['wg'].T + params['bg']


if __name__ == "__main__":
    key = jax.random.PRNGKey(0)
    pkey, ikey = jax.random.split(key)
    params = init_params(pkey)
    packed = pack_params(params)

    B, T = 2, 8
    idx = jax.random.randint(ikey, (B, T), 0, VOCAB, dtype=jnp.int32)

    logits = gpt_forward(idx, params, packed, batch_tile=1)
    logits = jax.block_until_ready(logits)

    ref = gpt_forward_ref(idx, params)
    assert logits.shape == (B, T, VOCAB)
    # tolerance accounts for bf16 MXU operands (accumulation / LN / softmax stay f32)
    assert jnp.allclose(logits, ref, rtol=2e-2, atol=2e-2), "mismatch vs reference"

    print("KERNEL_OK")
</pallas_src>

<mosaic_0001>
module attributes {stable_mosaic.version = 11 : i64} {
  func.func @gpt_fused_kernel(%arg0: i32, %arg1: memref<8x48xf32, #tpu.memory_space<vmem>>, %arg2: memref<8x8xf32, #tpu.memory_space<vmem>>, %arg3: memref<27x48x16xbf16, #tpu.memory_space<vmem>>, %arg4: memref<27x16xf32, #tpu.memory_space<vmem>>, %arg5: memref<9x16x48xbf16, #tpu.memory_space<vmem>>, %arg6: memref<3x48x192xbf16, #tpu.memory_space<vmem>>, %arg7: memref<3x192xf32, #tpu.memory_space<vmem>>, %arg8: memref<3x192x48xbf16, #tpu.memory_space<vmem>>, %arg9: memref<20x48xf32, #tpu.memory_space<vmem>>, %arg10: memref<48x128xbf16, #tpu.memory_space<vmem>>, %arg11: memref<1x128xf32, #tpu.memory_space<vmem>>, %arg12: memref<8x128xf32, #tpu.memory_space<vmem>>) attributes {dimension_semantics = [#tpu.dimension_semantics<parallel>], iteration_bounds = array<i64: 2>, scalar_prefetch = 0 : i64, scratch_operands = 0 : i64, tpu.core_type = #tpu.core_type<tc>, window_params = [{transform_indices = @transform_0, window_bounds = array<i64: 8, 48>}, {pipeline_mode = #tpu.pipeline_mode<synchronous>, transform_indices = @transform_1, window_bounds = array<i64: 8, 8>}, {pipeline_mode = #tpu.pipeline_mode<synchronous>, transform_indices = @transform_2, window_bounds = array<i64: 27, 48, 16>}, {pipeline_mode = #tpu.pipeline_mode<synchronous>, transform_indices = @transform_3, window_bounds = array<i64: 27, 16>}, {pipeline_mode = #tpu.pipeline_mode<synchronous>, transform_indices = @transform_4, window_bounds = array<i64: 9, 16, 48>}, {pipeline_mode = #tpu.pipeline_mode<synchronous>, transform_indices = @transform_5, window_bounds = array<i64: 3, 48, 192>}, {pipeline_mode = #tpu.pipeline_mode<synchronous>, transform_indices = @transform_6, window_bounds = array<i64: 3, 192>}, {pipeline_mode = #tpu.pipeline_mode<synchronous>, transform_indices = @transform_7, window_bounds = array<i64: 3, 192, 48>}, {pipeline_mode = #tpu.pipeline_mode<synchronous>, transform_indices = @transform_8, window_bounds = array<i64: 20, 48>}, {pipeline_mode = #tpu.pipeline_mode<synchronous>, transform_indices = @transform_9, window_bounds = array<i64: 48, 128>}, {pipeline_mode = #tpu.pipeline_mode<synchronous>, transform_indices = @transform_10, window_bounds = array<i64: 1, 128>}, {transform_indices = @transform_11, window_bounds = array<i64: 8, 128>}]} {
    %c0 = arith.constant 0 : index
    %c0_0 = arith.constant 0 : index
    %0 = vector.load %arg1[%c0, %c0_0] : memref<8x48xf32, #tpu.memory_space<vmem>>, vector<8x48xf32>
    %c0_1 = arith.constant 0 : index
    %c0_2 = arith.constant 0 : index
    %1 = vector.load %arg2[%c0_1, %c0_2] : memref<8x8xf32, #tpu.memory_space<vmem>>, vector<8x8xf32>
    %c0_3 = arith.constant 0 : index
    %c0_4 = arith.constant 0 : index
    %2 = vector.load %arg9[%c0_3, %c0_4] : memref<20x48xf32, #tpu.memory_space<vmem>>, vector<1x48xf32>
    %3 = vector.shape_cast %2 : vector<1x48xf32> to vector<48xf32>
    %c1 = arith.constant 1 : index
    %c0_5 = arith.constant 0 : index
    %4 = vector.load %arg9[%c1, %c0_5] : memref<20x48xf32, #tpu.memory_space<vmem>>, vector<1x48xf32>
    %5 = vector.shape_cast %4 : vector<1x48xf32> to vector<48xf32>
    %cst = arith.constant dense<0.000000e+00> : vector<8xf32>
    %6 = vector.multi_reduction <add>, %0, %cst [1] : vector<8x48xf32> to vector<8xf32>
    %7 = vector.shape_cast %6 : vector<8xf32> to vector<8x1xf32>
    %cst_6 = arith.constant 4.800000e+01 : f32
    %8 = vector.broadcast %cst_6 : f32 to vector<8x1xf32>
    %9 = arith.divf %7, %8 : vector<8x1xf32>
    %10 = vector.broadcast %9 : vector<8x1xf32> to vector<8x48xf32>
    %11 = arith.subf %0, %10 : vector<8x48xf32>
    %12 = arith.mulf %11, %11 : vector<8x48xf32>
    %cst_7 = arith.constant dense<0.000000e+00> : vector<8xf32>
    %13 = vector.multi_reduction <add>, %12, %cst_7 [1] : vector<8x48xf32> to vector<8xf32>
    %14 = vector.shape_cast %13 : vector<8xf32> to vector<8x1xf32>
    %cst_8 = arith.constant 4.800000e+01 : f32
    %15 = vector.broadcast %cst_8 : f32 to vector<8x1xf32>
    %16 = arith.divf %14, %15 : vector<8x1xf32>
    %17 = vector.broadcast %9 : vector<8x1xf32> to vector<8x48xf32>
    %18 = arith.subf %0, %17 : vector<8x48xf32>
    %cst_9 = arith.constant 9.99999974E-6 : f32
    %19 = vector.broadcast %cst_9 : f32 to vector<8x1xf32>
    %20 = arith.addf %16, %19 : vector<8x1xf32>
    %21 = math.rsqrt %20 : vector<8x1xf32>
    %22 = vector.broadcast %21 : vector<8x1xf32> to vector<8x48xf32>
    %23 = arith.mulf %18, %22 : vector<8x48xf32>
    %24 = vector.shape_cast %3 : vector<48xf32> to vector<1x48xf32>
    %25 = vector.broadcast %24 : vector<1x48xf32> to vector<8x48xf32>
    %26 = arith.mulf %23, %25 : vector<8x48xf32>
    %27 = vector.shape_cast %5 : vector<48xf32> to vector<1x48xf32>
    %28 = vector.broadcast %27 : vector<1x48xf32> to vector<8x48xf32>
    %29 = arith.addf %26, %28 : vector<8x48xf32>
    %30 = arith.truncf %29 : vector<8x48xf32> to vector<8x48xbf16>
    %cst_10 = arith.constant 0.000000e+00 : f32
    %31 = vector.broadcast %cst_10 : f32 to vector<8x48xf32>
    %c0_11 = arith.constant 0 : index
    %c0_12 = arith.constant 0 : index
    %c0_13 = arith.constant 0 : index
    %32 = vector.load %arg3[%c0_11, %c0_12, %c0_13] : memref<27x48x16xbf16, #tpu.memory_space<vmem>>, vector<1x48x16xbf16>
    %33 = vector.shape_cast %32 : vector<1x48x16xbf16> to vector<48x16xbf16>
    %cst_14 = arith.constant dense<0.000000e+00> : vector<8x16xf32>
    %34 = tpu.matmul %30, %33, %cst_14 {dimension_numbers = #tpu.dot_dimension_numbers<[1], [0], [0], [1], [0, 0, 1, 1], [], []>} : vector<8x48xbf16>, vector<48x16xbf16>, vector<8x16xf32> -> vector<8x16xf32>
    %c0_15 = arith.constant 0 : index
    %c0_16 = arith.constant 0 : index
    %35 = vector.load %arg4[%c0_15, %c0_16] : memref<27x16xf32, #tpu.memory_space<vmem>>, vector<1x16xf32>
    %36 = vector.shape_cast %35 : vector<1x16xf32> to vector<16xf32>
    %37 = vector.shape_cast %36 : vector<16xf32> to vector<1x16xf32>
    %38 = vector.broadcast %37 : vector<1x16xf32> to vector<8x16xf32>
    %39 = arith.addf %34, %38 : vector<8x16xf32>
    %c1_17 = arith.constant 1 : index
    %c0_18 = arith.constant 0 : index
    %c0_19 = arith.constant 0 : index
    %40 = vector.load %arg3[%c1_17, %c0_18, %c0_19] : memref<27x48x16xbf16, #tpu.memory_space<vmem>>, vector<1x48x16xbf16>
    %41 = vector.shape_cast %40 : vector<1x48x16xbf16> to vector<48x16xbf16>
    %cst_20 = arith.constant dense<0.000000e+00> : vector<8x16xf32>
    %42 = tpu.matmul %30, %41, %cst_20 {dimension_numbers = #tpu.dot_dimension_numbers<[1], [0], [0], [1], [0, 0, 1, 1], [], []>} : vector<8x48xbf16>, vector<48x16xbf16>, vector<8x16xf32> -> vector<8x16xf32>
    %c1_21 = arith.constant 1 : index
    %c0_22 = arith.constant 0 : index
    %43 = vector.load %arg4[%c1_21, %c0_22] : memref<27x16xf32, #tpu.memory_space<vmem>>, vector<1x16xf32>
    %44 = vector.shape_cast %43 : vector<1x16xf32> to vector<16xf32>
    %45 = vector.shape_cast %44 : vector<16xf32> to vector<1x16xf32>
    %46 = vector.broadcast %45 : vector<1x16xf32> to vector<8x16xf32>
    %47 = arith.addf %42, %46 : vector<8x16xf32>
    %c2 = arith.constant 2 : index
    %c0_23 = arith.constant 0 : index
    %c0_24 = arith.constant 0 : index
    %48 = vector.load %arg3[%c2, %c0_23, %c0_24] : memref<27x48x16xbf16, #tpu.memory_space<vmem>>, vector<1x48x16xbf16>
    %49 = vector.shape_cast %48 : vector<1x48x16xbf16> to vector<48x16xbf16>
    %cst_25 = arith.constant dense<0.000000e+00> : vector<8x16xf32>
    %50 = tpu.matmul %30, %49, %cst_25 {dimension_numbers = #tpu.dot_dimension_numbers<[1], [0], [0], [1], [0, 0, 1, 1], [], []>} : vector<8x48xbf16>, vector<48x16xbf16>, vector<8x16xf32> -> vector<8x16xf32>
    %c2_26 = arith.constant 2 : index
    %c0_27 = arith.constant 0 : index
    %51 = vector.load %arg4[%c2_26, %c0_27] : memref<27x16xf32, #tpu.memory_space<vmem>>, vector<1x16xf32>
    %52 = vector.shape_cast %51 : vector<1x16xf32> to vector<16xf32>
    %53 = vector.shape_cast %52 : vector<16xf32> to vector<1x16xf32>
    %54 = vector.broadcast %53 : vector<1x16xf32> to vector<8x16xf32>
    %55 = arith.addf %50, %54 : vector<8x16xf32>
    %56 = arith.truncf %39 : vector<8x16xf32> to vector<8x16xbf16>
    %57 = arith.truncf %47 : vector<8x16xf32> to vector<8x16xbf16>
    %cst_28 = arith.constant dense<0.000000e+00> : vector<8x8xf32>
    %58 = tpu.matmul %56, %57, %cst_28 {dimension_numbers = #tpu.dot_dimension_numbers<[1], [1], [0], [0], [0, 0, 1, 0], [], []>} : vector<8x16xbf16>, vector<8x16xbf16>, vector<8x8xf32> -> vector<8x8xf32>
    %59 = arith.addf %58, %1 : vector<8x8xf32>
    %cst_29 = arith.constant dense<0xFF800000> : vector<8xf32>
    %60 = vector.multi_reduction <maximumf>, %59, %cst_29 [1] : vector<8x8xf32> to vector<8xf32>
    %61 = vector.shape_cast %60 : vector<8xf32> to vector<8x1xf32>
    %62 = vector.broadcast %61 : vector<8x1xf32> to vector<8x8xf32>
    %63 = arith.subf %59, %62 : vector<8x8xf32>
    %64 = math.exp %63 : vector<8x8xf32>
    %cst_30 = arith.constant dense<0.000000e+00> : vector<8xf32>
    %65 = vector.multi_reduction <add>, %64, %cst_30 [1] : vector<8x8xf32> to vector<8xf32>
    %66 = vector.shape_cast %65 : vector<8xf32> to vector<8x1xf32>
    %67 = tpu.reciprocal %66 {approx = true} : vector<8x1xf32> -> vector<8x1xf32>
    %68 = vector.broadcast %67 : vector<8x1xf32> to vector<8x8xf32>
    %69 = arith.mulf %64, %68 : vector<8x8xf32>
    %70 = arith.truncf %69 : vector<8x8xf32> to vector<8x8xbf16>
    %71 = arith.truncf %55 : vector<8x16xf32> to vector<8x16xbf16>
    %cst_31 = arith.constant dense<0.000000e+00> : vector<8x16xf32>
    %72 = tpu.matmul %70, %71, %cst_31 {dimension_numbers = #tpu.dot_dimension_numbers<[1], [0], [0], [1], [0, 0, 1, 1], [], []>} : vector<8x8xbf16>, vector<8x16xbf16>, vector<8x16xf32> -> vector<8x16xf32>
    %73 = arith.truncf %72 : vector<8x16xf32> to vector<8x16xbf16>
    %c0_32 = arith.constant 0 : index
    %c0_33 = arith.constant 0 : index
    %c0_34 = arith.constant 0 : index
    %74 = vector.load %arg5[%c0_32, %c0_33, %c0_34] : memref<9x16x48xbf16, #tpu.memory_space<vmem>>, vector<1x16x48xbf16>
    %75 = vector.shape_cast %74 : vector<1x16x48xbf16> to vector<16x48xbf16>
    %cst_35 = arith.constant dense<0.000000e+00> : vector<8x48xf32>
    %76 = tpu.matmul %73, %75, %cst_35 {dimension_numbers = #tpu.dot_dimension_numbers<[1], [0], [0], [1], [0, 0, 1, 1], [], []>} : vector<8x16xbf16>, vector<16x48xbf16>, vector<8x48xf32> -> vector<8x48xf32>
    %77 = arith.addf %31, %76 : vector<8x48xf32>
    %c3 = arith.constant 3 : index
    %c0_36 = arith.constant 0 : index
    %c0_37 = arith.constant 0 : index
    %78 = vector.load %arg3[%c3, %c0_36, %c0_37] : memref<27x48x16xbf16, #tpu.memory_space<vmem>>, vector<1x48x16xbf16>
    %79 = vector.shape_cast %78 : vector<1x48x16xbf16> to vector<48x16xbf16>
    %cst_38 = arith.constant dense<0.000000e+00> : vector<8x16xf32>
    %80 = tpu.matmul %30, %79, %cst_38 {dimension_numbers = #tpu.dot_dimension_numbers<[1], [0], [0], [1], [0, 0, 1, 1], [], []>} : vector<8x48xbf16>, vector<48x16xbf16>, vector<8x16xf32> -> vector<8x16xf32>
    %c3_39 = arith.constant 3 : index
    %c0_40 = arith.constant 0 : index
    %81 = vector.load %arg4[%c3_39, %c0_40] : memref<27x16xf32, #tpu.memory_space<vmem>>, vector<1x16xf32>
    %82 = vector.shape_cast %81 : vector<1x16xf32> to vector<16xf32>
    %83 = vector.shape_cast %82 : vector<16xf32> to vector<1x16xf32>
    %84 = vector.broadcast %83 : vector<1x16xf32> to vector<8x16xf32>
    %85 = arith.addf %80, %84 : vector<8x16xf32>
    %c4 = arith.constant 4 : index
    %c0_41 = arith.constant 0 : index
    %c0_42 = arith.constant 0 : index
    %86 = vector.load %arg3[%c4, %c0_41, %c0_42] : memref<27x48x16xbf16, #tpu.memory_space<vmem>>, vector<1x48x16xbf16>
    %87 = vector.shape_cast %86 : vector<1x48x16xbf16> to vector<48x16xbf16>
    %cst_43 = arith.constant dense<0.000000e+00> : vector<8x16xf32>
    %88 = tpu.matmul %30, %87, %cst_43 {dimension_numbers = #tpu.dot_dimension_numbers<[1], [0], [0], [1], [0, 0, 1, 1], [], []>} : vector<8x48xbf16>, vector<48x16xbf16>, vector<8x16xf32> -> vector<8x16xf32>
    %c4_44 = arith.constant 4 : index
    %c0_45 = arith.constant 0 : index
    %89 = vector.load %arg4[%c4_44, %c0_45] : memref<27x16xf32, #tpu.memory_space<vmem>>, vector<1x16xf32>
    %90 = vector.shape_cast %89 : vector<1x16xf32> to vector<16xf32>
    %91 = vector.shape_cast %90 : vector<16xf32> to vector<1x16xf32>
    %92 = vector.broadcast %91 : vector<1x16xf32> to vector<8x16xf32>
    %93 = arith.addf %88, %92 : vector<8x16xf32>
    %c5 = arith.constant 5 : index
    %c0_46 = arith.constant 0 : index
    %c0_47 = arith.constant 0 : index
    %94 = vector.load %arg3[%c5, %c0_46, %c0_47] : memref<27x48x16xbf16, #tpu.memory_space<vmem>>, vector<1x48x16xbf16>
    %95 = vector.shape_cast %94 : vector<1x48x16xbf16> to vector<48x16xbf16>
    %cst_48 = arith.constant dense<0.000000e+00> : vector<8x16xf32>
    %96 = tpu.matmul %30, %95, %cst_48 {dimension_numbers = #tpu.dot_dimension_numbers<[1], [0], [0], [1], [0, 0, 1, 1], [], []>} : vector<8x48xbf16>, vector<48x16xbf16>, vector<8x16xf32> -> vector<8x16xf32>
    %c5_49 = arith.constant 5 : index
    %c0_50 = arith.constant 0 : index
    %97 = vector.load %arg4[%c5_49, %c0_50] : memref<27x16xf32, #tpu.memory_space<vmem>>, vector<1x16xf32>
    %98 = vector.shape_cast %97 : vector<1x16xf32> to vector<16xf32>
    %99 = vector.shape_cast %98 : vector<16xf32> to vector<1x16xf32>
    %100 = vector.broadcast %99 : vector<1x16xf32> to vector<8x16xf32>
    %101 = arith.addf %96, %100 : vector<8x16xf32>
    %102 = arith.truncf %85 : vector<8x16xf32> to vector<8x16xbf16>
    %103 = arith.truncf %93 : vector<8x16xf32> to vector<8x16xbf16>
    %cst_51 = arith.constant dense<0.000000e+00> : vector<8x8xf32>
    %104 = tpu.matmul %102, %103, %cst_51 {dimension_numbers = #tpu.dot_dimension_numbers<[1], [1], [0], [0], [0, 0, 1, 0], [], []>} : vector<8x16xbf16>, vector<8x16xbf16>, vector<8x8xf32> -> vector<8x8xf32>
    %105 = arith.addf %104, %1 : vector<8x8xf32>
    %cst_52 = arith.constant dense<0xFF800000> : vector<8xf32>
    %106 = vector.multi_reduction <maximumf>, %105, %cst_52 [1] : vector<8x8xf32> to vector<8xf32>
    %107 = vector.shape_cast %106 : vector<8xf32> to vector<8x1xf32>
    %108 = vector.broadcast %107 : vector<8x1xf32> to vector<8x8xf32>
    %109 = arith.subf %105, %108 : vector<8x8xf32>
    %110 = math.exp %109 : vector<8x8xf32>
    %cst_53 = arith.constant dense<0.000000e+00> : vector<8xf32>
    %111 = vector.multi_reduction <add>, %110, %cst_53 [1] : vector<8x8xf32> to vector<8xf32>
    %112 = vector.shape_cast %111 : vector<8xf32> to vector<8x1xf32>
    %113 = tpu.reciprocal %112 {approx = true} : vector<8x1xf32> -> vector<8x1xf32>
    %114 = vector.broadcast %113 : vector<8x1xf32> to vector<8x8xf32>
    %115 = arith.mulf %110, %114 : vector<8x8xf32>
    %116 = arith.truncf %115 : vector<8x8xf32> to vector<8x8xbf16>
    %117 = arith.truncf %101 : vector<8x16xf32> to vector<8x16xbf16>
    %cst_54 = arith.constant dense<0.000000e+00> : vector<8x16xf32>
    %118 = tpu.matmul %116, %117, %cst_54 {dimension_numbers = #tpu.dot_dimension_numbers<[1], [0], [0], [1], [0, 0, 1, 1], [], []>} : vector<8x8xbf16>, vector<8x16xbf16>, vector<8x16xf32> -> vector<8x16xf32>
    %119 = arith.truncf %118 : vector<8x16xf32> to vector<8x16xbf16>
    %c1_55 = arith.constant 1 : index
    %c0_56 = arith.constant 0 : index
    %c0_57 = arith.constant 0 : index
    %120 = vector.load %arg5[%c1_55, %c0_56, %c0_57] : memref<9x16x48xbf16, #tpu.memory_space<vmem>>, vector<1x16x48xbf16>
    %121 = vector.shape_cast %120 : vector<1x16x48xbf16> to vector<16x48xbf16>
    %cst_58 = arith.constant dense<0.000000e+00> : vector<8x48xf32>
    %122 = tpu.matmul %119, %121, %cst_58 {dimension_numbers = #tpu.dot_dimension_numbers<[1], [0], [0], [1], [0, 0, 1, 1], [], []>} : vector<8x16xbf16>, vector<16x48xbf16>, vector<8x48xf32> -> vector<8x48xf32>
    %123 = arith.addf %77, %122 : vector<8x48xf32>
    %c6 = arith.constant 6 : index
    %c0_59 = arith.constant 0 : index
    %c0_60 = arith.constant 0 : index
    %124 = vector.load %arg3[%c6, %c0_59, %c0_60] : memref<27x48x16xbf16, #tpu.memory_space<vmem>>, vector<1x48x16xbf16>
    %125 = vector.shape_cast %124 : vector<1x48x16xbf16> to vector<48x16xbf16>
    %cst_61 = arith.constant dense<0.000000e+00> : vector<8x16xf32>
    %126 = tpu.matmul %30, %125, %cst_61 {dimension_numbers = #tpu.dot_dimension_numbers<[1], [0], [0], [1], [0, 0, 1, 1], [], []>} : vector<8x48xbf16>, vector<48x16xbf16>, vector<8x16xf32> -> vector<8x16xf32>
    %c6_62 = arith.constant 6 : index
    %c0_63 = arith.constant 0 : index
    %127 = vector.load %arg4[%c6_62, %c0_63] : memref<27x16xf32, #tpu.memory_space<vmem>>, vector<1x16xf32>
    %128 = vector.shape_cast %127 : vector<1x16xf32> to vector<16xf32>
    %129 = vector.shape_cast %128 : vector<16xf32> to vector<1x16xf32>
    %130 = vector.broadcast %129 : vector<1x16xf32> to vector<8x16xf32>
    %131 = arith.addf %126, %130 : vector<8x16xf32>
    %c7 = arith.constant 7 : index
    %c0_64 = arith.constant 0 : index
    %c0_65 = arith.constant 0 : index
    %132 = vector.load %arg3[%c7, %c0_64, %c0_65] : memref<27x48x16xbf16, #tpu.memory_space<vmem>>, vector<1x48x16xbf16>
    %133 = vector.shape_cast %132 : vector<1x48x16xbf16> to vector<48x16xbf16>
    %cst_66 = arith.constant dense<0.000000e+00> : vector<8x16xf32>
    %134 = tpu.matmul %30, %133, %cst_66 {dimension_numbers = #tpu.dot_dimension_numbers<[1], [0], [0], [1], [0, 0, 1, 1], [], []>} : vector<8x48xbf16>, vector<48x16xbf16>, vector<8x16xf32> -> vector<8x16xf32>
    %c7_67 = arith.constant 7 : index
    %c0_68 = arith.constant 0 : index
    %135 = vector.load %arg4[%c7_67, %c0_68] : memref<27x16xf32, #tpu.memory_space<vmem>>, vector<1x16xf32>
    %136 = vector.shape_cast %135 : vector<1x16xf32> to vector<16xf32>
    %137 = vector.shape_cast %136 : vector<16xf32> to vector<1x16xf32>
    %138 = vector.broadcast %137 : vector<1x16xf32> to vector<8x16xf32>
    %139 = arith.addf %134, %138 : vector<8x16xf32>
    %c8 = arith.constant 8 : index
    %c0_69 = arith.constant 0 : index
    %c0_70 = arith.constant 0 : index
    %140 = vector.load %arg3[%c8, %c0_69, %c0_70] : memref<27x48x16xbf16, #tpu.memory_space<vmem>>, vector<1x48x16xbf16>
    %141 = vector.shape_cast %140 : vector<1x48x16xbf16> to vector<48x16xbf16>
    %cst_71 = arith.constant dense<0.000000e+00> : vector<8x16xf32>
    %142 = tpu.matmul %30, %141, %cst_71 {dimension_numbers = #tpu.dot_dimension_numbers<[1], [0], [0], [1], [0, 0, 1, 1], [], []>} : vector<8x48xbf16>, vector<48x16xbf16>, vector<8x16xf32> -> vector<8x16xf32>
    %c8_72 = arith.constant 8 : index
    %c0_73 = arith.constant 0 : index
    %143 = vector.load %arg4[%c8_72, %c0_73] : memref<27x16xf32, #tpu.memory_space<vmem>>, vector<1x16xf32>
    %144 = vector.shape_cast %143 : vector<1x16xf32> to vector<16xf32>
    %145 = vector.shape_cast %144 : vector<16xf32> to vector<1x16xf32>
    %146 = vector.broadcast %145 : vector<1x16xf32> to vector<8x16xf32>
    %147 = arith.addf %142, %146 : vector<8x16xf32>
    %148 = arith.truncf %131 : vector<8x16xf32> to vector<8x16xbf16>
    %149 = arith.truncf %139 : vector<8x16xf32> to vector<8x16xbf16>
    %cst_74 = arith.constant dense<0.000000e+00> : vector<8x8xf32>
    %150 = tpu.matmul %148, %149, %cst_74 {dimension_numbers = #tpu.dot_dimension_numbers<[1], [1], [0], [0], [0, 0, 1, 0], [], []>} : vector<8x16xbf16>, vector<8x16xbf16>, vector<8x8xf32> -> vector<8x8xf32>
    %151 = arith.addf %150, %1 : vector<8x8xf32>
    %cst_75 = arith.constant dense<0xFF800000> : vector<8xf32>
    %152 = vector.multi_reduction <maximumf>, %151, %cst_75 [1] : vector<8x8xf32> to vector<8xf32>
    %153 = vector.shape_cast %152 : vector<8xf32> to vector<8x1xf32>
    %154 = vector.broadcast %153 : vector<8x1xf32> to vector<8x8xf32>
    %155 = arith.subf %151, %154 : vector<8x8xf32>
    %156 = math.exp %155 : vector<8x8xf32>
    %cst_76 = arith.constant dense<0.000000e+00> : vector<8xf32>
    %157 = vector.multi_reduction <add>, %156, %cst_76 [1] : vector<8x8xf32> to vector<8xf32>
    %158 = vector.shape_cast %157 : vector<8xf32> to vector<8x1xf32>
    %159 = tpu.reciprocal %158 {approx = true} : vector<8x1xf32> -> vector<8x1xf32>
    %160 = vector.broadcast %159 : vector<8x1xf32> to vector<8x8xf32>
    %161 = arith.mulf %156, %160 : vector<8x8xf32>
    %162 = arith.truncf %161 : vector<8x8xf32> to vector<8x8xbf16>
    %163 = arith.truncf %147 : vector<8x16xf32> to vector<8x16xbf16>
    %cst_77 = arith.constant dense<0.000000e+00> : vector<8x16xf32>
    %164 = tpu.matmul %162, %163, %cst_77 {dimension_numbers = #tpu.dot_dimension_numbers<[1], [0], [0], [1], [0, 0, 1, 1], [], []>} : vector<8x8xbf16>, vector<8x16xbf16>, vector<8x16xf32> -> vector<8x16xf32>
    %165 = arith.truncf %164 : vector<8x16xf32> to vector<8x16xbf16>
    %c2_78 = arith.constant 2 : index
    %c0_79 = arith.constant 0 : index
    %c0_80 = arith.constant 0 : index
    %166 = vector.load %arg5[%c2_78, %c0_79, %c0_80] : memref<9x16x48xbf16, #tpu.memory_space<vmem>>, vector<1x16x48xbf16>
    %167 = vector.shape_cast %166 : vector<1x16x48xbf16> to vector<16x48xbf16>
    %cst_81 = arith.constant dense<0.000000e+00> : vector<8x48xf32>
    %168 = tpu.matmul %165, %167, %cst_81 {dimension_numbers = #tpu.dot_dimension_numbers<[1], [0], [0], [1], [0, 0, 1, 1], [], []>} : vector<8x16xbf16>, vector<16x48xbf16>, vector<8x48xf32> -> vector<8x48xf32>
    %169 = arith.addf %123, %168 : vector<8x48xf32>
    %170 = arith.addf %0, %169 : vector<8x48xf32>
    %c4_82 = arith.constant 4 : index
    %c0_83 = arith.constant 0 : index
    %171 = vector.load %arg9[%c4_82, %c0_83] : memref<20x48xf32, #tpu.memory_space<vmem>>, vector<1x48xf32>
    %172 = vector.shape_cast %171 : vector<1x48xf32> to vector<48xf32>
    %173 = vector.shape_cast %172 : vector<48xf32> to vector<1x48xf32>
    %174 = vector.broadcast %173 : vector<1x48xf32> to vector<8x48xf32>
    %175 = arith.addf %170, %174 : vector<8x48xf32>
    %c2_84 = arith.constant 2 : index
    %c0_85 = arith.constant 0 : index
    %176 = vector.load %arg9[%c2_84, %c0_85] : memref<20x48xf32, #tpu.memory_space<vmem>>, vector<1x48xf32>
    %177 = vector.shape_cast %176 : vector<1x48xf32> to vector<48xf32>
    %c3_86 = arith.constant 3 : index
    %c0_87 = arith.constant 0 : index
    %178 = vector.load %arg9[%c3_86, %c0_87] : memref<20x48xf32, #tpu.memory_space<vmem>>, vector<1x48xf32>
    %179 = vector.shape_cast %178 : vector<1x48xf32> to vector<48xf32>
    %cst_88 = arith.constant dense<0.000000e+00> : vector<8xf32>
    %180 = vector.multi_reduction <add>, %175, %cst_88 [1] : vector<8x48xf32> to vector<8xf32>
    %181 = vector.shape_cast %180 : vector<8xf32> to vector<8x1xf32>
    %cst_89 = arith.constant 4.800000e+01 : f32
    %182 = vector.broadcast %cst_89 : f32 to vector<8x1xf32>
    %183 = arith.divf %181, %182 : vector<8x1xf32>
    %184 = vector.broadcast %183 : vector<8x1xf32> to vector<8x48xf32>
    %185 = arith.subf %175, %184 : vector<8x48xf32>
    %186 = arith.mulf %185, %185 : vector<8x48xf32>
    %cst_90 = arith.constant dense<0.000000e+00> : vector<8xf32>
    %187 = vector.multi_reduction <add>, %186, %cst_90 [1] : vector<8x48xf32> to vector<8xf32>
    %188 = vector.shape_cast %187 : vector<8xf32> to vector<8x1xf32>
    %cst_91 = arith.constant 4.800000e+01 : f32
    %189 = vector.broadcast %cst_91 : f32 to vector<8x1xf32>
    %190 = arith.divf %188, %189 : vector<8x1xf32>
    %191 = vector.broadcast %183 : vector<8x1xf32> to vector<8x48xf32>
    %192 = arith.subf %175, %191 : vector<8x48xf32>
    %cst_92 = arith.constant 9.99999974E-6 : f32
    %193 = vector.broadcast %cst_92 : f32 to vector<8x1xf32>
    %194 = arith.addf %190, %193 : vector<8x1xf32>
    %195 = math.rsqrt %194 : vector<8x1xf32>
    %196 = vector.broadcast %195 : vector<8x1xf32> to vector<8x48xf32>
    %197 = arith.mulf %192, %196 : vector<8x48xf32>
    %198 = vector.shape_cast %177 : vector<48xf32> to vector<1x48xf32>
    %199 = vector.broadcast %198 : vector<1x48xf32> to vector<8x48xf32>
    %200 = arith.mulf %197, %199 : vector<8x48xf32>
    %201 = vector.shape_cast %179 : vector<48xf32> to vector<1x48xf32>
    %202 = vector.broadcast %201 : vector<1x48xf32> to vector<8x48xf32>
    %203 = arith.addf %200, %202 : vector<8x48xf32>
    %204 = arith.truncf %203 : vector<8x48xf32> to vector<8x48xbf16>
    %c0_93 = arith.constant 0 : index
    %c0_94 = arith.constant 0 : index
    %c0_95 = arith.constant 0 : index
    %205 = vector.load %arg6[%c0_93, %c0_94, %c0_95] : memref<3x48x192xbf16, #tpu.memory_space<vmem>>, vector<1x48x192xbf16>
    %206 = vector.shape_cast %205 : vector<1x48x192xbf16> to vector<48x192xbf16>
    %cst_96 = arith.constant dense<0.000000e+00> : vector<8x192xf32>
    %207 = tpu.matmul %204, %206, %cst_96 {dimension_numbers = #tpu.dot_dimension_numbers<[1], [0], [0], [1], [0, 0, 1, 1], [], []>} : vector<8x48xbf16>, vector<48x192xbf16>, vector<8x192xf32> -> vector<8x192xf32>
    %c0_97 = arith.constant 0 : index
    %c0_98 = arith.constant 0 : index
    %208 = vector.load %arg7[%c0_97, %c0_98] : memref<3x192xf32, #tpu.memory_space<vmem>>, vector<1x192xf32>
    %209 = vector.shape_cast %208 : vector<1x192xf32> to vector<192xf32>
    %210 = vector.shape_cast %209 : vector<192xf32> to vector<1x192xf32>
    %211 = vector.broadcast %210 : vector<1x192xf32> to vector<8x192xf32>
    %212 = arith.addf %207, %211 : vector<8x192xf32>
    %cst_99 = arith.constant 0.000000e+00 : f32
    %213 = vector.broadcast %cst_99 : f32 to vector<8x192xf32>
    %214 = arith.maximumf %212, %213 : vector<8x192xf32>
    %215 = arith.truncf %214 : vector<8x192xf32> to vector<8x192xbf16>
    %c0_100 = arith.constant 0 : index
    %c0_101 = arith.constant 0 : index
    %c0_102 = arith.constant 0 : index
    %216 = vector.load %arg8[%c0_100, %c0_101, %c0_102] : memref<3x192x48xbf16, #tpu.memory_space<vmem>>, vector<1x192x48xbf16>
    %217 = vector.shape_cast %216 : vector<1x192x48xbf16> to vector<192x48xbf16>
    %cst_103 = arith.constant dense<0.000000e+00> : vector<8x48xf32>
    %218 = tpu.matmul %215, %217, %cst_103 {dimension_numbers = #tpu.dot_dimension_numbers<[1], [0], [0], [1], [0, 0, 1, 1], [], []>} : vector<8x192xbf16>, vector<192x48xbf16>, vector<8x48xf32> -> vector<8x48xf32>
    %219 = arith.addf %175, %218 : vector<8x48xf32>
    %c5_104 = arith.constant 5 : index
    %c0_105 = arith.constant 0 : index
    %220 = vector.load %arg9[%c5_104, %c0_105] : memref<20x48xf32, #tpu.memory_space<vmem>>, vector<1x48xf32>
    %221 = vector.shape_cast %220 : vector<1x48xf32> to vector<48xf32>
    %222 = vector.shape_cast %221 : vector<48xf32> to vector<1x48xf32>
    %223 = vector.broadcast %222 : vector<1x48xf32> to vector<8x48xf32>
    %224 = arith.addf %219, %223 : vector<8x48xf32>
    %c6_106 = arith.constant 6 : index
    %c0_107 = arith.constant 0 : index
    %225 = vector.load %arg9[%c6_106, %c0_107] : memref<20x48xf32, #tpu.memory_space<vmem>>, vector<1x48xf32>
    %226 = vector.shape_cast %225 : vector<1x48xf32> to vector<48xf32>
    %c7_108 = arith.constant 7 : index
    %c0_109 = arith.constant 0 : index
    %227 = vector.load %arg9[%c7_108, %c0_109] : memref<20x48xf32, #tpu.memory_space<vmem>>, vector<1x48xf32>
    %228 = vector.shape_cast %227 : vector<1x48xf32> to vector<48xf32>
    %cst_110 = arith.constant dense<0.000000e+00> : vector<8xf32>
    %229 = vector.multi_reduction <add>, %224, %cst_110 [1] : vector<8x48xf32> to vector<8xf32>
    %230 = vector.shape_cast %229 : vector<8xf32> to vector<8x1xf32>
    %cst_111 = arith.constant 4.800000e+01 : f32
    %231 = vector.broadcast %cst_111 : f32 to vector<8x1xf32>
    %232 = arith.divf %230, %231 : vector<8x1xf32>
    %233 = vector.broadcast %232 : vector<8x1xf32> to vector<8x48xf32>
    %234 = arith.subf %224, %233 : vector<8x48xf32>
    %235 = arith.mulf %234, %234 : vector<8x48xf32>
    %cst_112 = arith.constant dense<0.000000e+00> : vector<8xf32>
    %236 = vector.multi_reduction <add>, %235, %cst_112 [1] : vector<8x48xf32> to vector<8xf32>
    %237 = vector.shape_cast %236 : vector<8xf32> to vector<8x1xf32>
    %cst_113 = arith.constant 4.800000e+01 : f32
    %238 = vector.broadcast %cst_113 : f32 to vector<8x1xf32>
    %239 = arith.divf %237, %238 : vector<8x1xf32>
    %240 = vector.broadcast %232 : vector<8x1xf32> to vector<8x48xf32>
    %241 = arith.subf %224, %240 : vector<8x48xf32>
    %cst_114 = arith.constant 9.99999974E-6 : f32
    %242 = vector.broadcast %cst_114 : f32 to vector<8x1xf32>
    %243 = arith.addf %239, %242 : vector<8x1xf32>
    %244 = math.rsqrt %243 : vector<8x1xf32>
    %245 = vector.broadcast %244 : vector<8x1xf32> to vector<8x48xf32>
    %246 = arith.mulf %241, %245 : vector<8x48xf32>
    %247 = vector.shape_cast %226 : vector<48xf32> to vector<1x48xf32>
    %248 = vector.broadcast %247 : vector<1x48xf32> to vector<8x48xf32>
    %249 = arith.mulf %246, %248 : vector<8x48xf32>
    %250 = vector.shape_cast %228 : vector<48xf32> to vector<1x48xf32>
    %251 = vector.broadcast %250 : vector<1x48xf32> to vector<8x48xf32>
    %252 = arith.addf %249, %251 : vector<8x48xf32>
    %253 = arith.truncf %252 : vector<8x48xf32> to vector<8x48xbf16>
    %cst_115 = arith.constant 0.000000e+00 : f32
    %254 = vector.broadcast %cst_115 : f32 to vector<8x48xf32>
    %c9 = arith.constant 9 : index
    %c0_116 = arith.constant 0 : index
    %c0_117 = arith.constant 0 : index
    %255 = vector.load %arg3[%c9, %c0_116, %c0_117] : memref<27x48x16xbf16, #tpu.memory_space<vmem>>, vector<1x48x16xbf16>
    %256 = vector.shape_cast %255 : vector<1x48x16xbf16> to vector<48x16xbf16>
    %cst_118 = arith.constant dense<0.000000e+00> : vector<8x16xf32>
    %257 = tpu.matmul %253, %256, %cst_118 {dimension_numbers = #tpu.dot_dimension_numbers<[1], [0], [0], [1], [0, 0, 1, 1], [], []>} : vector<8x48xbf16>, vector<48x16xbf16>, vector<8x16xf32> -> vector<8x16xf32>
    %c9_119 = arith.constant 9 : index
    %c0_120 = arith.constant 0 : index
    %258 = vector.load %arg4[%c9_119, %c0_120] : memref<27x16xf32, #tpu.memory_space<vmem>>, vector<1x16xf32>
    %259 = vector.shape_cast %258 : vector<1x16xf32> to vector<16xf32>
    %260 = vector.shape_cast %259 : vector<16xf32> to vector<1x16xf32>
    %261 = vector.broadcast %260 : vector<1x16xf32> to vector<8x16xf32>
    %262 = arith.addf %257, %261 : vector<8x16xf32>
    %c10 = arith.constant 10 : index
    %c0_121 = arith.constant 0 : index
    %c0_122 = arith.constant 0 : index
    %263 = vector.load %arg3[%c10, %c0_121, %c0_122] : memref<27x48x16xbf16, #tpu.memory_space<vmem>>, vector<1x48x16xbf16>
    %264 = vector.shape_cast %263 : vector<1x48x16xbf16> to vector<48x16xbf16>
    %cst_123 = arith.constant dense<0.000000e+00> : vector<8x16xf32>
    %265 = tpu.matmul %253, %264, %cst_123 {dimension_numbers = #tpu.dot_dimension_numbers<[1], [0], [0], [1], [0, 0, 1, 1], [], []>} : vector<8x48xbf16>, vector<48x16xbf16>, vector<8x16xf32> -> vector<8x16xf32>
    %c10_124 = arith.constant 10 : index
    %c0_125 = arith.constant 0 : index
    %266 = vector.load %arg4[%c10_124, %c0_125] : memref<27x16xf32, #tpu.memory_space<vmem>>, vector<1x16xf32>
    %267 = vector.shape_cast %266 : vector<1x16xf32> to vector<16xf32>
    %268 = vector.shape_cast %267 : vector<16xf32> to vector<1x16xf32>
    %269 = vector.broadcast %268 : vector<1x16xf32> to vector<8x16xf32>
    %270 = arith.addf %265, %269 : vector<8x16xf32>
    %c11 = arith.constant 11 : index
    %c0_126 = arith.constant 0 : index
    %c0_127 = arith.constant 0 : index
    %271 = vector.load %arg3[%c11, %c0_126, %c0_127] : memref<27x48x16xbf16, #tpu.memory_space<vmem>>, vector<1x48x16xbf16>
    %272 = vector.shape_cast %271 : vector<1x48x16xbf16> to vector<48x16xbf16>
    %cst_128 = arith.constant dense<0.000000e+00> : vector<8x16xf32>
    %273 = tpu.matmul %253, %272, %cst_128 {dimension_numbers = #tpu.dot_dimension_numbers<[1], [0], [0], [1], [0, 0, 1, 1], [], []>} : vector<8x48xbf16>, vector<48x16xbf16>, vector<8x16xf32> -> vector<8x16xf32>
    %c11_129 = arith.constant 11 : index
    %c0_130 = arith.constant 0 : index
    %274 = vector.load %arg4[%c11_129, %c0_130] : memref<27x16xf32, #tpu.memory_space<vmem>>, vector<1x16xf32>
    %275 = vector.shape_cast %274 : vector<1x16xf32> to vector<16xf32>
    %276 = vector.shape_cast %275 : vector<16xf32> to vector<1x16xf32>
    %277 = vector.broadcast %276 : vector<1x16xf32> to vector<8x16xf32>
    %278 = arith.addf %273, %277 : vector<8x16xf32>
    %279 = arith.truncf %262 : vector<8x16xf32> to vector<8x16xbf16>
    %280 = arith.truncf %270 : vector<8x16xf32> to vector<8x16xbf16>
    %cst_131 = arith.constant dense<0.000000e+00> : vector<8x8xf32>
    %281 = tpu.matmul %279, %280, %cst_131 {dimension_numbers = #tpu.dot_dimension_numbers<[1], [1], [0], [0], [0, 0, 1, 0], [], []>} : vector<8x16xbf16>, vector<8x16xbf16>, vector<8x8xf32> -> vector<8x8xf32>
    %282 = arith.addf %281, %1 : vector<8x8xf32>
    %cst_132 = arith.constant dense<0xFF800000> : vector<8xf32>
    %283 = vector.multi_reduction <maximumf>, %282, %cst_132 [1] : vector<8x8xf32> to vector<8xf32>
    %284 = vector.shape_cast %283 : vector<8xf32> to vector<8x1xf32>
    %285 = vector.broadcast %284 : vector<8x1xf32> to vector<8x8xf32>
    %286 = arith.subf %282, %285 : vector<8x8xf32>
    %287 = math.exp %286 : vector<8x8xf32>
    %cst_133 = arith.constant dense<0.000000e+00> : vector<8xf32>
    %288 = vector.multi_reduction <add>, %287, %cst_133 [1] : vector<8x8xf32> to vector<8xf32>
    %289 = vector.shape_cast %288 : vector<8xf32> to vector<8x1xf32>
    %290 = tpu.reciprocal %289 {approx = true} : vector<8x1xf32> -> vector<8x1xf32>
    %291 = vector.broadcast %290 : vector<8x1xf32> to vector<8x8xf32>
    %292 = arith.mulf %287, %291 : vector<8x8xf32>
    %293 = arith.truncf %292 : vector<8x8xf32> to vector<8x8xbf16>
    %294 = arith.truncf %278 : vector<8x16xf32> to vector<8x16xbf16>
    %cst_134 = arith.constant dense<0.000000e+00> : vector<8x16xf32>
    %295 = tpu.matmul %293, %294, %cst_134 {dimension_numbers = #tpu.dot_dimension_numbers<[1], [0], [0], [1], [0, 0, 1, 1], [], []>} : vector<8x8xbf16>, vector<8x16xbf16>, vector<8x16xf32> -> vector<8x16xf32>
    %296 = arith.truncf %295 : vector<8x16xf32> to vector<8x16xbf16>
    %c3_135 = arith.constant 3 : index
    %c0_136 = arith.constant 0 : index
    %c0_137 = arith.constant 0 : index
    %297 = vector.load %arg5[%c3_135, %c0_136, %c0_137] : memref<9x16x48xbf16, #tpu.memory_space<vmem>>, vector<1x16x48xbf16>
    %298 = vector.shape_cast %297 : vector<1x16x48xbf16> to vector<16x48xbf16>
    %cst_138 = arith.constant dense<0.000000e+00> : vector<8x48xf32>
    %299 = tpu.matmul %296, %298, %cst_138 {dimension_numbers = #tpu.dot_dimension_numbers<[1], [0], [0], [1], [0, 0, 1, 1], [], []>} : vector<8x16xbf16>, vector<16x48xbf16>, vector<8x48xf32> -> vector<8x48xf32>
    %300 = arith.addf %254, %299 : vector<8x48xf32>
    %c12 = arith.constant 12 : index
    %c0_139 = arith.constant 0 : index
    %c0_140 = arith.constant 0 : index
    %301 = vector.load %arg3[%c12, %c0_139, %c0_140] : memref<27x48x16xbf16, #tpu.memory_space<vmem>>, vector<1x48x16xbf16>
    %302 = vector.shape_cast %301 : vector<1x48x16xbf16> to vector<48x16xbf16>
    %cst_141 = arith.constant dense<0.000000e+00> : vector<8x16xf32>
    %303 = tpu.matmul %253, %302, %cst_141 {dimension_numbers = #tpu.dot_dimension_numbers<[1], [0], [0], [1], [0, 0, 1, 1], [], []>} : vector<8x48xbf16>, vector<48x16xbf16>, vector<8x16xf32> -> vector<8x16xf32>
    %c12_142 = arith.constant 12 : index
    %c0_143 = arith.constant 0 : index
    %304 = vector.load %arg4[%c12_142, %c0_143] : memref<27x16xf32, #tpu.memory_space<vmem>>, vector<1x16xf32>
    %305 = vector.shape_cast %304 : vector<1x16xf32> to vector<16xf32>
    %306 = vector.shape_cast %305 : vector<16xf32> to vector<1x16xf32>
    %307 = vector.broadcast %306 : vector<1x16xf32> to vector<8x16xf32>
    %308 = arith.addf %303, %307 : vector<8x16xf32>
    %c13 = arith.constant 13 : index
    %c0_144 = arith.constant 0 : index
    %c0_145 = arith.constant 0 : index
    %309 = vector.load %arg3[%c13, %c0_144, %c0_145] : memref<27x48x16xbf16, #tpu.memory_space<vmem>>, vector<1x48x16xbf16>
    %310 = vector.shape_cast %309 : vector<1x48x16xbf16> to vector<48x16xbf16>
    %cst_146 = arith.constant dense<0.000000e+00> : vector<8x16xf32>
    %311 = tpu.matmul %253, %310, %cst_146 {dimension_numbers = #tpu.dot_dimension_numbers<[1], [0], [0], [1], [0, 0, 1, 1], [], []>} : vector<8x48xbf16>, vector<48x16xbf16>, vector<8x16xf32> -> vector<8x16xf32>
    %c13_147 = arith.constant 13 : index
    %c0_148 = arith.constant 0 : index
    %312 = vector.load %arg4[%c13_147, %c0_148] : memref<27x16xf32, #tpu.memory_space<vmem>>, vector<1x16xf32>
    %313 = vector.shape_cast %312 : vector<1x16xf32> to vector<16xf32>
    %314 = vector.shape_cast %313 : vector<16xf32> to vector<1x16xf32>
    %315 = vector.broadcast %314 : vector<1x16xf32> to vector<8x16xf32>
    %316 = arith.addf %311, %315 : vector<8x16xf32>
    %c14 = arith.constant 14 : index
    %c0_149 = arith.constant 0 : index
    %c0_150 = arith.constant 0 : index
    %317 = vector.load %arg3[%c14, %c0_149, %c0_150] : memref<27x48x16xbf16, #tpu.memory_space<vmem>>, vector<1x48x16xbf16>
    %318 = vector.shape_cast %317 : vector<1x48x16xbf16> to vector<48x16xbf16>
    %cst_151 = arith.constant dense<0.000000e+00> : vector<8x16xf32>
    %319 = tpu.matmul %253, %318, %cst_151 {dimension_numbers = #tpu.dot_dimension_numbers<[1], [0], [0], [1], [0, 0, 1, 1], [], []>} : vector<8x48xbf16>, vector<48x16xbf16>, vector<8x16xf32> -> vector<8x16xf32>
    %c14_152 = arith.constant 14 : index
    %c0_153 = arith.constant 0 : index
    %320 = vector.load %arg4[%c14_152, %c0_153] : memref<27x16xf32, #tpu.memory_space<vmem>>, vector<1x16xf32>
    %321 = vector.shape_cast %320 : vector<1x16xf32> to vector<16xf32>
    %322 = vector.shape_cast %321 : vector<16xf32> to vector<1x16xf32>
    %323 = vector.broadcast %322 : vector<1x16xf32> to vector<8x16xf32>
    %324 = arith.addf %319, %323 : vector<8x16xf32>
    %325 = arith.truncf %308 : vector<8x16xf32> to vector<8x16xbf16>
    %326 = arith.truncf %316 : vector<8x16xf32> to vector<8x16xbf16>
    %cst_154 = arith.constant dense<0.000000e+00> : vector<8x8xf32>
    %327 = tpu.matmul %325, %326, %cst_154 {dimension_numbers = #tpu.dot_dimension_numbers<[1], [1], [0], [0], [0, 0, 1, 0], [], []>} : vector<8x16xbf16>, vector<8x16xbf16>, vector<8x8xf32> -> vector<8x8xf32>
    %328 = arith.addf %327, %1 : vector<8x8xf32>
    %cst_155 = arith.constant dense<0xFF800000> : vector<8xf32>
    %329 = vector.multi_reduction <maximumf>, %328, %cst_155 [1] : vector<8x8xf32> to vector<8xf32>
    %330 = vector.shape_cast %329 : vector<8xf32> to vector<8x1xf32>
    %331 = vector.broadcast %330 : vector<8x1xf32> to vector<8x8xf32>
    %332 = arith.subf %328, %331 : vector<8x8xf32>
    %333 = math.exp %332 : vector<8x8xf32>
    %cst_156 = arith.constant dense<0.000000e+00> : vector<8xf32>
    %334 = vector.multi_reduction <add>, %333, %cst_156 [1] : vector<8x8xf32> to vector<8xf32>
    %335 = vector.shape_cast %334 : vector<8xf32> to vector<8x1xf32>
    %336 = tpu.reciprocal %335 {approx = true} : vector<8x1xf32> -> vector<8x1xf32>
    %337 = vector.broadcast %336 : vector<8x1xf32> to vector<8x8xf32>
    %338 = arith.mulf %333, %337 : vector<8x8xf32>
    %339 = arith.truncf %338 : vector<8x8xf32> to vector<8x8xbf16>
    %340 = arith.truncf %324 : vector<8x16xf32> to vector<8x16xbf16>
    %cst_157 = arith.constant dense<0.000000e+00> : vector<8x16xf32>
    %341 = tpu.matmul %339, %340, %cst_157 {dimension_numbers = #tpu.dot_dimension_numbers<[1], [0], [0], [1], [0, 0, 1, 1], [], []>} : vector<8x8xbf16>, vector<8x16xbf16>, vector<8x16xf32> -> vector<8x16xf32>
    %342 = arith.truncf %341 : vector<8x16xf32> to vector<8x16xbf16>
    %c4_158 = arith.constant 4 : index
    %c0_159 = arith.constant 0 : index
    %c0_160 = arith.constant 0 : index
    %343 = vector.load %arg5[%c4_158, %c0_159, %c0_160] : memref<9x16x48xbf16, #tpu.memory_space<vmem>>, vector<1x16x48xbf16>
    %344 = vector.shape_cast %343 : vector<1x16x48xbf16> to vector<16x48xbf16>
    %cst_161 = arith.constant dense<0.000000e+00> : vector<8x48xf32>
    %345 = tpu.matmul %342, %344, %cst_161 {dimension_numbers = #tpu.dot_dimension_numbers<[1], [0], [0], [1], [0, 0, 1, 1], [], []>} : vector<8x16xbf16>, vector<16x48xbf16>, vector<8x48xf32> -> vector<8x48xf32>
    %346 = arith.addf %300, %345 : vector<8x48xf32>
    %c15 = arith.constant 15 : index
    %c0_162 = arith.constant 0 : index
    %c0_163 = arith.constant 0 : index
    %347 = vector.load %arg3[%c15, %c0_162, %c0_163] : memref<27x48x16xbf16, #tpu.memory_space<vmem>>, vector<1x48x16xbf16>
    %348 = vector.shape_cast %347 : vector<1x48x16xbf16> to vector<48x16xbf16>
    %cst_164 = arith.constant dense<0.000000e+00> : vector<8x16xf32>
    %349 = tpu.matmul %253, %348, %cst_164 {dimension_numbers = #tpu.dot_dimension_numbers<[1], [0], [0], [1], [0, 0, 1, 1], [], []>} : vector<8x48xbf16>, vector<48x16xbf16>, vector<8x16xf32> -> vector<8x16xf32>
    %c15_165 = arith.constant 15 : index
    %c0_166 = arith.constant 0 : index
    %350 = vector.load %arg4[%c15_165, %c0_166] : memref<27x16xf32, #tpu.memory_space<vmem>>, vector<1x16xf32>
    %351 = vector.shape_cast %350 : vector<1x16xf32> to vector<16xf32>
    %352 = vector.shape_cast %351 : vector<16xf32> to vector<1x16xf32>
    %353 = vector.broadcast %352 : vector<1x16xf32> to vector<8x16xf32>
    %354 = arith.addf %349, %353 : vector<8x16xf32>
    %c16 = arith.constant 16 : index
    %c0_167 = arith.constant 0 : index
    %c0_168 = arith.constant 0 : index
    %355 = vector.load %arg3[%c16, %c0_167, %c0_168] : memref<27x48x16xbf16, #tpu.memory_space<vmem>>, vector<1x48x16xbf16>
    %356 = vector.shape_cast %355 : vector<1x48x16xbf16> to vector<48x16xbf16>
    %cst_169 = arith.constant dense<0.000000e+00> : vector<8x16xf32>
    %357 = tpu.matmul %253, %356, %cst_169 {dimension_numbers = #tpu.dot_dimension_numbers<[1], [0], [0], [1], [0, 0, 1, 1], [], []>} : vector<8x48xbf16>, vector<48x16xbf16>, vector<8x16xf32> -> vector<8x16xf32>
    %c16_170 = arith.constant 16 : index
    %c0_171 = arith.constant 0 : index
    %358 = vector.load %arg4[%c16_170, %c0_171] : memref<27x16xf32, #tpu.memory_space<vmem>>, vector<1x16xf32>
    %359 = vector.shape_cast %358 : vector<1x16xf32> to vector<16xf32>
    %360 = vector.shape_cast %359 : vector<16xf32> to vector<1x16xf32>
    %361 = vector.broadcast %360 : vector<1x16xf32> to vector<8x16xf32>
    %362 = arith.addf %357, %361 : vector<8x16xf32>
    %c17 = arith.constant 17 : index
    %c0_172 = arith.constant 0 : index
    %c0_173 = arith.constant 0 : index
    %363 = vector.load %arg3[%c17, %c0_172, %c0_173] : memref<27x48x16xbf16, #tpu.memory_space<vmem>>, vector<1x48x16xbf16>
    %364 = vector.shape_cast %363 : vector<1x48x16xbf16> to vector<48x16xbf16>
    %cst_174 = arith.constant dense<0.000000e+00> : vector<8x16xf32>
    %365 = tpu.matmul %253, %364, %cst_174 {dimension_numbers = #tpu.dot_dimension_numbers<[1], [0], [0], [1], [0, 0, 1, 1], [], []>} : vector<8x48xbf16>, vector<48x16xbf16>, vector<8x16xf32> -> vector<8x16xf32>
    %c17_175 = arith.constant 17 : index
    %c0_176 = arith.constant 0 : index
    %366 = vector.load %arg4[%c17_175, %c0_176] : memref<27x16xf32, #tpu.memory_space<vmem>>, vector<1x16xf32>
    %367 = vector.shape_cast %366 : vector<1x16xf32> to vector<16xf32>
    %368 = vector.shape_cast %367 : vector<16xf32> to vector<1x16xf32>
    %369 = vector.broadcast %368 : vector<1x16xf32> to vector<8x16xf32>
    %370 = arith.addf %365, %369 : vector<8x16xf32>
    %371 = arith.truncf %354 : vector<8x16xf32> to vector<8x16xbf16>
    %372 = arith.truncf %362 : vector<8x16xf32> to vector<8x16xbf16>
    %cst_177 = arith.constant dense<0.000000e+00> : vector<8x8xf32>
    %373 = tpu.matmul %371, %372, %cst_177 {dimension_numbers = #tpu.dot_dimension_numbers<[1], [1], [0], [0], [0, 0, 1, 0], [], []>} : vector<8x16xbf16>, vector<8x16xbf16>, vector<8x8xf32> -> vector<8x8xf32>
    %374 = arith.addf %373, %1 : vector<8x8xf32>
    %cst_178 = arith.constant dense<0xFF800000> : vector<8xf32>
    %375 = vector.multi_reduction <maximumf>, %374, %cst_178 [1] : vector<8x8xf32> to vector<8xf32>
    %376 = vector.shape_cast %375 : vector<8xf32> to vector<8x1xf32>
    %377 = vector.broadcast %376 : vector<8x1xf32> to vector<8x8xf32>
    %378 = arith.subf %374, %377 : vector<8x8xf32>
    %379 = math.exp %378 : vector<8x8xf32>
    %cst_179 = arith.constant dense<0.000000e+00> : vector<8xf32>
    %380 = vector.multi_reduction <add>, %379, %cst_179 [1] : vector<8x8xf32> to vector<8xf32>
    %381 = vector.shape_cast %380 : vector<8xf32> to vector<8x1xf32>
    %382 = tpu.reciprocal %381 {approx = true} : vector<8x1xf32> -> vector<8x1xf32>
    %383 = vector.broadcast %382 : vector<8x1xf32> to vector<8x8xf32>
    %384 = arith.mulf %379, %383 : vector<8x8xf32>
    %385 = arith.truncf %384 : vector<8x8xf32> to vector<8x8xbf16>
    %386 = arith.truncf %370 : vector<8x16xf32> to vector<8x16xbf16>
    %cst_180 = arith.constant dense<0.000000e+00> : vector<8x16xf32>
    %387 = tpu.matmul %385, %386, %cst_180 {dimension_numbers = #tpu.dot_dimension_numbers<[1], [0], [0], [1], [0, 0, 1, 1], [], []>} : vector<8x8xbf16>, vector<8x16xbf16>, vector<8x16xf32> -> vector<8x16xf32>
    %388 = arith.truncf %387 : vector<8x16xf32> to vector<8x16xbf16>
    %c5_181 = arith.constant 5 : index
    %c0_182 = arith.constant 0 : index
    %c0_183 = arith.constant 0 : index
    %389 = vector.load %arg5[%c5_181, %c0_182, %c0_183] : memref<9x16x48xbf16, #tpu.memory_space<vmem>>, vector<1x16x48xbf16>
    %390 = vector.shape_cast %389 : vector<1x16x48xbf16> to vector<16x48xbf16>
    %cst_184 = arith.constant dense<0.000000e+00> : vector<8x48xf32>
    %391 = tpu.matmul %388, %390, %cst_184 {dimension_numbers = #tpu.dot_dimension_numbers<[1], [0], [0], [1], [0, 0, 1, 1], [], []>} : vector<8x16xbf16>, vector<16x48xbf16>, vector<8x48xf32> -> vector<8x48xf32>
    %392 = arith.addf %346, %391 : vector<8x48xf32>
    %393 = arith.addf %224, %392 : vector<8x48xf32>
    %c10_185 = arith.constant 10 : index
    %c0_186 = arith.constant 0 : index
    %394 = vector.load %arg9[%c10_185, %c0_186] : memref<20x48xf32, #tpu.memory_space<vmem>>, vector<1x48xf32>
    %395 = vector.shape_cast %394 : vector<1x48xf32> to vector<48xf32>
    %396 = vector.shape_cast %395 : vector<48xf32> to vector<1x48xf32>
    %397 = vector.broadcast %396 : vector<1x48xf32> to vector<8x48xf32>
    %398 = arith.addf %393, %397 : vector<8x48xf32>
    %c8_187 = arith.constant 8 : index
    %c0_188 = arith.constant 0 : index
    %399 = vector.load %arg9[%c8_187, %c0_188] : memref<20x48xf32, #tpu.memory_space<vmem>>, vector<1x48xf32>
    %400 = vector.shape_cast %399 : vector<1x48xf32> to vector<48xf32>
    %c9_189 = arith.constant 9 : index
    %c0_190 = arith.constant 0 : index
    %401 = vector.load %arg9[%c9_189, %c0_190] : memref<20x48xf32, #tpu.memory_space<vmem>>, vector<1x48xf32>
    %402 = vector.shape_cast %401 : vector<1x48xf32> to vector<48xf32>
    %cst_191 = arith.constant dense<0.000000e+00> : vector<8xf32>
    %403 = vector.multi_reduction <add>, %398, %cst_191 [1] : vector<8x48xf32> to vector<8xf32>
    %404 = vector.shape_cast %403 : vector<8xf32> to vector<8x1xf32>
    %cst_192 = arith.constant 4.800000e+01 : f32
    %405 = vector.broadcast %cst_192 : f32 to vector<8x1xf32>
    %406 = arith.divf %404, %405 : vector<8x1xf32>
    %407 = vector.broadcast %406 : vector<8x1xf32> to vector<8x48xf32>
    %408 = arith.subf %398, %407 : vector<8x48xf32>
    %409 = arith.mulf %408, %408 : vector<8x48xf32>
    %cst_193 = arith.constant dense<0.000000e+00> : vector<8xf32>
    %410 = vector.multi_reduction <add>, %409, %cst_193 [1] : vector<8x48xf32> to vector<8xf32>
    %411 = vector.shape_cast %410 : vector<8xf32> to vector<8x1xf32>
    %cst_194 = arith.constant 4.800000e+01 : f32
    %412 = vector.broadcast %cst_194 : f32 to vector<8x1xf32>
    %413 = arith.divf %411, %412 : vector<8x1xf32>
    %414 = vector.broadcast %406 : vector<8x1xf32> to vector<8x48xf32>
    %415 = arith.subf %398, %414 : vector<8x48xf32>
    %cst_195 = arith.constant 9.99999974E-6 : f32
    %416 = vector.broadcast %cst_195 : f32 to vector<8x1xf32>
    %417 = arith.addf %413, %416 : vector<8x1xf32>
    %418 = math.rsqrt %417 : vector<8x1xf32>
    %419 = vector.broadcast %418 : vector<8x1xf32> to vector<8x48xf32>
    %420 = arith.mulf %415, %419 : vector<8x48xf32>
    %421 = vector.shape_cast %400 : vector<48xf32> to vector<1x48xf32>
    %422 = vector.broadcast %421 : vector<1x48xf32> to vector<8x48xf32>
    %423 = arith.mulf %420, %422 : vector<8x48xf32>
    %424 = vector.shape_cast %402 : vector<48xf32> to vector<1x48xf32>
    %425 = vector.broadcast %424 : vector<1x48xf32> to vector<8x48xf32>
    %426 = arith.addf %423, %425 : vector<8x48xf32>
    %427 = arith.truncf %426 : vector<8x48xf32> to vector<8x48xbf16>
    %c1_196 = arith.constant 1 : index
    %c0_197 = arith.constant 0 : index
    %c0_198 = arith.constant 0 : index
    %428 = vector.load %arg6[%c1_196, %c0_197, %c0_198] : memref<3x48x192xbf16, #tpu.memory_space<vmem>>, vector<1x48x192xbf16>
    %429 = vector.shape_cast %428 : vector<1x48x192xbf16> to vector<48x192xbf16>
    %cst_199 = arith.constant dense<0.000000e+00> : vector<8x192xf32>
    %430 = tpu.matmul %427, %429, %cst_199 {dimension_numbers = #tpu.dot_dimension_numbers<[1], [0], [0], [1], [0, 0, 1, 1], [], []>} : vector<8x48xbf16>, vector<48x192xbf16>, vector<8x192xf32> -> vector<8x192xf32>
    %c1_200 = arith.constant 1 : index
    %c0_201 = arith.constant 0 : index
    %431 = vector.load %arg7[%c1_200, %c0_201] : memref<3x192xf32, #tpu.memory_space<vmem>>, vector<1x192xf32>
    %432 = vector.shape_cast %431 : vector<1x192xf32> to vector<192xf32>
    %433 = vector.shape_cast %432 : vector<192xf32> to vector<1x192xf32>
    %434 = vector.broadcast %433 : vector<1x192xf32> to vector<8x192xf32>
    %435 = arith.addf %430, %434 : vector<8x192xf32>
    %cst_202 = arith.constant 0.000000e+00 : f32
    %436 = vector.broadcast %cst_202 : f32 to vector<8x192xf32>
    %437 = arith.maximumf %435, %436 : vector<8x192xf32>
    %438 = arith.truncf %437 : vector<8x192xf32> to vector<8x192xbf16>
    %c1_203 = arith.constant 1 : index
    %c0_204 = arith.constant 0 : index
    %c0_205 = arith.constant 0 : index
    %439 = vector.load %arg8[%c1_203, %c0_204, %c0_205] : memref<3x192x48xbf16, #tpu.memory_space<vmem>>, vector<1x192x48xbf16>
    %440 = vector.shape_cast %439 : vector<1x192x48xbf16> to vector<192x48xbf16>
    %cst_206 = arith.constant dense<0.000000e+00> : vector<8x48xf32>
    %441 = tpu.matmul %438, %440, %cst_206 {dimension_numbers = #tpu.dot_dimension_numbers<[1], [0], [0], [1], [0, 0, 1, 1], [], []>} : vector<8x192xbf16>, vector<192x48xbf16>, vector<8x48xf32> -> vector<8x48xf32>
    %442 = arith.addf %398, %441 : vector<8x48xf32>
    %c11_207 = arith.constant 11 : index
    %c0_208 = arith.constant 0 : index
    %443 = vector.load %arg9[%c11_207, %c0_208] : memref<20x48xf32, #tpu.memory_space<vmem>>, vector<1x48xf32>
    %444 = vector.shape_cast %443 : vector<1x48xf32> to vector<48xf32>
    %445 = vector.shape_cast %444 : vector<48xf32> to vector<1x48xf32>
    %446 = vector.broadcast %445 : vector<1x48xf32> to vector<8x48xf32>
    %447 = arith.addf %442, %446 : vector<8x48xf32>
    %c12_209 = arith.constant 12 : index
    %c0_210 = arith.constant 0 : index
    %448 = vector.load %arg9[%c12_209, %c0_210] : memref<20x48xf32, #tpu.memory_space<vmem>>, vector<1x48xf32>
    %449 = vector.shape_cast %448 : vector<1x48xf32> to vector<48xf32>
    %c13_211 = arith.constant 13 : index
    %c0_212 = arith.constant 0 : index
    %450 = vector.load %arg9[%c13_211, %c0_212] : memref<20x48xf32, #tpu.memory_space<vmem>>, vector<1x48xf32>
    %451 = vector.shape_cast %450 : vector<1x48xf32> to vector<48xf32>
    %cst_213 = arith.constant dense<0.000000e+00> : vector<8xf32>
    %452 = vector.multi_reduction <add>, %447, %cst_213 [1] : vector<8x48xf32> to vector<8xf32>
    %453 = vector.shape_cast %452 : vector<8xf32> to vector<8x1xf32>
    %cst_214 = arith.constant 4.800000e+01 : f32
    %454 = vector.broadcast %cst_214 : f32 to vector<8x1xf32>
    %455 = arith.divf %453, %454 : vector<8x1xf32>
    %456 = vector.broadcast %455 : vector<8x1xf32> to vector<8x48xf32>
    %457 = arith.subf %447, %456 : vector<8x48xf32>
    %458 = arith.mulf %457, %457 : vector<8x48xf32>
    %cst_215 = arith.constant dense<0.000000e+00> : vector<8xf32>
    %459 = vector.multi_reduction <add>, %458, %cst_215 [1] : vector<8x48xf32> to vector<8xf32>
    %460 = vector.shape_cast %459 : vector<8xf32> to vector<8x1xf32>
    %cst_216 = arith.constant 4.800000e+01 : f32
    %461 = vector.broadcast %cst_216 : f32 to vector<8x1xf32>
    %462 = arith.divf %460, %461 : vector<8x1xf32>
    %463 = vector.broadcast %455 : vector<8x1xf32> to vector<8x48xf32>
    %464 = arith.subf %447, %463 : vector<8x48xf32>
    %cst_217 = arith.constant 9.99999974E-6 : f32
    %465 = vector.broadcast %cst_217 : f32 to vector<8x1xf32>
    %466 = arith.addf %462, %465 : vector<8x1xf32>
    %467 = math.rsqrt %466 : vector<8x1xf32>
    %468 = vector.broadcast %467 : vector<8x1xf32> to vector<8x48xf32>
    %469 = arith.mulf %464, %468 : vector<8x48xf32>
    %470 = vector.shape_cast %449 : vector<48xf32> to vector<1x48xf32>
    %471 = vector.broadcast %470 : vector<1x48xf32> to vector<8x48xf32>
    %472 = arith.mulf %469, %471 : vector<8x48xf32>
    %473 = vector.shape_cast %451 : vector<48xf32> to vector<1x48xf32>
    %474 = vector.broadcast %473 : vector<1x48xf32> to vector<8x48xf32>
    %475 = arith.addf %472, %474 : vector<8x48xf32>
    %476 = arith.truncf %475 : vector<8x48xf32> to vector<8x48xbf16>
    %cst_218 = arith.constant 0.000000e+00 : f32
    %477 = vector.broadcast %cst_218 : f32 to vector<8x48xf32>
    %c18 = arith.constant 18 : index
    %c0_219 = arith.constant 0 : index
    %c0_220 = arith.constant 0 : index
    %478 = vector.load %arg3[%c18, %c0_219, %c0_220] : memref<27x48x16xbf16, #tpu.memory_space<vmem>>, vector<1x48x16xbf16>
    %479 = vector.shape_cast %478 : vector<1x48x16xbf16> to vector<48x16xbf16>
    %cst_221 = arith.constant dense<0.000000e+00> : vector<8x16xf32>
    %480 = tpu.matmul %476, %479, %cst_221 {dimension_numbers = #tpu.dot_dimension_numbers<[1], [0], [0], [1], [0, 0, 1, 1], [], []>} : vector<8x48xbf16>, vector<48x16xbf16>, vector<8x16xf32> -> vector<8x16xf32>
    %c18_222 = arith.constant 18 : index
    %c0_223 = arith.constant 0 : index
    %481 = vector.load %arg4[%c18_222, %c0_223] : memref<27x16xf32, #tpu.memory_space<vmem>>, vector<1x16xf32>
    %482 = vector.shape_cast %481 : vector<1x16xf32> to vector<16xf32>
    %483 = vector.shape_cast %482 : vector<16xf32> to vector<1x16xf32>
    %484 = vector.broadcast %483 : vector<1x16xf32> to vector<8x16xf32>
    %485 = arith.addf %480, %484 : vector<8x16xf32>
    %c19 = arith.constant 19 : index
    %c0_224 = arith.constant 0 : index
    %c0_225 = arith.constant 0 : index
    %486 = vector.load %arg3[%c19, %c0_224, %c0_225] : memref<27x48x16xbf16, #tpu.memory_space<vmem>>, vector<1x48x16xbf16>
    %487 = vector.shape_cast %486 : vector<1x48x16xbf16> to vector<48x16xbf16>
    %cst_226 = arith.constant dense<0.000000e+00> : vector<8x16xf32>
    %488 = tpu.matmul %476, %487, %cst_226 {dimension_numbers = #tpu.dot_dimension_numbers<[1], [0], [0], [1], [0, 0, 1, 1], [], []>} : vector<8x48xbf16>, vector<48x16xbf16>, vector<8x16xf32> -> vector<8x16xf32>
    %c19_227 = arith.constant 19 : index
    %c0_228 = arith.constant 0 : index
    %489 = vector.load %arg4[%c19_227, %c0_228] : memref<27x16xf32, #tpu.memory_space<vmem>>, vector<1x16xf32>
    %490 = vector.shape_cast %489 : vector<1x16xf32> to vector<16xf32>
    %491 = vector.shape_cast %490 : vector<16xf32> to vector<1x16xf32>
    %492 = vector.broadcast %491 : vector<1x16xf32> to vector<8x16xf32>
    %493 = arith.addf %488, %492 : vector<8x16xf32>
    %c20 = arith.constant 20 : index
    %c0_229 = arith.constant 0 : index
    %c0_230 = arith.constant 0 : index
    %494 = vector.load %arg3[%c20, %c0_229, %c0_230] : memref<27x48x16xbf16, #tpu.memory_space<vmem>>, vector<1x48x16xbf16>
    %495 = vector.shape_cast %494 : vector<1x48x16xbf16> to vector<48x16xbf16>
    %cst_231 = arith.constant dense<0.000000e+00> : vector<8x16xf32>
    %496 = tpu.matmul %476, %495, %cst_231 {dimension_numbers = #tpu.dot_dimension_numbers<[1], [0], [0], [1], [0, 0, 1, 1], [], []>} : vector<8x48xbf16>, vector<48x16xbf16>, vector<8x16xf32> -> vector<8x16xf32>
    %c20_232 = arith.constant 20 : index
    %c0_233 = arith.constant 0 : index
    %497 = vector.load %arg4[%c20_232, %c0_233] : memref<27x16xf32, #tpu.memory_space<vmem>>, vector<1x16xf32>
    %498 = vector.shape_cast %497 : vector<1x16xf32> to vector<16xf32>
    %499 = vector.shape_cast %498 : vector<16xf32> to vector<1x16xf32>
    %500 = vector.broadcast %499 : vector<1x16xf32> to vector<8x16xf32>
    %501 = arith.addf %496, %500 : vector<8x16xf32>
    %502 = arith.truncf %485 : vector<8x16xf32> to vector<8x16xbf16>
    %503 = arith.truncf %493 : vector<8x16xf32> to vector<8x16xbf16>
    %cst_234 = arith.constant dense<0.000000e+00> : vector<8x8xf32>
    %504 = tpu.matmul %502, %503, %cst_234 {dimension_numbers = #tpu.dot_dimension_numbers<[1], [1], [0], [0], [0, 0, 1, 0], [], []>} : vector<8x16xbf16>, vector<8x16xbf16>, vector<8x8xf32> -> vector<8x8xf32>
    %505 = arith.addf %504, %1 : vector<8x8xf32>
    %cst_235 = arith.constant dense<0xFF800000> : vector<8xf32>
    %506 = vector.multi_reduction <maximumf>, %505, %cst_235 [1] : vector<8x8xf32> to vector<8xf32>
    %507 = vector.shape_cast %506 : vector<8xf32> to vector<8x1xf32>
    %508 = vector.broadcast %507 : vector<8x1xf32> to vector<8x8xf32>
    %509 = arith.subf %505, %508 : vector<8x8xf32>
    %510 = math.exp %509 : vector<8x8xf32>
    %cst_236 = arith.constant dense<0.000000e+00> : vector<8xf32>
    %511 = vector.multi_reduction <add>, %510, %cst_236 [1] : vector<8x8xf32> to vector<8xf32>
    %512 = vector.shape_cast %511 : vector<8xf32> to vector<8x1xf32>
    %513 = tpu.reciprocal %512 {approx = true} : vector<8x1xf32> -> vector<8x1xf32>
    %514 = vector.broadcast %513 : vector<8x1xf32> to vector<8x8xf32>
    %515 = arith.mulf %510, %514 : vector<8x8xf32>
    %516 = arith.truncf %515 : vector<8x8xf32> to vector<8x8xbf16>
    %517 = arith.truncf %501 : vector<8x16xf32> to vector<8x16xbf16>
    %cst_237 = arith.constant dense<0.000000e+00> : vector<8x16xf32>
    %518 = tpu.matmul %516, %517, %cst_237 {dimension_numbers = #tpu.dot_dimension_numbers<[1], [0], [0], [1], [0, 0, 1, 1], [], []>} : vector<8x8xbf16>, vector<8x16xbf16>, vector<8x16xf32> -> vector<8x16xf32>
    %519 = arith.truncf %518 : vector<8x16xf32> to vector<8x16xbf16>
    %c6_238 = arith.constant 6 : index
    %c0_239 = arith.constant 0 : index
    %c0_240 = arith.constant 0 : index
    %520 = vector.load %arg5[%c6_238, %c0_239, %c0_240] : memref<9x16x48xbf16, #tpu.memory_space<vmem>>, vector<1x16x48xbf16>
    %521 = vector.shape_cast %520 : vector<1x16x48xbf16> to vector<16x48xbf16>
    %cst_241 = arith.constant dense<0.000000e+00> : vector<8x48xf32>
    %522 = tpu.matmul %519, %521, %cst_241 {dimension_numbers = #tpu.dot_dimension_numbers<[1], [0], [0], [1], [0, 0, 1, 1], [], []>} : vector<8x16xbf16>, vector<16x48xbf16>, vector<8x48xf32> -> vector<8x48xf32>
    %523 = arith.addf %477, %522 : vector<8x48xf32>
    %c21 = arith.constant 21 : index
    %c0_242 = arith.constant 0 : index
    %c0_243 = arith.constant 0 : index
    %524 = vector.load %arg3[%c21, %c0_242, %c0_243] : memref<27x48x16xbf16, #tpu.memory_space<vmem>>, vector<1x48x16xbf16>
    %525 = vector.shape_cast %524 : vector<1x48x16xbf16> to vector<48x16xbf16>
    %cst_244 = arith.constant dense<0.000000e+00> : vector<8x16xf32>
    %526 = tpu.matmul %476, %525, %cst_244 {dimension_numbers = #tpu.dot_dimension_numbers<[1], [0], [0], [1], [0, 0, 1, 1], [], []>} : vector<8x48xbf16>, vector<48x16xbf16>, vector<8x16xf32> -> vector<8x16xf32>
    %c21_245 = arith.constant 21 : index
    %c0_246 = arith.constant 0 : index
    %527 = vector.load %arg4[%c21_245, %c0_246] : memref<27x16xf32, #tpu.memory_space<vmem>>, vector<1x16xf32>
    %528 = vector.shape_cast %527 : vector<1x16xf32> to vector<16xf32>
    %529 = vector.shape_cast %528 : vector<16xf32> to vector<1x16xf32>
    %530 = vector.broadcast %529 : vector<1x16xf32> to vector<8x16xf32>
    %531 = arith.addf %526, %530 : vector<8x16xf32>
    %c22 = arith.constant 22 : index
    %c0_247 = arith.constant 0 : index
    %c0_248 = arith.constant 0 : index
    %532 = vector.load %arg3[%c22, %c0_247, %c0_248] : memref<27x48x16xbf16, #tpu.memory_space<vmem>>, vector<1x48x16xbf16>
    %533 = vector.shape_cast %532 : vector<1x48x16xbf16> to vector<48x16xbf16>
    %cst_249 = arith.constant dense<0.000000e+00> : vector<8x16xf32>
    %534 = tpu.matmul %476, %533, %cst_249 {dimension_numbers = #tpu.dot_dimension_numbers<[1], [0], [0], [1], [0, 0, 1, 1], [], []>} : vector<8x48xbf16>, vector<48x16xbf16>, vector<8x16xf32> -> vector<8x16xf32>
    %c22_250 = arith.constant 22 : index
    %c0_251 = arith.constant 0 : index
    %535 = vector.load %arg4[%c22_250, %c0_251] : memref<27x16xf32, #tpu.memory_space<vmem>>, vector<1x16xf32>
    %536 = vector.shape_cast %535 : vector<1x16xf32> to vector<16xf32>
    %537 = vector.shape_cast %536 : vector<16xf32> to vector<1x16xf32>
    %538 = vector.broadcast %537 : vector<1x16xf32> to vector<8x16xf32>
    %539 = arith.addf %534, %538 : vector<8x16xf32>
    %c23 = arith.constant 23 : index
    %c0_252 = arith.constant 0 : index
    %c0_253 = arith.constant 0 : index
    %540 = vector.load %arg3[%c23, %c0_252, %c0_253] : memref<27x48x16xbf16, #tpu.memory_space<vmem>>, vector<1x48x16xbf16>
    %541 = vector.shape_cast %540 : vector<1x48x16xbf16> to vector<48x16xbf16>
    %cst_254 = arith.constant dense<0.000000e+00> : vector<8x16xf32>
    %542 = tpu.matmul %476, %541, %cst_254 {dimension_numbers = #tpu.dot_dimension_numbers<[1], [0], [0], [1], [0, 0, 1, 1], [], []>} : vector<8x48xbf16>, vector<48x16xbf16>, vector<8x16xf32> -> vector<8x16xf32>
    %c23_255 = arith.constant 23 : index
    %c0_256 = arith.constant 0 : index
    %543 = vector.load %arg4[%c23_255, %c0_256] : memref<27x16xf32, #tpu.memory_space<vmem>>, vector<1x16xf32>
    %544 = vector.shape_cast %543 : vector<1x16xf32> to vector<16xf32>
    %545 = vector.shape_cast %544 : vector<16xf32> to vector<1x16xf32>
    %546 = vector.broadcast %545 : vector<1x16xf32> to vector<8x16xf32>
    %547 = arith.addf %542, %546 : vector<8x16xf32>
    %548 = arith.truncf %531 : vector<8x16xf32> to vector<8x16xbf16>
    %549 = arith.truncf %539 : vector<8x16xf32> to vector<8x16xbf16>
    %cst_257 = arith.constant dense<0.000000e+00> : vector<8x8xf32>
    %550 = tpu.matmul %548, %549, %cst_257 {dimension_numbers = #tpu.dot_dimension_numbers<[1], [1], [0], [0], [0, 0, 1, 0], [], []>} : vector<8x16xbf16>, vector<8x16xbf16>, vector<8x8xf32> -> vector<8x8xf32>
    %551 = arith.addf %550, %1 : vector<8x8xf32>
    %cst_258 = arith.constant dense<0xFF800000> : vector<8xf32>
    %552 = vector.multi_reduction <maximumf>, %551, %cst_258 [1] : vector<8x8xf32> to vector<8xf32>
    %553 = vector.shape_cast %552 : vector<8xf32> to vector<8x1xf32>
    %554 = vector.broadcast %553 : vector<8x1xf32> to vector<8x8xf32>
    %555 = arith.subf %551, %554 : vector<8x8xf32>
    %556 = math.exp %555 : vector<8x8xf32>
    %cst_259 = arith.constant dense<0.000000e+00> : vector<8xf32>
    %557 = vector.multi_reduction <add>, %556, %cst_259 [1] : vector<8x8xf32> to vector<8xf32>
    %558 = vector.shape_cast %557 : vector<8xf32> to vector<8x1xf32>
    %559 = tpu.reciprocal %558 {approx = true} : vector<8x1xf32> -> vector<8x1xf32>
    %560 = vector.broadcast %559 : vector<8x1xf32> to vector<8x8xf32>
    %561 = arith.mulf %556, %560 : vector<8x8xf32>
    %562 = arith.truncf %561 : vector<8x8xf32> to vector<8x8xbf16>
    %563 = arith.truncf %547 : vector<8x16xf32> to vector<8x16xbf16>
    %cst_260 = arith.constant dense<0.000000e+00> : vector<8x16xf32>
    %564 = tpu.matmul %562, %563, %cst_260 {dimension_numbers = #tpu.dot_dimension_numbers<[1], [0], [0], [1], [0, 0, 1, 1], [], []>} : vector<8x8xbf16>, vector<8x16xbf16>, vector<8x16xf32> -> vector<8x16xf32>
    %565 = arith.truncf %564 : vector<8x16xf32> to vector<8x16xbf16>
    %c7_261 = arith.constant 7 : index
    %c0_262 = arith.constant 0 : index
    %c0_263 = arith.constant 0 : index
    %566 = vector.load %arg5[%c7_261, %c0_262, %c0_263] : memref<9x16x48xbf16, #tpu.memory_space<vmem>>, vector<1x16x48xbf16>
    %567 = vector.shape_cast %566 : vector<1x16x48xbf16> to vector<16x48xbf16>
    %cst_264 = arith.constant dense<0.000000e+00> : vector<8x48xf32>
    %568 = tpu.matmul %565, %567, %cst_264 {dimension_numbers = #tpu.dot_dimension_numbers<[1], [0], [0], [1], [0, 0, 1, 1], [], []>} : vector<8x16xbf16>, vector<16x48xbf16>, vector<8x48xf32> -> vector<8x48xf32>
    %569 = arith.addf %523, %568 : vector<8x48xf32>
    %c24 = arith.constant 24 : index
    %c0_265 = arith.constant 0 : index
    %c0_266 = arith.constant 0 : index
    %570 = vector.load %arg3[%c24, %c0_265, %c0_266] : memref<27x48x16xbf16, #tpu.memory_space<vmem>>, vector<1x48x16xbf16>
    %571 = vector.shape_cast %570 : vector<1x48x16xbf16> to vector<48x16xbf16>
    %cst_267 = arith.constant dense<0.000000e+00> : vector<8x16xf32>
    %572 = tpu.matmul %476, %571, %cst_267 {dimension_numbers = #tpu.dot_dimension_numbers<[1], [0], [0], [1], [0, 0, 1, 1], [], []>} : vector<8x48xbf16>, vector<48x16xbf16>, vector<8x16xf32> -> vector<8x16xf32>
    %c24_268 = arith.constant 24 : index
    %c0_269 = arith.constant 0 : index
    %573 = vector.load %arg4[%c24_268, %c0_269] : memref<27x16xf32, #tpu.memory_space<vmem>>, vector<1x16xf32>
    %574 = vector.shape_cast %573 : vector<1x16xf32> to vector<16xf32>
    %575 = vector.shape_cast %574 : vector<16xf32> to vector<1x16xf32>
    %576 = vector.broadcast %575 : vector<1x16xf32> to vector<8x16xf32>
    %577 = arith.addf %572, %576 : vector<8x16xf32>
    %c25 = arith.constant 25 : index
    %c0_270 = arith.constant 0 : index
    %c0_271 = arith.constant 0 : index
    %578 = vector.load %arg3[%c25, %c0_270, %c0_271] : memref<27x48x16xbf16, #tpu.memory_space<vmem>>, vector<1x48x16xbf16>
    %579 = vector.shape_cast %578 : vector<1x48x16xbf16> to vector<48x16xbf16>
    %cst_272 = arith.constant dense<0.000000e+00> : vector<8x16xf32>
    %580 = tpu.matmul %476, %579, %cst_272 {dimension_numbers = #tpu.dot_dimension_numbers<[1], [0], [0], [1], [0, 0, 1, 1], [], []>} : vector<8x48xbf16>, vector<48x16xbf16>, vector<8x16xf32> -> vector<8x16xf32>
    %c25_273 = arith.constant 25 : index
    %c0_274 = arith.constant 0 : index
    %581 = vector.load %arg4[%c25_273, %c0_274] : memref<27x16xf32, #tpu.memory_space<vmem>>, vector<1x16xf32>
    %582 = vector.shape_cast %581 : vector<1x16xf32> to vector<16xf32>
    %583 = vector.shape_cast %582 : vector<16xf32> to vector<1x16xf32>
    %584 = vector.broadcast %583 : vector<1x16xf32> to vector<8x16xf32>
    %585 = arith.addf %580, %584 : vector<8x16xf32>
    %c26 = arith.constant 26 : index
    %c0_275 = arith.constant 0 : index
    %c0_276 = arith.constant 0 : index
    %586 = vector.load %arg3[%c26, %c0_275, %c0_276] : memref<27x48x16xbf16, #tpu.memory_space<vmem>>, vector<1x48x16xbf16>
    %587 = vector.shape_cast %586 : vector<1x48x16xbf16> to vector<48x16xbf16>
    %cst_277 = arith.constant dense<0.000000e+00> : vector<8x16xf32>
    %588 = tpu.matmul %476, %587, %cst_277 {dimension_numbers = #tpu.dot_dimension_numbers<[1], [0], [0], [1], [0, 0, 1, 1], [], []>} : vector<8x48xbf16>, vector<48x16xbf16>, vector<8x16xf32> -> vector<8x16xf32>
    %c26_278 = arith.constant 26 : index
    %c0_279 = arith.constant 0 : index
    %589 = vector.load %arg4[%c26_278, %c0_279] : memref<27x16xf32, #tpu.memory_space<vmem>>, vector<1x16xf32>
    %590 = vector.shape_cast %589 : vector<1x16xf32> to vector<16xf32>
    %591 = vector.shape_cast %590 : vector<16xf32> to vector<1x16xf32>
    %592 = vector.broadcast %591 : vector<1x16xf32> to vector<8x16xf32>
    %593 = arith.addf %588, %592 : vector<8x16xf32>
    %594 = arith.truncf %577 : vector<8x16xf32> to vector<8x16xbf16>
    %595 = arith.truncf %585 : vector<8x16xf32> to vector<8x16xbf16>
    %cst_280 = arith.constant dense<0.000000e+00> : vector<8x8xf32>
    %596 = tpu.matmul %594, %595, %cst_280 {dimension_numbers = #tpu.dot_dimension_numbers<[1], [1], [0], [0], [0, 0, 1, 0], [], []>} : vector<8x16xbf16>, vector<8x16xbf16>, vector<8x8xf32> -> vector<8x8xf32>
    %597 = arith.addf %596, %1 : vector<8x8xf32>
    %cst_281 = arith.constant dense<0xFF800000> : vector<8xf32>
    %598 = vector.multi_reduction <maximumf>, %597, %cst_281 [1] : vector<8x8xf32> to vector<8xf32>
    %599 = vector.shape_cast %598 : vector<8xf32> to vector<8x1xf32>
    %600 = vector.broadcast %599 : vector<8x1xf32> to vector<8x8xf32>
    %601 = arith.subf %597, %600 : vector<8x8xf32>
    %602 = math.exp %601 : vector<8x8xf32>
    %cst_282 = arith.constant dense<0.000000e+00> : vector<8xf32>
    %603 = vector.multi_reduction <add>, %602, %cst_282 [1] : vector<8x8xf32> to vector<8xf32>
    %604 = vector.shape_cast %603 : vector<8xf32> to vector<8x1xf32>
    %605 = tpu.reciprocal %604 {approx = true} : vector<8x1xf32> -> vector<8x1xf32>
    %606 = vector.broadcast %605 : vector<8x1xf32> to vector<8x8xf32>
    %607 = arith.mulf %602, %606 : vector<8x8xf32>
    %608 = arith.truncf %607 : vector<8x8xf32> to vector<8x8xbf16>
    %609 = arith.truncf %593 : vector<8x16xf32> to vector<8x16xbf16>
    %cst_283 = arith.constant dense<0.000000e+00> : vector<8x16xf32>
    %610 = tpu.matmul %608, %609, %cst_283 {dimension_numbers = #tpu.dot_dimension_numbers<[1], [0], [0], [1], [0, 0, 1, 1], [], []>} : vector<8x8xbf16>, vector<8x16xbf16>, vector<8x16xf32> -> vector<8x16xf32>
    %611 = arith.truncf %610 : vector<8x16xf32> to vector<8x16xbf16>
    %c8_284 = arith.constant 8 : index
    %c0_285 = arith.constant 0 : index
    %c0_286 = arith.constant 0 : index
    %612 = vector.load %arg5[%c8_284, %c0_285, %c0_286] : memref<9x16x48xbf16, #tpu.memory_space<vmem>>, vector<1x16x48xbf16>
    %613 = vector.shape_cast %612 : vector<1x16x48xbf16> to vector<16x48xbf16>
    %cst_287 = arith.constant dense<0.000000e+00> : vector<8x48xf32>
    %614 = tpu.matmul %611, %613, %cst_287 {dimension_numbers = #tpu.dot_dimension_numbers<[1], [0], [0], [1], [0, 0, 1, 1], [], []>} : vector<8x16xbf16>, vector<16x48xbf16>, vector<8x48xf32> -> vector<8x48xf32>
    %615 = arith.addf %569, %614 : vector<8x48xf32>
    %616 = arith.addf %447, %615 : vector<8x48xf32>
    %c16_288 = arith.constant 16 : index
    %c0_289 = arith.constant 0 : index
    %617 = vector.load %arg9[%c16_288, %c0_289] : memref<20x48xf32, #tpu.memory_space<vmem>>, vector<1x48xf32>
    %618 = vector.shape_cast %617 : vector<1x48xf32> to vector<48xf32>
    %619 = vector.shape_cast %618 : vector<48xf32> to vector<1x48xf32>
    %620 = vector.broadcast %619 : vector<1x48xf32> to vector<8x48xf32>
    %621 = arith.addf %616, %620 : vector<8x48xf32>
    %c14_290 = arith.constant 14 : index
    %c0_291 = arith.constant 0 : index
    %622 = vector.load %arg9[%c14_290, %c0_291] : memref<20x48xf32, #tpu.memory_space<vmem>>, vector<1x48xf32>
    %623 = vector.shape_cast %622 : vector<1x48xf32> to vector<48xf32>
    %c15_292 = arith.constant 15 : index
    %c0_293 = arith.constant 0 : index
    %624 = vector.load %arg9[%c15_292, %c0_293] : memref<20x48xf32, #tpu.memory_space<vmem>>, vector<1x48xf32>
    %625 = vector.shape_cast %624 : vector<1x48xf32> to vector<48xf32>
    %cst_294 = arith.constant dense<0.000000e+00> : vector<8xf32>
    %626 = vector.multi_reduction <add>, %621, %cst_294 [1] : vector<8x48xf32> to vector<8xf32>
    %627 = vector.shape_cast %626 : vector<8xf32> to vector<8x1xf32>
    %cst_295 = arith.constant 4.800000e+01 : f32
    %628 = vector.broadcast %cst_295 : f32 to vector<8x1xf32>
    %629 = arith.divf %627, %628 : vector<8x1xf32>
    %630 = vector.broadcast %629 : vector<8x1xf32> to vector<8x48xf32>
    %631 = arith.subf %621, %630 : vector<8x48xf32>
    %632 = arith.mulf %631, %631 : vector<8x48xf32>
    %cst_296 = arith.constant dense<0.000000e+00> : vector<8xf32>
    %633 = vector.multi_reduction <add>, %632, %cst_296 [1] : vector<8x48xf32> to vector<8xf32>
    %634 = vector.shape_cast %633 : vector<8xf32> to vector<8x1xf32>
    %cst_297 = arith.constant 4.800000e+01 : f32
    %635 = vector.broadcast %cst_297 : f32 to vector<8x1xf32>
    %636 = arith.divf %634, %635 : vector<8x1xf32>
    %637 = vector.broadcast %629 : vector<8x1xf32> to vector<8x48xf32>
    %638 = arith.subf %621, %637 : vector<8x48xf32>
    %cst_298 = arith.constant 9.99999974E-6 : f32
    %639 = vector.broadcast %cst_298 : f32 to vector<8x1xf32>
    %640 = arith.addf %636, %639 : vector<8x1xf32>
    %641 = math.rsqrt %640 : vector<8x1xf32>
    %642 = vector.broadcast %641 : vector<8x1xf32> to vector<8x48xf32>
    %643 = arith.mulf %638, %642 : vector<8x48xf32>
    %644 = vector.shape_cast %623 : vector<48xf32> to vector<1x48xf32>
    %645 = vector.broadcast %644 : vector<1x48xf32> to vector<8x48xf32>
    %646 = arith.mulf %643, %645 : vector<8x48xf32>
    %647 = vector.shape_cast %625 : vector<48xf32> to vector<1x48xf32>
    %648 = vector.broadcast %647 : vector<1x48xf32> to vector<8x48xf32>
    %649 = arith.addf %646, %648 : vector<8x48xf32>
    %650 = arith.truncf %649 : vector<8x48xf32> to vector<8x48xbf16>
    %c2_299 = arith.constant 2 : index
    %c0_300 = arith.constant 0 : index
    %c0_301 = arith.constant 0 : index
    %651 = vector.load %arg6[%c2_299, %c0_300, %c0_301] : memref<3x48x192xbf16, #tpu.memory_space<vmem>>, vector<1x48x192xbf16>
    %652 = vector.shape_cast %651 : vector<1x48x192xbf16> to vector<48x192xbf16>
    %cst_302 = arith.constant dense<0.000000e+00> : vector<8x192xf32>
    %653 = tpu.matmul %650, %652, %cst_302 {dimension_numbers = #tpu.dot_dimension_numbers<[1], [0], [0], [1], [0, 0, 1, 1], [], []>} : vector<8x48xbf16>, vector<48x192xbf16>, vector<8x192xf32> -> vector<8x192xf32>
    %c2_303 = arith.constant 2 : index
    %c0_304 = arith.constant 0 : index
    %654 = vector.load %arg7[%c2_303, %c0_304] : memref<3x192xf32, #tpu.memory_space<vmem>>, vector<1x192xf32>
    %655 = vector.shape_cast %654 : vector<1x192xf32> to vector<192xf32>
    %656 = vector.shape_cast %655 : vector<192xf32> to vector<1x192xf32>
    %657 = vector.broadcast %656 : vector<1x192xf32> to vector<8x192xf32>
    %658 = arith.addf %653, %657 : vector<8x192xf32>
    %cst_305 = arith.constant 0.000000e+00 : f32
    %659 = vector.broadcast %cst_305 : f32 to vector<8x192xf32>
    %660 = arith.maximumf %658, %659 : vector<8x192xf32>
    %661 = arith.truncf %660 : vector<8x192xf32> to vector<8x192xbf16>
    %c2_306 = arith.constant 2 : index
    %c0_307 = arith.constant 0 : index
    %c0_308 = arith.constant 0 : index
    %662 = vector.load %arg8[%c2_306, %c0_307, %c0_308] : memref<3x192x48xbf16, #tpu.memory_space<vmem>>, vector<1x192x48xbf16>
    %663 = vector.shape_cast %662 : vector<1x192x48xbf16> to vector<192x48xbf16>
    %cst_309 = arith.constant dense<0.000000e+00> : vector<8x48xf32>
    %664 = tpu.matmul %661, %663, %cst_309 {dimension_numbers = #tpu.dot_dimension_numbers<[1], [0], [0], [1], [0, 0, 1, 1], [], []>} : vector<8x192xbf16>, vector<192x48xbf16>, vector<8x48xf32> -> vector<8x48xf32>
    %665 = arith.addf %621, %664 : vector<8x48xf32>
    %c17_310 = arith.constant 17 : index
    %c0_311 = arith.constant 0 : index
    %666 = vector.load %arg9[%c17_310, %c0_311] : memref<20x48xf32, #tpu.memory_space<vmem>>, vector<1x48xf32>
    %667 = vector.shape_cast %666 : vector<1x48xf32> to vector<48xf32>
    %668 = vector.shape_cast %667 : vector<48xf32> to vector<1x48xf32>
    %669 = vector.broadcast %668 : vector<1x48xf32> to vector<8x48xf32>
    %670 = arith.addf %665, %669 : vector<8x48xf32>
    %c18_312 = arith.constant 18 : index
    %c0_313 = arith.constant 0 : index
    %671 = vector.load %arg9[%c18_312, %c0_313] : memref<20x48xf32, #tpu.memory_space<vmem>>, vector<1x48xf32>
    %672 = vector.shape_cast %671 : vector<1x48xf32> to vector<48xf32>
    %c19_314 = arith.constant 19 : index
    %c0_315 = arith.constant 0 : index
    %673 = vector.load %arg9[%c19_314, %c0_315] : memref<20x48xf32, #tpu.memory_space<vmem>>, vector<1x48xf32>
    %674 = vector.shape_cast %673 : vector<1x48xf32> to vector<48xf32>
    %cst_316 = arith.constant dense<0.000000e+00> : vector<8xf32>
    %675 = vector.multi_reduction <add>, %670, %cst_316 [1] : vector<8x48xf32> to vector<8xf32>
    %676 = vector.shape_cast %675 : vector<8xf32> to vector<8x1xf32>
    %cst_317 = arith.constant 4.800000e+01 : f32
    %677 = vector.broadcast %cst_317 : f32 to vector<8x1xf32>
    %678 = arith.divf %676, %677 : vector<8x1xf32>
    %679 = vector.broadcast %678 : vector<8x1xf32> to vector<8x48xf32>
    %680 = arith.subf %670, %679 : vector<8x48xf32>
    %681 = arith.mulf %680, %680 : vector<8x48xf32>
    %cst_318 = arith.constant dense<0.000000e+00> : vector<8xf32>
    %682 = vector.multi_reduction <add>, %681, %cst_318 [1] : vector<8x48xf32> to vector<8xf32>
    %683 = vector.shape_cast %682 : vector<8xf32> to vector<8x1xf32>
    %cst_319 = arith.constant 4.800000e+01 : f32
    %684 = vector.broadcast %cst_319 : f32 to vector<8x1xf32>
    %685 = arith.divf %683, %684 : vector<8x1xf32>
    %686 = vector.broadcast %678 : vector<8x1xf32> to vector<8x48xf32>
    %687 = arith.subf %670, %686 : vector<8x48xf32>
    %cst_320 = arith.constant 9.99999974E-6 : f32
    %688 = vector.broadcast %cst_320 : f32 to vector<8x1xf32>
    %689 = arith.addf %685, %688 : vector<8x1xf32>
    %690 = math.rsqrt %689 : vector<8x1xf32>
    %691 = vector.broadcast %690 : vector<8x1xf32> to vector<8x48xf32>
    %692 = arith.mulf %687, %691 : vector<8x48xf32>
    %693 = vector.shape_cast %672 : vector<48xf32> to vector<1x48xf32>
    %694 = vector.broadcast %693 : vector<1x48xf32> to vector<8x48xf32>
    %695 = arith.mulf %692, %694 : vector<8x48xf32>
    %696 = vector.shape_cast %674 : vector<48xf32> to vector<1x48xf32>
    %697 = vector.broadcast %696 : vector<1x48xf32> to vector<8x48xf32>
    %698 = arith.addf %695, %697 : vector<8x48xf32>
    %699 = arith.truncf %698 : vector<8x48xf32> to vector<8x48xbf16>
    %c0_321 = arith.constant 0 : index
    %c0_322 = arith.constant 0 : index
    %700 = vector.load %arg10[%c0_321, %c0_322] : memref<48x128xbf16, #tpu.memory_space<vmem>>, vector<48x128xbf16>
    %cst_323 = arith.constant dense<0.000000e+00> : vector<8x128xf32>
    %701 = tpu.matmul %699, %700, %cst_323 {dimension_numbers = #tpu.dot_dimension_numbers<[1], [0], [0], [1], [0, 0, 1, 1], [], []>} : vector<8x48xbf16>, vector<48x128xbf16>, vector<8x128xf32> -> vector<8x128xf32>
    %c0_324 = arith.constant 0 : index
    %c0_325 = arith.constant 0 : index
    %702 = vector.load %arg11[%c0_324, %c0_325] : memref<1x128xf32, #tpu.memory_space<vmem>>, vector<1x128xf32>
    %703 = vector.broadcast %702 : vector<1x128xf32> to vector<8x128xf32>
    %704 = arith.addf %701, %703 : vector<8x128xf32>
    %c0_326 = arith.constant 0 : index
    %c0_327 = arith.constant 0 : index
    %705 = vector.load %arg12[%c0_326, %c0_327] : memref<8x128xf32, #tpu.memory_space<vmem>>, vector<8x128xf32>
    tpu.vector_store %arg12[%c0_326, %c0_327], %704 {strides = array<i32>} : memref<8x128xf32, #tpu.memory_space<vmem>>, vector<8x128xf32>,
    return
  }
  func.func @transform_0(%arg0: i32) -> (i32, i32) {
    %c0_i32 = arith.constant 0 : i32
    %c0_i32_0 = arith.constant 0 : i32
    return %arg0, %c0_i32 : i32, i32
  }
  func.func @transform_1(%arg0: i32) -> (i32, i32) {
    %c0_i32 = arith.constant 0 : i32
    %c0_i32_0 = arith.constant 0 : i32
    %c0_i32_1 = arith.constant 0 : i32
    return %c0_i32, %c0_i32_0 : i32, i32
  }
  func.func @transform_2(%arg0: i32) -> (i32, i32, i32) {
    %c0_i32 = arith.constant 0 : i32
    %c0_i32_0 = arith.constant 0 : i32
    %c0_i32_1 = arith.constant 0 : i32
    %c0_i32_2 = arith.constant 0 : i32
    return %c0_i32, %c0_i32_0, %c0_i32_1 : i32, i32, i32
  }
  func.func @transform_3(%arg0: i32) -> (i32, i32) {
    %c0_i32 = arith.constant 0 : i32
    %c0_i32_0 = arith.constant 0 : i32
    %c0_i32_1 = arith.constant 0 : i32
    return %c0_i32, %c0_i32_0 : i32, i32
  }
  func.func @transform_4(%arg0: i32) -> (i32, i32, i32) {
    %c0_i32 = arith.constant 0 : i32
    %c0_i32_0 = arith.constant 0 : i32
    %c0_i32_1 = arith.constant 0 : i32
    %c0_i32_2 = arith.constant 0 : i32
    return %c0_i32, %c0_i32_0, %c0_i32_1 : i32, i32, i32
  }
  func.func @transform_5(%arg0: i32) -> (i32, i32, i32) {
    %c0_i32 = arith.constant 0 : i32
    %c0_i32_0 = arith.constant 0 : i32
    %c0_i32_1 = arith.constant 0 : i32
    %c0_i32_2 = arith.constant 0 : i32
    return %c0_i32, %c0_i32_0, %c0_i32_1 : i32, i32, i32
  }
  func.func @transform_6(%arg0: i32) -> (i32, i32) {
    %c0_i32 = arith.constant 0 : i32
    %c0_i32_0 = arith.constant 0 : i32
    %c0_i32_1 = arith.constant 0 : i32
    return %c0_i32, %c0_i32_0 : i32, i32
  }
  func.func @transform_7(%arg0: i32) -> (i32, i32, i32) {
    %c0_i32 = arith.constant 0 : i32
    %c0_i32_0 = arith.constant 0 : i32
    %c0_i32_1 = arith.constant 0 : i32
    %c0_i32_2 = arith.constant 0 : i32
    return %c0_i32, %c0_i32_0, %c0_i32_1 : i32, i32, i32
  }
  func.func @transform_8(%arg0: i32) -> (i32, i32) {
    %c0_i32 = arith.constant 0 : i32
    %c0_i32_0 = arith.constant 0 : i32
    %c0_i32_1 = arith.constant 0 : i32
    return %c0_i32, %c0_i32_0 : i32, i32
  }
  func.func @transform_9(%arg0: i32) -> (i32, i32) {
    %c0_i32 = arith.constant 0 : i32
    %c0_i32_0 = arith.constant 0 : i32
    %c0_i32_1 = arith.constant 0 : i32
    return %c0_i32, %c0_i32_0 : i32, i32
  }
  func.func @transform_10(%arg0: i32) -> (i32, i32) {
    %c0_i32 = arith.constant 0 : i32
    %c0_i32_0 = arith.constant 0 : i32
    %c0_i32_1 = arith.constant 0 : i32
    return %c0_i32, %c0_i32_0 : i32, i32
  }
  func.func @transform_11(%arg0: i32) -> (i32, i32) {
    %c0_i32 = arith.constant 0 : i32
    %c0_i32_0 = arith.constant 0 : i32
    return %arg0, %c0_i32 : i32, i32
  }
}

</mosaic_0001>

<bundles_post_ra>
// kernel: tpu_custom_call.1
= control target key start
LH: loop header
LB: loop body
LE: loop exit
PB: predicated region body
PF: predicated region fallthrough
CT: control target
= control target key end

     0   :  { %16 = vsyncpa [#allocation3], 0  ;;  %s7459_s0 = inlined_call_operand.vmem [shape: f32[16,48], index: 0, kind: input, shape index: {}]   ;;  %s7460_s1 = inlined_call_operand.vmem [shape: f32[8,8], index: 1, kind: input, shape index: {}]   ;;  %s7461_s2 = inlined_call_operand.vmem [shape: bf16[27,48,16], index: 2, kind: input, shape index: {}]   ;;  %s7462_s3 = inlined_call_operand.vmem [shape: f32[27,16], index: 3, kind: input, shape index: {}]   ;;  %s7463_s4 = inlined_call_operand.vmem [shape: bf16[9,16,48], index: 4, kind: input, shape index: {}]   ;;  %s7464_s5 = inlined_call_operand.vmem [shape: bf16[3,48,192], index: 5, kind: input, shape index: {}]   ;;  %s7465_s6 = inlined_call_operand.vmem [shape: f32[3,192], index: 6, kind: input, shape index: {}]   ;;  %s7466_s7 = inlined_call_operand.vmem [shape: bf16[3,192,48], index: 7, kind: input, shape index: {}]   ;;  %s7467_s8 = inlined_call_operand.vmem [shape: f32[20,48], index: 8, kind: input, shape index: {}]   ;;  %s7468_s9 = inlined_call_operand.vmem [shape: bf16[48,128], index: 9, kind: input, shape index: {}]   ;;  %s7469_s10 = inlined_call_operand.vmem [shape: f32[1,128], index: 10, kind: input, shape index: {}]   ;;  %s7470_s11 = inlined_call_operand.hbm [shape: f32[16,128], index: 11, kind: output, shape index: {}]  }
   0x1   :  { %18 = vsyncpa [#allocation3 + $0x1], 0  ;;  %s6300_s17 = smov 0   ;;  %s6302_s18 = smov 0  }
   0x2   :  { %s6304_s19 = smov 0   ;;  %s6306_s20 = smov 0  }
   0x3 LB: > { %s6321_s21 = sadd.s32 4294967295, %s6234_s20   ;;  %s4814_s22 = sadd.s32 4294967294, %s6234_s20   ;;  %s6234_s20 = sphi %s6306_s20, %s7476_s20   ;;  %s6230_s19 = sphi %s6304_s19, %s7475_s19   ;;  %s6226_s18 = sphi %s6302_s18, %s7474_s18   ;;  %s6222_s17 = sphi %s6300_s17, %s7473_s17  }
   0x4   : > { %s6325_s23 = sadd.s32 1, %s6234_s20   ;;  %s267_s24 = sadd.s32 1, %s6230_s19 }
   0x5   : > { %s264_s25 = ssub.s32 %s6234_s20, %s6325_s23  ;;  %p277_p0 = scmp.ne.s32.totalorder %s6230_s19, %s6226_s18 }
   0x6   : > { %p265_p1 = scmp.eq.s32.totalorder %s264_s25, 0  ;;  %p278_p2 = scmp.eq.s32.totalorder %s6321_s21, 1 }
   0x7   : > { %p283_p3 = scmp.ne.s32.totalorder %s6226_s18, %s6222_s17  ;;  %p284_p4 = scmp.eq.s32.totalorder %s4814_s22, 1 }
   0x8   : > { %s6336_s26 = scalar_select %p265_p1, %s6230_s19, %s267_s24  }
   0x9   : > { %p6338_p5 = por %p278_p2, %p277_p0  ;;  %p6342_p6 = por %p284_p4, %p283_p3 }
   0xa   : > { %p4817_p7 = scmp.ge.s32.totalorder %s6234_s20, 1  ;;  %p339_p8 = scmp.lt.s32.totalorder %s6234_s20, 3 }
   0xc   : > { %p340_p9 = pnand %p4817_p7, %p339_p8 }
   0xd   : > { %p378_p10 = scmp.lt.s32.totalorder (!%p340_p9), %s6321_s21, 1  ;;  %vm387_vm0 = vcmask (!%p340_p9), 392192   ;;  %v5964_v7 = vld [vmem:[%s7461_s2] sm:$0xff] (!%p340_p9)   ;;  %v5965_v8 = vld [vmem:[%s7461_s2 + $0x30] sm:$0xff] (!%p340_p9)   ;;  %v6236_v9 = vmov (!%p340_p9), 0.0   ;;  %v5966_v10 = vld [vmem:[%s7461_s2 + $0x8] sm:$0xff] (!%p340_p9)  }
   0xe   : > { %343 = sbr.rel (%p340_p9) target bundleno = 12575 (0x311f), region = 64  ;;  %5480 = vmatprep.subr.bf16.mxu1 (!%p340_p9), %v6236_v9  ;;  %5500 = vmatprep.subr.bf16.mxu0 (!%p340_p9), %v6236_v9  ;;  %v5967_v11 = vld [vmem:[%s7461_s2 + $0x38] sm:$0xff] (!%p340_p9)   ;;  %v5968_v12 = vld [vmem:[%s7461_s2 + $0x10] sm:$0xff] (!%p340_p9)   ;;  %v5969_v13 = vld [vmem:[%s7461_s2 + $0x40] sm:$0xff] (!%p340_p9)   ;;  %vm6237_vm1 = vmmov (!%p340_p9), 0   ;;  %vm627_vm2 = vcmask (!%p340_p9), 130048  }
   0xf   : > { %5481 = vmatpush3.bf16.msra.mxu1 (!%p340_p9), %v5964_v7  ;;  %5501 = vmatpush3.bf16.msra.mxu0 (!%p340_p9), %v5965_v8  ;;  %v4820_v18 = vld [vmem:[%s7467_s8] ss:$0 sm:$0xff] (!%p340_p9)  ;;  %v4821_v20 = vld [vmem:[%s7467_s8 + $0x1] ss:$0 sm:$0xff] (!%p340_p9)  ;;  %v5970_v23 = vld [vmem:[%s7461_s2 + $0x18] sm:$0xff] (!%p340_p9)   ;;  %vm691_vm3 = vcmask (!%p340_p9), 1043456  }
  0x10   : > { %5482 = vmatprep.subr.bf16.mxu1 (!%p340_p9), %v6236_v9  ;;  %5502 = vmatprep.subr.bf16.mxu0 (!%p340_p9), %v6236_v9  ;;  %v5971_v24 = vld [vmem:[%s7461_s2 + $0x48] sm:$0xff] (!%p340_p9)   ;;  %v5972_v26 = vld [vmem:[%s7461_s2 + $0x20] sm:$0xff] (!%p340_p9)   ;;  %v5973_v27 = vld [vmem:[%s7461_s2 + $0x50] sm:$0xff] (!%p340_p9)   ;;  %vm674_vm4 = vcmask (!%p340_p9), 64512   ;;  %vm1753_vm5 = vcmask (!%p340_p9), 523264   ;;  %s5311_s16 = sshll.u32 (!%p340_p9), %s6321_s21, 7 }
  0x11   : > { %5486 = vmatprep.mubr.msk.bf16.mxu1 (!%p340_p9), %vm6237_vm1, %v6236_v9  ;;  %5506 = vmatprep.mubr.msk.bf16.mxu0 (!%p340_p9), %vm6237_vm1, %v6236_v9  ;;  %v5974_v28 = vld [vmem:[%s7461_s2 + $0x28] sm:$0xff] (!%p340_p9)   ;;  %v5975_v29 = vld [vmem:[%s7461_s2 + $0x58] sm:$0xff] (!%p340_p9)   ;;  %v5977_v31 = vld [vmem:[%s7461_s2 + $0x80] sm:$0xff] (!%p340_p9)  }
  0x12   : > { %v5976_v30 = vld [vmem:[%s7461_s2 + $0x78] sm:$0xff] (!%p340_p9)   ;;  %v5978_v32 = vld [vmem:[%s7461_s2 + $0x88] sm:$0xff] (!%p340_p9)   ;;  %v4833_v41 = vld [vmem:[%s7462_s3 + $0x1] ss:$0 sm:$0xff] (!%p340_p9) }
  0x13   : > { %5483 = vmatpush3.bf16.msra.mxu1 (!%p340_p9), %v5966_v10  ;;  %5503 = vmatpush3.bf16.msra.mxu0 (!%p340_p9), %v5967_v11  ;;  %v4844_v47 = vld [vmem:[%s7462_s3 + $0x2] ss:$0 sm:$0xff] (!%p340_p9)  ;;  %v4822_v53 = vld [vmem:[%s7462_s3] ss:$0 sm:$0xff] (!%p340_p9)  ;;  %v4879_v58 = vld [vmem:[%s7462_s3 + $0x5] ss:$0 sm:$0xff] (!%p340_p9) }
  0x14   : > { %5484 = vmatprep.subr.bf16.mxu1 (!%p340_p9), %v6236_v9  ;;  %5504 = vmatprep.subr.bf16.mxu0 (!%p340_p9), %v6236_v9 }
  0x15   : > { %s379_s29 = scalar_select %p378_p10, %s6321_s21, 1 }
  0x17   : > { %s4819_s30 = sshll.u32 %s379_s29, 3  ;;  %5485 = vmatpush3.bf16.msra.mxu1 %v5968_v12  ;;  %5505 = vmatpush3.bf16.msra.mxu0 %v5969_v13 }
  0x18   : > { %s6353_s14 = scalar_lea.vmem %s7459_s0, %s4819_s30  ;;  %5490 = vmatprep.subr.bf16.mxu1 %v6236_v9  ;;  %5522 = vmatprep.subr.bf16.mxu0 %v6236_v9  ;;  %s7417_s30 = scalar_lea.hbm %s7470_s11, %s5311_s16 }
  0x19   : > { %v383_v0 = vld [vmem:[%s6353_s14] sm:$0xff] }
  0x1a   : > { %v388_v1 = vsel %vm387_vm0, %v383_v0, 0.0 }
  0x1b   : > { %389 = vadd.xlane.f32.xlu0 %v388_v1 }
  0xa8   : > { %v390_v2 = vpop.xlane.xlu0 %389 }
  0xa9   : > { %v392_v3 = vmul.f32 0.020833334, %v390_v2 }
  0xab   : > { %v393_v4 = vsub.f32 %v383_v0, %v392_v3 }
  0xad   : > { %v394_v5 = vmul.f32 %v393_v4, %v393_v4 }
  0xaf   : > { %v395_v6 = vsel %vm387_vm0, %v394_v5, 0.0 }
  0xb0   : > { %396 = vadd.xlane.f32.xlu0 %v395_v6 }
 0x13d   : > { %v397_v14 = vpop.xlane.xlu0 %396 }
 0x13e   : > { %v398_v15 = vmul.f32 0.020833334, %v397_v14 }
 0x140   : > { %v399_v16 = vadd.f32 1e-05, %v398_v15 }
 0x142   : > { %6120 = vrsqrt.f32 %v399_v16 }
 0x14c   : > { %v6121_v17 = vpop.eup %6120 }
 0x14d   : > { %v401_v19 = vmul.f32 %v6121_v17, %v393_v4  ;;  %v6478_v4 = vld [vmem:[%s7460_s1] sm:$0xff] }
 0x14f   : > { %v406_v21 = vmul.f32 %v4820_v18, %v401_v19 }
 0x151   : > { %v411_v22 = vadd.f32 %v4821_v20, %v406_v21  ;;  %v5979_v20 = vld [vmem:[%s7461_s2 + $0x60] sm:$0xff]  }
 0x153   : > { %v6400_v25 = vpack.c.bf16 %v411_v22, %v411_v22  ;;  %v5980_v22 = vld [vmem:[%s7461_s2 + $0x68] sm:$0xff]  }
 0x155   : > { %5487 = vmatmul.mubr.msk.bf16.vlgmr.msra.gmra.mrb[0].mxu1 %vm387_vm0, %v6400_v25  ;;  %5507 = vmatmul.mubr.msk.bf16.vlgmr.msra.gmra.mrb[0].mxu0 %vm387_vm0, %v6400_v25 }
 0x156   : > { %5491 = vmatpush3.bf16.msra.mxu1 %v5970_v23  ;;  %5523 = vmatpush3.bf16.msra.mxu0 %v5971_v24  ;;  %v5981_v23 = vld [vmem:[%s7461_s2 + $0x70] sm:$0xff]  }
 0x157   : > { %5492 = vmatprep.subr.bf16.mxu1 %v6236_v9  ;;  %5524 = vmatprep.subr.bf16.mxu0 %v6236_v9 }
 0x158   : > { %5496 = vmatprep.mubr.msk.bf16.mxu1 %vm6237_vm1, %v6236_v9  ;;  %5528 = vmatprep.mubr.msk.bf16.mxu0 %vm6237_vm1, %v6236_v9 }
 0x15a   : > { %5493 = vmatpush3.bf16.msra.mxu1 %v5972_v26  ;;  %5525 = vmatpush3.bf16.msra.mxu0 %v5973_v27 }
 0x15b   : > { %5494 = vmatprep.subr.bf16.mxu1 %v6236_v9  ;;  %5526 = vmatprep.subr.bf16.mxu0 %v6236_v9 }
 0x15e   : > { %5495 = vmatpush3.bf16.msra.mxu1 %v5974_v28  ;;  %5527 = vmatpush3.bf16.msra.mxu0 %v5975_v29  ;;  %v4868_v29 = vld [vmem:[%s7462_s3 + $0x4] ss:$0 sm:$0xff] }
 0x15f   : > { %5542 = vmatprep.subr.bf16.mxu0 %v6236_v9  ;;  %5510 = vmatprep.subr.bf16.mxu1 %v6236_v9 }
 0x161   : > { %5497 = vmatmul.mubr.msk.bf16.vlgmr.msra.gmra.mrb[4].mxu1 %vm387_vm0, %v6400_v25  ;;  %5529 = vmatmul.mubr.msk.bf16.vlgmr.msra.gmra.mrb[4].mxu0 %vm387_vm0, %v6400_v25 }
 0x162   : > { %5543 = vmatpush3.bf16.msra.mxu0 %v5976_v30  ;;  %5548 = vmatprep.mubr.msk.bf16.mxu0 %vm6237_vm1, %v6236_v9 }
 0x163   : > { %5544 = vmatprep.subr.bf16.mxu0 %v6236_v9  ;;  %5512 = vmatprep.mubr.msk.bf16.mxu1 %vm6237_vm1, %v6236_v9 }
 0x166   : > { %5545 = vmatpush3.bf16.msra.mxu0 %v5977_v31 }
 0x167   : > { %5546 = vmatprep.subr.bf16.mxu0 %v6236_v9 }
 0x16a   : > { %5547 = vmatpush3.bf16.msra.mxu0 %v5978_v32 }
 0x16b   : > { %5558 = vmatprep.subr.bf16.mxu0 %v6236_v9 }
 0x16d   : > { %5549 = vmatmul.mubr.msk.bf16.vlgmr.msra.gmra.mrb[8].mxu0 %vm387_vm0, %v6400_v25 }
 0x16e   : > { %5560 = vmatprep.mubr.msk.bf16.mxu0 %vm6237_vm1, %v6236_v9 }
 0x228   : > { %v479_v33 = vpop.f32.mrb[0].mxu1  ;;  %v619_v34 = vpop.f32.mrb[0].mxu0 }
 0x229   : > { %v5488_v35 = vpop.f32.mrb[1].mxu1  ;;  %v5508_v36 = vpop.f32.mrb[1].mxu0  ;;  %v620_v54 = vadd.f32 %v4844_v47, %v619_v34  ;;  %v480_v56 = vadd.f32 %v4822_v53, %v479_v33 }
 0x22a   : > { %v482_v37 = vpop.f32.mrb[2].mxu1  ;;  %v622_v38 = vpop.f32.mrb[2].mxu0  ;;  %v4857_v36 = vld [vmem:[%s7462_s3 + $0x3] ss:$0 sm:$0xff] }
 0x22b   : > { %v5489_v39 = vpop.f32.mrb[3].mxu1  ;;  %v5509_v40 = vpop.f32.mrb[3].mxu0  ;;  %v687_v57 = vpack.c.bf16 %v620_v54, %v620_v54  ;;  %v625_v59 = vpack.c.bf16 %v480_v56, %v480_v56 }
 0x22d   : > { %v693_v61 = vsel %vm691_vm3, %v687_v57, 0  ;;  %v5983_v57 = vld [vmem:[%s7461_s2 + $0xa8] sm:$0xff]  }
 0x234   : > { %v549_v42 = vpop.f32.mrb[4].mxu1  ;;  %v6455_v43 = vpop.f32.mrb[4].mxu0 }
 0x235   : > { %v550_v44 = vadd.f32 %v4833_v41, %v549_v42  ;;  %v5498_v45 = vpop.f32.mrb[5].mxu1  ;;  %v5530_v46 = vpop.f32.mrb[5].mxu0  ;;  %v803_v38 = vadd.f32 %v4857_v36, %v6455_v43 }
 0x236   : > { %v552_v48 = vpop.f32.mrb[6].mxu1  ;;  %v805_v49 = vpop.f32.mrb[6].mxu0 }
 0x237   : > { %v626_v50 = vpack.c.bf16 %v550_v44, %v550_v44  ;;  %v5499_v51 = vpop.f32.mrb[7].mxu1  ;;  %v5531_v52 = vpop.f32.mrb[7].mxu0  ;;  %v948_v39 = vpack.c.bf16 %v803_v38, %v803_v38 }
 0x238   : > { %v5986_v51 = vld [vmem:[%s7463_s4 + $0x8] sm:$0xff]  }
 0x239   : > { %v632_v55 = vsel %vm627_vm2, %v626_v50, 0 }
 0x23a   : > { %5511 = vmatpush3.bf16.xpose.msra.mxu1 %v632_v55  ;;  %v5982_v55 = vld [vmem:[%s7463_s4] sm:$0xff]  }
 0x23b   : > { %5516 = vmatprep.subr.bf16.mxu1 %v6236_v9 }
 0x240   : > { %v942_v60 = vpop.f32.mrb[8].mxu0 }
 0x241   : > { %v943_v62 = vadd.f32 %v4879_v58, %v942_v60  ;;  %5513 = vmatmul.mubr.msk.bf16.vlgmr.msra.gmra.mrb[8].mxu1 %vm627_vm2, %v625_v59  ;;  %v5550_v63 = vpop.f32.mrb[9].mxu0  ;;  %v5984_v59 = vld [vmem:[%s7461_s2 + $0xb0] sm:$0xff]   ;;  %v5985_v60 = vld [vmem:[%s7461_s2 + $0xb8] sm:$0xff]  }
 0x242   : > { %5517 = vmatpush3.bf16.msra.mxu1 %v693_v61  ;;  %v945_v0 = vpop.f32.mrb[10].mxu0  ;;  %5518 = vmatprep.mubr.msk.bf16.mxu1 %vm6237_vm1, %v6236_v9 }
 0x243   : > { %v1008_v1 = vpack.c.bf16 %v943_v62, %v943_v62  ;;  %v5551_v2 = vpop.f32.mrb[11].mxu0  ;;  %5532 = vmatprep.subr.bf16.mxu1 %v6236_v9  ;;  %v5987_v62 = vld [vmem:[%s7461_s2 + $0x90] sm:$0xff]  }
 0x245   : > { %v1013_v3 = vsel %vm691_vm3, %v1008_v1, 0 }
 0x246   : > { %5559 = vmatpush3.bf16.msra.mxu0 %v1013_v3  ;;  %v5988_v3 = vld [vmem:[%s7461_s2 + $0x98] sm:$0xff]  }
 0x247   : > { %5570 = vmatprep.subr.bf16.mxu0 %v6236_v9 }
 0x314   : > { %v668_v5 = vpop.f32.mrb[8].mxu1 }
 0x315   : > { %v669_v6 = vadd.f32 %v668_v5, %v6478_v4  ;;  %v5514_v7 = vpop.f32.mrb[9].mxu1 }
 0x316   : > { %v671_v8 = vpop.f32.mrb[10].mxu1 }
 0x317   : > { %v5515_v10 = vpop.f32.mrb[11].mxu1  ;;  %v675_v11 = vsel %vm674_vm4, %v669_v6, -inf }
 0x318   : > { %676 = vmax.xlane.f32.xlu1 %v675_v11  ;;  %v5990_v11 = vld [vmem:[%s7461_s2 + $0xc0] sm:$0xff]  }
 0x3a5   : > { %v677_v12 = vpop.xlane.xlu1 %676 }
 0x3a6   : > { %v678_v13 = vsub.f32 %v669_v6, %v677_v12  ;;  %v5989_v6 = vld [vmem:[%s7461_s2 + $0xa0] sm:$0xff]   ;;  %v5991_v12 = vld [vmem:[%s7461_s2 + $0xc8] sm:$0xff]  }
 0x3a8   : > { %v679_v14 = vmul.f32 1.442695, %v678_v13  ;;  %v4909_v13 = vld [vmem:[%s7462_s3 + $0x7] ss:$0 sm:$0xff] }
 0x3aa   : > { %6122 = vpow2.f32 %v679_v14 }
 0x3b4   : > { %v6123_v15 = vpop.eup %6122 }
 0x3b5   : > { %v681_v16 = vsel %vm674_vm4, %v6123_v15, 0.0 }
 0x3b6   : > { %682 = vadd.xlane.f32.xlu1 %v681_v16 }
 0x443   : > { %v683_v17 = vpop.xlane.xlu1 %682 }
 0x444   : > { %6124 = vrcp.f32 %v683_v17 }
 0x44e   : > { %v6125_v18 = vpop.eup %6124 }
 0x44f   : > { %v685_v19 = vmul.f32 %v6125_v18, %v6123_v15  ;;  %v5992_v15 = vld [vmem:[%s7461_s2 + $0xd0] sm:$0xff]  }
 0x451   : > { %v686_v21 = vpack.c.bf16 %v685_v19, %v685_v19 }
 0x453   : > { %5519 = vmatmul.mubr.msk.bf16.vlgmr.msra.gmra.mrb[12].mxu1 %vm674_vm4, %v686_v21 }
 0x454   : > { %5533 = vmatpush3.bf16.msra.mxu1 %v5979_v20  ;;  %5538 = vmatprep.mubr.msk.bf16.mxu1 %vm6237_vm1, %v6236_v9 }
 0x455   : > { %5534 = vmatprep.subr.bf16.mxu1 %v6236_v9 }
 0x458   : > { %5535 = vmatpush3.bf16.msra.mxu1 %v5980_v22 }
 0x459   : > { %5536 = vmatprep.subr.bf16.mxu1 %v6236_v9 }
 0x45c   : > { %5537 = vmatpush3.bf16.msra.mxu1 %v5981_v23 }
 0x45d   : > { %5552 = vmatprep.subr.bf16.mxu1 %v6236_v9 }
 0x45f   : > { %5539 = vmatmul.mubr.msk.bf16.vlgmr.msra.gmra.mrb[16].mxu1 %vm387_vm0, %v6400_v25 }
 0x460   : > { %5554 = vmatprep.mubr.msk.bf16.mxu1 %vm6237_vm1, %v6236_v9 }
 0x526   : > { %v729_v24 = vpop.f32.mrb[12].mxu1 }
 0x527   : > { %v5520_v26 = vpop.f32.mrb[13].mxu1  ;;  %v735_v58 = vpack.c.bf16 %v729_v24, %v729_v24 }
 0x528   : > { %v732_v27 = vpop.f32.mrb[14].mxu1 }
 0x529   : > { %v5521_v28 = vpop.f32.mrb[15].mxu1 }
 0x52a   : > { %v4898_v28 = vld [vmem:[%s7462_s3 + $0x6] ss:$0 sm:$0xff] }
 0x532   : > { %v872_v30 = vpop.f32.mrb[16].mxu1 }
 0x533   : > { %v873_v31 = vadd.f32 %v4868_v29, %v872_v30  ;;  %v5540_v32 = vpop.f32.mrb[17].mxu1 }
 0x534   : > { %v875_v33 = vpop.f32.mrb[18].mxu1 }
 0x535   : > { %v949_v34 = vpack.c.bf16 %v873_v31, %v873_v31  ;;  %v5541_v35 = vpop.f32.mrb[19].mxu1 }
 0x537   : > { %v954_v37 = vsel %vm627_vm2, %v949_v34, 0  ;;  %v4920_v34 = vld [vmem:[%s7462_s3 + $0x8] ss:$0 sm:$0xff] }
 0x538   : > { %5553 = vmatpush3.bf16.xpose.msra.mxu1 %v954_v37 }
 0x539   : > { %5564 = vmatprep.subr.bf16.mxu1 %v6236_v9 }
 0x53f   : > { %5555 = vmatmul.mubr.msk.bf16.vlgmr.msra.gmra.mrb[20].mxu1 %vm627_vm2, %v948_v39 }
 0x540   : > { %5566 = vmatprep.mubr.msk.bf16.mxu1 %vm6237_vm1, %v6236_v9  ;;  %5565 = vmatpush3.bf16.msra.mxu1 %v5986_v51 }
 0x541   : > { %5576 = vmatprep.subr.bf16.mxu1 %v6236_v9 }
 0x612   : > { %v990_v40 = vpop.f32.mrb[20].mxu1 }
 0x613   : > { %v991_v41 = vadd.f32 %v990_v40, %v6478_v4  ;;  %v5556_v42 = vpop.f32.mrb[21].mxu1 }
 0x614   : > { %v993_v44 = vpop.f32.mrb[22].mxu1 }
 0x615   : > { %v5557_v45 = vpop.f32.mrb[23].mxu1  ;;  %v996_v46 = vsel %vm674_vm4, %v991_v41, -inf }
 0x616   : > { %997 = vmax.xlane.f32.xlu0 %v996_v46 }
 0x6a3   : > { %v998_v47 = vpop.xlane.xlu0 %997 }
 0x6a4   : > { %v999_v48 = vsub.f32 %v991_v41, %v998_v47 }
 0x6a6   : > { %v1000_v43 = vmul.f32 1.442695, %v999_v48 }
 0x6a8   : > { %6126 = vpow2.f32 %v1000_v43 }
 0x6b2   : > { %v6127_v49 = vpop.eup %6126 }
 0x6b3   : > { %v1002_v50 = vsel %vm674_vm4, %v6127_v49, 0.0 }
 0x6b4   : > { %1003 = vadd.xlane.f32.xlu1 %v1002_v50 }
 0x741   : > { %v1004_v52 = vpop.xlane.xlu1 %1003 }
 0x742   : > { %6128 = vrcp.f32 %v1004_v52 }
 0x74c   : > { %v6129_v53 = vpop.eup %6128 }
 0x74d   : > { %v1006_v54 = vmul.f32 %v6129_v53, %v6127_v49  ;;  %v5993_v53 = vld [vmem:[%s7463_s4 + $0x10] sm:$0xff]  }
 0x74f   : > { %v1007_v56 = vpack.c.bf16 %v1006_v54, %v1006_v54 }
 0x751   : > { %5561 = vmatmul.mubr.msk.bf16.vlgmr.msra.gmra.mrb[12].mxu0 %vm674_vm4, %v1007_v56 }
 0x752   : > { %5571 = vmatpush3.bf16.msra.mxu0 %v5982_v55  ;;  %5572 = vmatprep.mubr.msk.bf16.mxu0 %vm6237_vm1, %v6236_v9 }
 0x753   : > { %5586 = vmatprep.subr.bf16.mxu0 %v6236_v9 }
 0x759   : > { %5573 = vmatmul.mubr.msk.bf16.vlgmr.msra.gmra.mrb[16].mxu0 %vm627_vm2, %v735_v58 }
 0x75a   : > { %5587 = vmatpush3.bf16.msra.mxu0 %v5983_v57  ;;  %5592 = vmatprep.mubr.msk.bf16.mxu0 %vm6237_vm1, %v6236_v9 }
 0x75b   : > { %5588 = vmatprep.subr.bf16.mxu0 %v6236_v9 }
 0x75e   : > { %5589 = vmatpush3.bf16.msra.mxu0 %v5984_v59 }
 0x75f   : > { %5590 = vmatprep.subr.bf16.mxu0 %v6236_v9 }
 0x762   : > { %5591 = vmatpush3.bf16.msra.mxu0 %v5985_v60 }
 0x763   : > { %5606 = vmatprep.subr.bf16.mxu0 %v6236_v9 }
 0x765   : > { %5593 = vmatmul.mubr.msk.bf16.vlgmr.msra.gmra.mrb[20].mxu0 %vm387_vm0, %v6400_v25 }
 0x766   : > { %5608 = vmatprep.mubr.msk.bf16.mxu0 %vm6237_vm1, %v6236_v9 }
 0x824   : > { %v1049_v61 = vpop.f32.mrb[12].mxu0 }
 0x825   : > { %v1055_v63 = vpack.c.bf16 %v1049_v61, %v1049_v61  ;;  %v5562_v0 = vpop.f32.mrb[13].mxu0 }
 0x826   : > { %v1052_v1 = vpop.f32.mrb[14].mxu0 }
 0x827   : > { %v5563_v2 = vpop.f32.mrb[15].mxu0  ;;  %5567 = vmatmul.mubr.msk.bf16.vlgmr.msra.gmra.mrb[24].mxu1 %vm627_vm2, %v1055_v63 }
 0x828   : > { %5577 = vmatpush3.bf16.msra.mxu1 %v5987_v62  ;;  %5582 = vmatprep.mubr.msk.bf16.mxu1 %vm6237_vm1, %v6236_v9  ;;  %v4931_v2 = vld [vmem:[%s7467_s8 + $0x4] ss:$0 sm:$0xff] }
 0x829   : > { %5578 = vmatprep.subr.bf16.mxu1 %v6236_v9 }
 0x82c   : > { %5579 = vmatpush3.bf16.msra.mxu1 %v5988_v3  ;;  %v1151_v5 = vpop.f32.mrb[16].mxu0 }
 0x82d   : > { %v5574_v7 = vpop.f32.mrb[17].mxu0  ;;  %5580 = vmatprep.subr.bf16.mxu1 %v6236_v9 }
 0x82e   : > { %v1154_v8 = vpop.f32.mrb[18].mxu0 }
 0x82f   : > { %v5575_v10 = vpop.f32.mrb[19].mxu0 }
 0x830   : > { %5581 = vmatpush3.bf16.msra.mxu1 %v5989_v6 }
 0x831   : > { %5596 = vmatprep.subr.bf16.mxu1 %v6236_v9 }
 0x833   : > { %5583 = vmatmul.mubr.msk.bf16.vlgmr.msra.gmra.mrb[28].mxu1 %vm387_vm0, %v6400_v25 }
 0x834   : > { %5597 = vmatpush3.bf16.msra.mxu1 %v5990_v11  ;;  %5602 = vmatprep.mubr.msk.bf16.mxu1 %vm6237_vm1, %v6236_v9 }
 0x835   : > { %5598 = vmatprep.subr.bf16.mxu1 %v6236_v9 }
 0x838   : > { %v1291_v14 = vpop.f32.mrb[20].mxu0  ;;  %5599 = vmatpush3.bf16.msra.mxu1 %v5991_v12 }
 0x839   : > { %v1292_v16 = vadd.f32 %v4909_v13, %v1291_v14  ;;  %v5594_v17 = vpop.f32.mrb[21].mxu0  ;;  %5600 = vmatprep.subr.bf16.mxu1 %v6236_v9 }
 0x83a   : > { %v1294_v18 = vpop.f32.mrb[22].mxu0  ;;  %v5994_v17 = vld [vmem:[%s7464_s5] ss:$8 sps:$4 sm:$0xff]  }
 0x83b   : > { %v1368_v19 = vpack.c.bf16 %v1292_v16, %v1292_v16  ;;  %v5595_v20 = vpop.f32.mrb[23].mxu0  ;;  %v5996_v16 = vld [vmem:[%s7464_s5 + $0x4] ss:$8 sps:$4 sm:$0xff]   ;;  %v5999_v18 = vld [vmem:[%s7464_s5 + $0x14] ss:$8 sps:$4 sm:$0xff]  }
 0x83c   : > { %5601 = vmatpush3.bf16.msra.mxu1 %v5992_v15  ;;  %v6002_v20 = vld [vmem:[%s7464_s5 + $0x24] ss:$8 sps:$4 sm:$0xff]  }
 0x83d   : > { %v1373_v21 = vsel %vm627_vm2, %v1368_v19, 0  ;;  %5612 = vmatprep.subr.bf16.mxu1 %v6236_v9  ;;  %v5997_v19 = vld [vmem:[%s7464_s5 + $0x10] ss:$8 sps:$4 sm:$0xff]  }
 0x83e   : > { %5607 = vmatpush3.bf16.xpose.msra.mxu0 %v1373_v21  ;;  %v6000_v21 = vld [vmem:[%s7464_s5 + $0x20] ss:$8 sps:$4 sm:$0xff]  }
 0x83f   : > { %5603 = vmatmul.mubr.msk.bf16.vlgmr.msra.gmra.mrb[32].mxu1 %vm387_vm0, %v6400_v25  ;;  %5618 = vmatprep.subr.bf16.mxu0 %v6236_v9 }
 0x840   : > { %5614 = vmatprep.mubr.msk.bf16.mxu1 %vm6237_vm1, %v6236_v9 }
 0x8fa   : > { %v1102_v22 = vpop.f32.mrb[24].mxu1 }
 0x8fb   : > { %v1152_v23 = vadd.f32 %v1151_v5, %v1102_v22  ;;  %v5568_v24 = vpop.f32.mrb[25].mxu1  ;;  %v6170_v5 = vld [vmem:[%s6353_s14] sm:$0xff]  ;;  %v6238_v22 = vmov 0   ;;  %s375_s14 = sand.u32 1, %s6226_s18  }
 0x8fc   : > { %v1105_v26 = vpop.f32.mrb[26].mxu1  ;;  %v6004_v24 = vld [vmem:[%s7466_s7 + $0x8] sm:$0xff]   ;;  %s4818_s12 = sshll.u32 %s375_s14, 3  ;;  %s4742_s13 = scalar_lea.sflag [#allocation3], %s375_s14 }
 0x8fd   : > { %v5569_v27 = vpop.f32.mrb[27].mxu1  ;;  %v6005_v26 = vld [vmem:[%s7466_s7 + $0x10] sm:$0xff]   ;;  %s377_s22 = scalar_lea.vmem [#allocation2], %s4818_s12  ;;  %s6239_s12 = smov [#allocation2]  }
 0x8fe   : > { %v6006_v27 = vld [vmem:[%s7466_s7 + $0x18] sm:$0xff]   ;;  %s4755_s24 = sshll.u32 %s377_s22, 4  ;;  %s6176_s15 = sshll.u32 %s6239_s12, 4  ;;  %s7419_s24 = int_to_ptr.vmem [resolvable:$true] %s4755_s24  ;;  %s6177_s15 = int_to_ptr.vmem [resolvable:$false] %s6176_s15 }
 0x8ff   : > { %s6172_s21 = scalar_lea.vmem %s7419_s24, 128  ;;  %s6178_s25 = scalar_lea.vmem %s6177_s15, 256 }
 0x900   : > { %p6173_p11 = scmp.ne.s32.totalorder %s7419_s24, %s6172_s21  ;;  %p6179_p0 = scmp.lt.s32.totalorder %s7419_s24, %s6177_s15 }
 0x901   : > { %p6180_p1 = scmp.lt.s32.totalorder %s6178_s25, %s6172_s21 }
 0x902   : > { %p6174_p12 = pnand %p6173_p11, %p6338_p5 }
 0x903   : > { %p6181_p2 = por %p6180_p1, %p6179_p0 }
 0x904   : > { %p6175_p13 = pneg %p6174_p12 }
 0x906   : > { %v1221_v29 = vpop.f32.mrb[28].mxu1  ;;  %p6182_p3 = pnand %p6181_p2, %p6175_p13 }
 0x907   : > { %v1222_v30 = vadd.f32 %v4898_v28, %v1221_v29  ;;  %v5584_v31 = vpop.f32.mrb[29].mxu1  ;;  %v6007_v28 = vld [vmem:[%s7466_s7 + $0x20] sm:$0xff]   ;;  %v6008_v29 = vld [vmem:[%s7466_s7 + $0x28] sm:$0xff]  }
 0x908   : > { %v1224_v32 = vpop.f32.mrb[30].mxu1  ;;  %v6010_v31 = vld [vmem:[%s7466_s7 + $0x38] sm:$0xff]  }
 0x909   : > { %v1367_v33 = vpack.c.bf16 %v1222_v30, %v1222_v30  ;;  %v5585_v25 = vpop.f32.mrb[31].mxu1  ;;  %v6009_v30 = vld [vmem:[%s7466_s7 + $0x30] sm:$0xff]   ;;  %v6011_v32 = vld [vmem:[%s7466_s7 + $0x40] sm:$0xff]  }
 0x90b   : > { %5609 = vmatmul.mubr.msk.bf16.vlgmr.msra.gmra.mrb[24].mxu0 %vm627_vm2, %v1367_v33  ;;  %v6012_v33 = vld [vmem:[%s7466_s7 + $0x48] sm:$0xff]  }
 0x90c   : > { %5620 = vmatprep.mubr.msk.bf16.mxu0 %vm6237_vm1, %v6236_v9  ;;  %5619 = vmatpush3.bf16.msra.mxu0 %v5993_v53 }
 0x90d   : > { %1757 = vmatprep.subr.bf16.mxu0 %v6238_v22 }
 0x912   : > { %v1361_v35 = vpop.f32.mrb[32].mxu1 }
 0x913   : > { %v1362_v36 = vadd.f32 %v4920_v34, %v1361_v35  ;;  %v5604_v37 = vpop.f32.mrb[33].mxu1 }
 0x914   : > { %v1364_v38 = vpop.f32.mrb[34].mxu1  ;;  %v4932_v37 = vld [vmem:[%s7467_s8 + $0x2] ss:$0 sm:$0xff] }
 0x915   : > { %v1427_v39 = vpack.c.bf16 %v1362_v36, %v1362_v36  ;;  %v5605_v40 = vpop.f32.mrb[35].mxu1 }
 0x917   : > { %v1432_v41 = vsel %vm691_vm3, %v1427_v39, 0  ;;  %v4933_v39 = vld [vmem:[%s7467_s8 + $0x3] ss:$0 sm:$0xff] }
 0x918   : > { %5613 = vmatpush3.bf16.msra.mxu1 %v1432_v41 }
 0x919   : > { %1612 = vmatprep.subr.bf16.mxu1 %v5996_v16 }
 0x9de   : > { %v1409_v42 = vpop.f32.mrb[24].mxu0 }
 0x9df   : > { %v1410_v44 = vadd.f32 %v1409_v42, %v6478_v4  ;;  %v5610_v45 = vpop.f32.mrb[25].mxu0 }
 0x9e0   : > { %v1412_v46 = vpop.f32.mrb[26].mxu0  ;;  %v6014_v45 = vld [vmem:[%s7466_s7 + $0x58] sm:$0xff]  }
 0x9e1   : > { %v5611_v47 = vpop.f32.mrb[27].mxu0  ;;  %v1415_v48 = vsel %vm674_vm4, %v1410_v44, -inf  ;;  %v1569_v46 = vlaneseq }
 0x9e2   : > { %1416 = vmax.xlane.f32.xlu0 %v1415_v48 }
 0x9e3   : > { %v1570_v47 = vshrl.u32 %v1569_v46, 7 }
 0x9e5   : > { %v6693_v48 = vsub.s32 0, %v1570_v47 }
 0xa6f   : > { %v1417_v43 = vpop.xlane.xlu0 %1416 }
 0xa70   : > { %v1418_v49 = vsub.f32 %v1410_v44, %v1417_v43  ;;  %v6013_v44 = vld [vmem:[%s7466_s7 + $0x50] sm:$0xff]   ;;  %v1567_v43 = vld [vmem:[%s7465_s6] ss:$4 sm:$0x3] }
 0xa72   : > { %v1419_v50 = vmul.f32 1.442695, %v1418_v49  ;;  %v6698_v49 = vsub.s32 1, %v1570_v47 }
 0xa74   : > { %6130 = vpow2.f32 %v1419_v50  ;;  %v1572_v50 = vrot.slane %v1567_v43, %v6693_v48 }
 0xa7e   : > { %v6131_v51 = vpop.eup %6130 }
 0xa7f   : > { %v1421_v52 = vsel %vm674_vm4, %v6131_v51, 0.0 }
 0xa80   : > { %1422 = vadd.xlane.f32.xlu1 %v1421_v52 }
 0xb0d   : > { %v1423_v54 = vpop.xlane.xlu1 %1422 }
 0xb0e   : > { %6132 = vrcp.f32 %v1423_v54 }
 0xb18   : > { %v6133_v55 = vpop.eup %6132 }
 0xb19   : > { %v1425_v56 = vmul.f32 %v6133_v55, %v6131_v51  ;;  %v1576_v51 = vrot.slane %v1567_v43, %v6698_v49  ;;  %v4985_v43 = vld [vmem:[%s7462_s3 + $0xb] ss:$0 sm:$0xff] }
 0xb1b   : > { %v1426_v57 = vpack.c.bf16 %v1425_v56, %v1425_v56 }
 0xb1d   : > { %5615 = vmatmul.mubr.msk.bf16.vlgmr.msra.gmra.mrb[36].mxu1 %vm674_vm4, %v1426_v57 }
 0xb1e   : > { %1613 = vmatpush1.bf16.msra.mxu1 %v5994_v17  ;;  %1644 = vmatprep.mubr.bf16.mxu1 %v6238_v22 }
 0xb1f   : > { %1614 = vmatprep.subr.bf16.mxu1 %v5999_v18 }
 0xb22   : > { %1615 = vmatpush1.bf16.msra.mxu1 %v5997_v19 }
 0xb23   : > { %1616 = vmatprep.subr.bf16.mxu1 %v6002_v20  ;;  %v4955_v20 = vld [vmem:[%s7467_s8 + $0x6] ss:$0 sm:$0xff] }
 0xb26   : > { %1617 = vmatpush1.bf16.msra.mxu1 %v6000_v21 }
 0xb27   : > { %5624 = vmatprep.subr.bf16.mxu1 %v6236_v9 }
 0xbf0   : > { %v1468_v58 = vpop.f32.mrb[36].mxu1 }
 0xbf1   : > { %v1474_v59 = vpack.c.bf16 %v1468_v58, %v1468_v58  ;;  %v5616_v60 = vpop.f32.mrb[37].mxu1 }
 0xbf2   : > { %v1471_v61 = vpop.f32.mrb[38].mxu1 }
 0xbf3   : > { %v5617_v62 = vpop.f32.mrb[39].mxu1  ;;  %5621 = vmatmul.mubr.msk.bf16.vlgmr.msra.gmra.mrb[28].mxu0 %vm627_vm2, %v1474_v59 }
 0xcc6   : > { %v1521_v63 = vpop.f32.mrb[28].mxu0 }
 0xcc7   : > { %v1527_v0 = vadd.f32 %v1521_v63, %v1152_v23  ;;  %v5622_v1 = vpop.f32.mrb[29].mxu0  ;;  %v6003_v23 = vld [vmem:[%s7466_s7] sm:$0xff]  }
 0xcc8   : > { %v1524_v3 = vpop.f32.mrb[30].mxu0  ;;  %1758 = vmatpush1.bf16.msra.mxu0 %v6003_v23  ;;  %v4954_v63 = vld [vmem:[%s7467_s8 + $0x5] ss:$0 sm:$0xff]  ;;  %v4956_v23 = vld [vmem:[%s7467_s8 + $0x7] ss:$0 sm:$0xff] }
 0xcc9   : > { %v1528_v6 = vadd.f32 %v6170_v5, %v1527_v0  ;;  %v5623_v7 = vpop.f32.mrb[31].mxu0  ;;  %1759 = vmatprep.subr.bf16.mxu0 %v6238_v22 }
 0xccb   : > { %v6609_v8 = vadd.f32 %v4931_v2, %v1528_v6 }
 0xccc   : > { %1760 = vmatpush1.bf16.msra.mxu0 %v6004_v24 }
 0xccd   : > { %v1537_v10 = vsel %vm387_vm0, %v6609_v8, 0.0  ;;  %1761 = vmatprep.subr.bf16.mxu0 %v6238_v22 }
 0xcce   : > { %1538 = vadd.xlane.f32.xlu0 %v1537_v10 }
 0xcd0   : > { %1762 = vmatpush1.bf16.msra.mxu0 %v6005_v26 }
 0xcd1   : > { %1763 = vmatprep.subr.bf16.mxu0 %v6238_v22 }
 0xcd4   : > { %1764 = vmatpush1.bf16.msra.mxu0 %v6006_v27  ;;  %v6018_v27 = vld [vmem:[%s7461_s2 + $0xf0] sm:$0xff]  }
 0xcd5   : > { %1765 = vmatprep.subr.bf16.mxu0 %v6238_v22 }
 0xcd8   : > { %1766 = vmatpush1.bf16.msra.mxu0 %v6007_v28 }
 0xcd9   : > { %1767 = vmatprep.subr.bf16.mxu0 %v6238_v22 }
 0xcdc   : > { %1768 = vmatpush1.bf16.msra.mxu0 %v6008_v29  ;;  %v6019_v29 = vld [vmem:[%s7461_s2 + $0xf8] sm:$0xff]  }
 0xcdd   : > { %1769 = vmatprep.subr.bf16.mxu0 %v6238_v22 }
 0xce0   : > { %1770 = vmatpush1.bf16.msra.mxu0 %v6009_v30  ;;  %v6020_v30 = vld [vmem:[%s7461_s2 + $0x100] sm:$0xff]  }
 0xce1   : > { %1771 = vmatprep.subr.bf16.mxu0 %v6238_v22 }
 0xce4   : > { %1772 = vmatpush1.bf16.msra.mxu0 %v6010_v31  ;;  %v6021_v31 = vld [vmem:[%s7461_s2 + $0x108] sm:$0xff]  }
 0xce5   : > { %1773 = vmatprep.subr.bf16.mxu0 %v6238_v22 }
 0xce8   : > { %1774 = vmatpush1.bf16.msra.mxu0 %v6011_v32  ;;  %v6022_v32 = vld [vmem:[%s7461_s2 + $0x110] sm:$0xff]  }
 0xce9   : > { %1775 = vmatprep.subr.bf16.mxu0 %v6238_v22 }
 0xcec   : > { %1776 = vmatpush1.bf16.msra.mxu0 %v6012_v33  ;;  %v6023_v33 = vld [vmem:[%s7461_s2 + $0x118] sm:$0xff]  }
 0xced   : > { %1777 = vmatprep.subr.bf16.mxu0 %v6238_v22 }
 0xcf0   : > { %1778 = vmatpush1.bf16.msra.mxu0 %v6013_v44 }
 0xcf1   : > { %1779 = vmatprep.subr.bf16.mxu0 %v6238_v22 }
 0xcf4   : > { %1780 = vmatpush1.bf16.msra.mxu0 %v6014_v45  ;;  %v4963_v45 = vld [vmem:[%s7462_s3 + $0x9] ss:$0 sm:$0xff] }
 0xcf5   : > { %5660 = vmatprep.subr.bf16.mxu0 %v6236_v9 }
 0xd5b   : > { %v1539_v11 = vpop.xlane.xlu0 %1538 }
 0xd5c   : > { %v1540_v12 = vmul.f32 0.020833334, %v1539_v11 }
 0xd5e   : > { %v1541_v13 = vsub.f32 %v6609_v8, %v1540_v12 }
 0xd60   : > { %v1542_v14 = vmul.f32 %v1541_v13, %v1541_v13 }
 0xd62   : > { %v1543_v15 = vsel %vm387_vm0, %v1542_v14, 0.0  ;;  %v6016_v14 = vld [vmem:[%s7461_s2 + $0xe0] sm:$0xff]  }
 0xd63   : > { %1544 = vadd.xlane.f32.xlu1 %v1543_v15  ;;  %v6017_v15 = vld [vmem:[%s7461_s2 + $0xe8] sm:$0xff]  }
 0xdf0   : > { %v1545_v25 = vpop.xlane.xlu1 %1544 }
 0xdf1   : > { %v1546_v34 = vmul.f32 0.020833334, %v1545_v25 }
 0xdf3   : > { %v1547_v35 = vadd.f32 1e-05, %v1546_v34 }
 0xdf5   : > { %6134 = vrsqrt.f32 %v1547_v35 }
 0xdff   : > { %v6135_v36 = vpop.eup %6134 }
 0xe00   : > { %v1549_v38 = vmul.f32 %v6135_v36, %v1541_v13 }
 0xe02   : > { %v1554_v40 = vmul.f32 %v4932_v37, %v1549_v38  ;;  %v4974_v37 = vld [vmem:[%s7462_s3 + $0xa] ss:$0 sm:$0xff] }
 0xe04   : > { %v1559_v41 = vadd.f32 %v4933_v39, %v1554_v40 }
 0xe06   : > { %v1560_v42 = vpack.c.bf16 %v1559_v41, %v1559_v41 }
 0xe08   : > { %4940 = vmatmul.mubr.msk.bf16.vlgmr.msra.gmra.mrb[40].mxu1 %vm387_vm0, %v1560_v42 }
 0xe09   : > { %5630 = vmatprep.mubr.msk.bf16.mxu1 %vm6237_vm1, %v6236_v9 }
 0xedb   : > { %v1646_v52 = vpop.f32.mrb[40].mxu1 }
 0xedc   : > { %v1647_v53 = vadd.f32 %v1646_v52, %v1572_v50  ;;  %v1648_v54 = vpop.f32.mrb[41].mxu1  ;;  %v6024_v50 = vld [vmem:[%s7461_s2 + $0x120] sm:$0xff]  }
 0xedd   : > { %v1649_v55 = vadd.f32 %v1648_v54, %v1576_v51  ;;  %v1650_v56 = vpop.f32.mrb[42].mxu1 }
 0xede   : > { %v1653_v57 = vmax.f32 %v1647_v53, 0.0  ;;  %v1651_v58 = vpop.f32.mrb[43].mxu1  ;;  %v6025_v56 = vld [vmem:[%s7461_s2 + $0x128] sm:$0xff]  }
 0xedf   : > { %v1654_v59 = vmax.f32 %v1649_v55, 0.0 }
 0xee0   : > { %v1655_v61 = vpack.c.bf16 %v1653_v57, %v1653_v57 }
 0xee1   : > { %v1656_v60 = vpack.c.bf16 %v1654_v59, %v1654_v59 }
 0xee3   : > { %4953 = vmatprep.mubr.msk.bf16.mxu0 %vm1753_vm5, %v1656_v60  ;;  %v6026_v60 = vld [vmem:[%s7461_s2 + $0x130] sm:$0xff]  }
 0xee4   : > { %1790 = vmatmul.mubr.bf16.vlgmr.msra.gmra.mrb[32].mxu0 %v1655_v61  ;;  %v6027_v61 = vld [vmem:[%s7461_s2 + $0x150] sm:$0xff]  }
 0xee5   : > { %5662 = vmatprep.mubr.msk.bf16.mxu0 %vm6237_vm1, %v6236_v9 }
 0xfb7   : > { %v1791_v62 = vpop.f32.mrb[32].mxu0 }
 0xfb8   : > { %v1797_v0 = vadd.f32 %v1791_v62, %v6609_v8  ;;  %v1793_v1 = vpop.f32.mrb[33].mxu0  ;;  %v6015_v8 = vld [vmem:[%s7461_s2 + $0xd8] sm:$0xff]  }
 0xfb9   : > { %v1794_v2 = vpop.f32.mrb[34].mxu0  ;;  %5625 = vmatpush3.bf16.msra.mxu1 %v6015_v8  ;;  %v6028_v62 = vld [vmem:[%s7461_s2 + $0x158] sm:$0xff]  }
 0xfba   : > { %v6709_v3 = vadd.f32 %v4954_v63, %v1797_v0  ;;  %v1795_v5 = vpop.f32.mrb[35].mxu0  ;;  %5626 = vmatprep.subr.bf16.mxu1 %v6236_v9  ;;  %v6029_v63 = vld [vmem:[%s7461_s2 + $0x160] sm:$0xff]  }
 0xfbc   : > { %v1806_v6 = vsel %vm387_vm0, %v6709_v3, 0.0 }
 0xfbd   : > { %1807 = vadd.xlane.f32.xlu0 %v1806_v6  ;;  %5627 = vmatpush3.bf16.msra.mxu1 %v6016_v14 }
 0xfbe   : > { %5628 = vmatprep.subr.bf16.mxu1 %v6236_v9 }
 0xfc1   : > { %5629 = vmatpush3.bf16.msra.mxu1 %v6017_v15 }
 0xfc2   : > { %5634 = vmatprep.subr.bf16.mxu1 %v6236_v9 }
0x104a   : > { %v1808_v7 = vpop.xlane.xlu0 %1807 }
0x104b   : > { %v1809_v10 = vmul.f32 0.020833334, %v1808_v7 }
0x104d   : > { %v1810_v11 = vsub.f32 %v6709_v3, %v1809_v10 }
0x104f   : > { %v1811_v12 = vmul.f32 %v1810_v11, %v1810_v11 }
0x1051   : > { %v1812_v13 = vsel %vm387_vm0, %v1811_v12, 0.0 }
0x1052   : > { %1813 = vadd.xlane.f32.xlu1 %v1812_v13 }
0x10df   : > { %v1814_v16 = vpop.xlane.xlu1 %1813 }
0x10e0   : > { %v1815_v17 = vmul.f32 0.020833334, %v1814_v16 }
0x10e2   : > { %v1816_v18 = vadd.f32 1e-05, %v1815_v17 }
0x10e4   : > { %6136 = vrsqrt.f32 %v1816_v18 }
0x10ee   : > { %v6137_v19 = vpop.eup %6136 }
0x10ef   : > { %v1818_v21 = vmul.f32 %v6137_v19, %v1810_v11 }
0x10f1   : > { %v1823_v24 = vmul.f32 %v4955_v20, %v1818_v21 }
0x10f3   : > { %v1828_v26 = vadd.f32 %v4956_v23, %v1823_v24 }
0x10f5   : > { %v6736_v28 = vpack.c.bf16 %v1828_v26, %v1828_v26 }
0x10f7   : > { %5631 = vmatmul.mubr.msk.bf16.vlgmr.msra.gmra.mrb[44].mxu1 %vm387_vm0, %v6736_v28 }
0x10f8   : > { %5635 = vmatpush3.bf16.msra.mxu1 %v6018_v27  ;;  %5640 = vmatprep.mubr.msk.bf16.mxu1 %vm6237_vm1, %v6236_v9  ;;  %v6030_v27 = vld [vmem:[%s7461_s2 + $0x138] sm:$0xff]  }
0x10f9   : > { %5636 = vmatprep.subr.bf16.mxu1 %v6236_v9 }
0x10fc   : > { %5637 = vmatpush3.bf16.msra.mxu1 %v6019_v29 }
0x10fd   : > { %5638 = vmatprep.subr.bf16.mxu1 %v6236_v9 }
0x1100   : > { %5639 = vmatpush3.bf16.msra.mxu1 %v6020_v30  ;;  %v6031_v30 = vld [vmem:[%s7461_s2 + $0x140] sm:$0xff]  }
0x1101   : > { %5644 = vmatprep.subr.bf16.mxu1 %v6236_v9 }
0x1103   : > { %5641 = vmatmul.mubr.msk.bf16.vlgmr.msra.gmra.mrb[48].mxu1 %vm387_vm0, %v6736_v28 }
0x1104   : > { %5645 = vmatpush3.bf16.msra.mxu1 %v6021_v31  ;;  %5650 = vmatprep.mubr.msk.bf16.mxu1 %vm6237_vm1, %v6236_v9  ;;  %v6032_v31 = vld [vmem:[%s7461_s2 + $0x148] sm:$0xff]  }
0x1105   : > { %5646 = vmatprep.subr.bf16.mxu1 %v6236_v9 }
0x1108   : > { %5647 = vmatpush3.bf16.msra.mxu1 %v6022_v32 }
0x1109   : > { %5648 = vmatprep.subr.bf16.mxu1 %v6236_v9 }
0x110c   : > { %5649 = vmatpush3.bf16.msra.mxu1 %v6023_v33 }
0x110d   : > { %5654 = vmatprep.subr.bf16.mxu1 %v6236_v9 }
0x110f   : > { %5651 = vmatmul.mubr.msk.bf16.vlgmr.msra.gmra.mrb[52].mxu1 %vm387_vm0, %v6736_v28 }
0x1110   : > { %5656 = vmatprep.mubr.msk.bf16.mxu1 %vm6237_vm1, %v6236_v9 }
0x11ca   : > { %v1897_v25 = vpop.f32.mrb[44].mxu1 }
0x11cb   : > { %v5632_v34 = vpop.f32.mrb[45].mxu1  ;;  %v1898_v47 = vadd.f32 %v4963_v45, %v1897_v25 }
0x11cc   : > { %v1900_v35 = vpop.f32.mrb[46].mxu1 }
0x11cd   : > { %v5633_v36 = vpop.f32.mrb[47].mxu1  ;;  %v2043_v51 = vpack.c.bf16 %v1898_v47, %v1898_v47  ;;  %v5011_v35 = vld [vmem:[%s7462_s3 + $0xd] ss:$0 sm:$0xff] }
0x11d6   : > { %v1967_v38 = vpop.f32.mrb[48].mxu1 }
0x11d7   : > { %v1968_v39 = vadd.f32 %v4974_v37, %v1967_v38  ;;  %v5642_v40 = vpop.f32.mrb[49].mxu1 }
0x11d8   : > { %v1970_v41 = vpop.f32.mrb[50].mxu1 }
0x11d9   : > { %v2044_v42 = vpack.c.bf16 %v1968_v39, %v1968_v39  ;;  %v5643_v44 = vpop.f32.mrb[51].mxu1  ;;  %v5022_v39 = vld [vmem:[%s7462_s3 + $0xe] ss:$0 sm:$0xff] }
0x11da   : > { %v5000_v44 = vld [vmem:[%s7462_s3 + $0xc] ss:$0 sm:$0xff] }
0x11db   : > { %v2049_v46 = vsel %vm627_vm2, %v2044_v42, 0 }
0x11dc   : > { %5655 = vmatpush3.bf16.xpose.msra.mxu1 %v2049_v46 }
0x11dd   : > { %5666 = vmatprep.subr.bf16.mxu1 %v6236_v9 }
0x11e2   : > { %v2037_v52 = vpop.f32.mrb[52].mxu1 }
0x11e3   : > { %v2038_v53 = vadd.f32 %v4985_v43, %v2037_v52  ;;  %v5652_v54 = vpop.f32.mrb[53].mxu1  ;;  %5657 = vmatmul.mubr.msk.bf16.vlgmr.msra.gmra.mrb[56].mxu1 %vm627_vm2, %v2043_v51 }
0x11e4   : > { %v2040_v55 = vpop.f32.mrb[54].mxu1  ;;  %5667 = vmatpush3.bf16.msra.mxu1 %v6024_v50  ;;  %5672 = vmatprep.mubr.msk.bf16.mxu1 %vm6237_vm1, %v6236_v9 }
0x11e5   : > { %v2103_v57 = vpack.c.bf16 %v2038_v53, %v2038_v53  ;;  %v5653_v58 = vpop.f32.mrb[55].mxu1  ;;  %5668 = vmatprep.subr.bf16.mxu1 %v6236_v9 }
0x11e7   : > { %v2108_v59 = vsel %vm691_vm3, %v2103_v57, 0 }
0x11e8   : > { %5661 = vmatpush3.bf16.msra.mxu0 %v2108_v59  ;;  %5669 = vmatpush3.bf16.msra.mxu1 %v6025_v56 }
0x11e9   : > { %5670 = vmatprep.subr.bf16.mxu1 %v6236_v9  ;;  %5676 = vmatprep.subr.bf16.mxu0 %v6236_v9 }
0x11ec   : > { %5671 = vmatpush3.bf16.msra.mxu1 %v6026_v60 }
0x11ed   : > { %5686 = vmatprep.subr.bf16.mxu1 %v6236_v9 }
0x11ef   : > { %5673 = vmatmul.mubr.msk.bf16.vlgmr.msra.gmra.mrb[60].mxu1 %vm387_vm0, %v6736_v28 }
0x11f0   : > { %5687 = vmatpush3.bf16.msra.mxu1 %v6027_v61  ;;  %5692 = vmatprep.mubr.msk.bf16.mxu1 %vm6237_vm1, %v6236_v9 }
0x11f1   : > { %5688 = vmatprep.subr.bf16.mxu1 %v6236_v9 }
0x11f4   : > { %5689 = vmatpush3.bf16.msra.mxu1 %v6028_v62 }
0x11f5   : > { %5690 = vmatprep.subr.bf16.mxu1 %v6236_v9 }
0x11f8   : > { %5691 = vmatpush3.bf16.msra.mxu1 %v6029_v63  ;;  %v6037_v63 = vld [vmem:[%s7463_s4 + $0x20] sm:$0xff]  }
0x11f9   : > { %5708 = vmatprep.subr.bf16.mxu1 %v6236_v9 }
0x11fb   : > { %5693 = vmatmul.mubr.msk.bf16.vlgmr.msra.gmra.mrb[64].mxu1 %vm387_vm0, %v6736_v28 }
0x11fc   : > { %5710 = vmatprep.mubr.msk.bf16.mxu1 %vm6237_vm1, %v6236_v9  ;;  %5709 = vmatpush3.bf16.msra.mxu1 %v6037_v63 }
0x11fd   : > { %5720 = vmatprep.subr.bf16.mxu1 %v6236_v9 }
0x12b6   : > { %v2085_v0 = vpop.f32.mrb[56].mxu1 }
0x12b7   : > { %v2086_v1 = vadd.f32 %v2085_v0, %v6478_v4  ;;  %v5658_v2 = vpop.f32.mrb[57].mxu1 }
0x12b8   : > { %v2088_v5 = vpop.f32.mrb[58].mxu1  ;;  %v6033_v2 = vld [vmem:[%s7463_s4 + $0x18] sm:$0xff]  }
0x12b9   : > { %v5659_v6 = vpop.f32.mrb[59].mxu1  ;;  %v2091_v7 = vsel %vm674_vm4, %v2086_v1, -inf }
0x12ba   : > { %2092 = vmax.xlane.f32.xlu0 %v2091_v7  ;;  %v6034_v6 = vld [vmem:[%s7461_s2 + $0x180] sm:$0xff]  }
0x12c2   : > { %v2218_v10 = vpop.f32.mrb[60].mxu1 }
0x12c3   : > { %v5674_v11 = vpop.f32.mrb[61].mxu1  ;;  %v2219_v47 = vadd.f32 %v5000_v44, %v2218_v10  ;;  %v6035_v10 = vld [vmem:[%s7461_s2 + $0x188] sm:$0xff]  }
0x12c4   : > { %v2221_v12 = vpop.f32.mrb[62].mxu1  ;;  %v6036_v11 = vld [vmem:[%s7461_s2 + $0x190] sm:$0xff]  }
0x12c5   : > { %v5675_v13 = vpop.f32.mrb[63].mxu1  ;;  %v2364_v50 = vpack.c.bf16 %v2219_v47, %v2219_v47 }
0x12c6   : > { %v6038_v13 = vld [vmem:[%s7461_s2 + $0x168] sm:$0xff]  }
0x12ce   : > { %v2358_v8 = vpop.f32.mrb[64].mxu1 }
0x12cf   : > { %v5694_v14 = vpop.f32.mrb[65].mxu1  ;;  %v2359_v45 = vadd.f32 %v5022_v39, %v2358_v8 }
0x12d0   : > { %v2361_v15 = vpop.f32.mrb[66].mxu1 }
0x12d1   : > { %v5695_v16 = vpop.f32.mrb[67].mxu1  ;;  %v2424_v43 = vpack.c.bf16 %v2359_v45, %v2359_v45 }
0x12d3   : > { %v2429_v51 = vsel %vm691_vm3, %v2424_v43, 0  ;;  %v5063_v43 = vld [vmem:[%s7462_s3 + $0x11] ss:$0 sm:$0xff] }
0x1347   : > { %v2093_v17 = vpop.xlane.xlu0 %2092 }
0x1348   : > { %v2094_v18 = vsub.f32 %v2086_v1, %v2093_v17  ;;  %v6039_v17 = vld [vmem:[%s7461_s2 + $0x170] sm:$0xff]  }
0x134a   : > { %v2095_v19 = vmul.f32 1.442695, %v2094_v18 }
0x134c   : > { %6138 = vpow2.f32 %v2095_v19  ;;  %v6040_v19 = vld [vmem:[%s7461_s2 + $0x178] sm:$0xff]  }
0x1356   : > { %v6139_v20 = vpop.eup %6138 }
0x1357   : > { %v2097_v21 = vsel %vm674_vm4, %v6139_v20, 0.0 }
0x1358   : > { %2098 = vadd.xlane.f32.xlu1 %v2097_v21 }
0x13e5   : > { %v2099_v23 = vpop.xlane.xlu1 %2098 }
0x13e6   : > { %6140 = vrcp.f32 %v2099_v23 }
0x13f0   : > { %v6141_v24 = vpop.eup %6140 }
0x13f1   : > { %v2101_v26 = vmul.f32 %v6141_v24, %v6139_v20  ;;  %v6041_v24 = vld [vmem:[%s7461_s2 + $0x198] sm:$0xff]  }
0x13f3   : > { %v2102_v29 = vpack.c.bf16 %v2101_v26, %v2101_v26  ;;  %v6042_v26 = vld [vmem:[%s7461_s2 + $0x1a0] sm:$0xff]  }
0x13f5   : > { %5663 = vmatmul.mubr.msk.bf16.vlgmr.msra.gmra.mrb[36].mxu0 %vm674_vm4, %v2102_v29 }
0x13f6   : > { %5677 = vmatpush3.bf16.msra.mxu0 %v6030_v27  ;;  %5682 = vmatprep.mubr.msk.bf16.mxu0 %vm6237_vm1, %v6236_v9  ;;  %v5052_v27 = vld [vmem:[%s7462_s3 + $0x10] ss:$0 sm:$0xff] }
0x13f7   : > { %5678 = vmatprep.subr.bf16.mxu0 %v6236_v9 }
0x13fa   : > { %5679 = vmatpush3.bf16.msra.mxu0 %v6031_v30  ;;  %v6043_v30 = vld [vmem:[%s7461_s2 + $0x1a8] sm:$0xff]  }
0x13fb   : > { %5680 = vmatprep.subr.bf16.mxu0 %v6236_v9 }
0x13fe   : > { %5681 = vmatpush3.bf16.msra.mxu0 %v6032_v31 }
0x13ff   : > { %5696 = vmatprep.subr.bf16.mxu0 %v6236_v9 }
0x1401   : > { %5683 = vmatmul.mubr.msk.bf16.vlgmr.msra.gmra.mrb[40].mxu0 %vm387_vm0, %v6736_v28 }
0x1402   : > { %5698 = vmatprep.mubr.msk.bf16.mxu0 %vm6237_vm1, %v6236_v9 }
0x14c8   : > { %v2144_v32 = vpop.f32.mrb[36].mxu0 }
0x14c9   : > { %v5664_v33 = vpop.f32.mrb[37].mxu0  ;;  %v2150_v7 = vpack.c.bf16 %v2144_v32, %v2144_v32 }
0x14ca   : > { %v2147_v25 = vpop.f32.mrb[38].mxu0 }
0x14cb   : > { %v5665_v34 = vpop.f32.mrb[39].mxu0 }
0x14d4   : > { %v2288_v36 = vpop.f32.mrb[40].mxu0 }
0x14d5   : > { %v2289_v37 = vadd.f32 %v5011_v35, %v2288_v36  ;;  %v5684_v38 = vpop.f32.mrb[41].mxu0 }
0x14d6   : > { %v2291_v40 = vpop.f32.mrb[42].mxu0 }
0x14d7   : > { %v2365_v41 = vpack.c.bf16 %v2289_v37, %v2289_v37  ;;  %v5685_v42 = vpop.f32.mrb[43].mxu0 }
0x14d9   : > { %v2370_v46 = vsel %vm627_vm2, %v2365_v41, 0  ;;  %v5041_v41 = vld [vmem:[%s7462_s3 + $0xf] ss:$0 sm:$0xff] }
0x14da   : > { %5697 = vmatpush3.bf16.xpose.msra.mxu0 %v2370_v46 }
0x14db   : > { %5702 = vmatprep.subr.bf16.mxu0 %v6236_v9 }
0x14e1   : > { %5699 = vmatmul.mubr.msk.bf16.vlgmr.msra.gmra.mrb[44].mxu0 %vm627_vm2, %v2364_v50 }
0x14e2   : > { %5703 = vmatpush3.bf16.msra.mxu0 %v2429_v51  ;;  %5704 = vmatprep.mubr.msk.bf16.mxu0 %vm6237_vm1, %v6236_v9 }
0x14e3   : > { %5714 = vmatprep.subr.bf16.mxu0 %v6236_v9 }
0x15b4   : > { %v2406_v52 = vpop.f32.mrb[44].mxu0 }
0x15b5   : > { %v2407_v53 = vadd.f32 %v2406_v52, %v6478_v4  ;;  %v5700_v54 = vpop.f32.mrb[45].mxu0 }
0x15b6   : > { %v2409_v55 = vpop.f32.mrb[46].mxu0 }
0x15b7   : > { %v5701_v56 = vpop.f32.mrb[47].mxu0  ;;  %v2412_v57 = vsel %vm674_vm4, %v2407_v53, -inf }
0x15b8   : > { %2413 = vmax.xlane.f32.xlu0 %v2412_v57 }
0x1645   : > { %v2414_v58 = vpop.xlane.xlu0 %2413 }
0x1646   : > { %v2415_v59 = vsub.f32 %v2407_v53, %v2414_v58  ;;  %v6943_v58 = vld [vmem:[%s7460_s1] sm:$0xff] }
0x1648   : > { %v2416_v60 = vmul.f32 1.442695, %v2415_v59 }
0x164a   : > { %6142 = vpow2.f32 %v2416_v60 }
0x1654   : > { %v6143_v61 = vpop.eup %6142 }
0x1655   : > { %v2418_v62 = vsel %vm674_vm4, %v6143_v61, 0.0 }
0x1656   : > { %2419 = vadd.xlane.f32.xlu1 %v2418_v62 }
0x16e3   : > { %v2420_v4 = vpop.xlane.xlu1 %2419 }
0x16e4   : > { %6144 = vrcp.f32 %v2420_v4 }
0x16ee   : > { %v6145_v0 = vpop.eup %6144 }
0x16ef   : > { %v2422_v1 = vmul.f32 %v6145_v0, %v6143_v61 }
0x16f1   : > { %v2423_v5 = vpack.c.bf16 %v2422_v1, %v2422_v1 }
0x16f3   : > { %5705 = vmatmul.mubr.msk.bf16.vlgmr.msra.gmra.mrb[48].mxu0 %vm674_vm4, %v2423_v5 }
0x16f4   : > { %5715 = vmatpush3.bf16.msra.mxu0 %v6033_v2  ;;  %5716 = vmatprep.mubr.msk.bf16.mxu0 %vm6237_vm1, %v6236_v9 }
0x16f5   : > { %5730 = vmatprep.subr.bf16.mxu0 %v6236_v9 }
0x16fb   : > { %5717 = vmatmul.mubr.msk.bf16.vlgmr.msra.gmra.mrb[52].mxu0 %vm627_vm2, %v2150_v7 }
0x16fc   : > { %5731 = vmatpush3.bf16.msra.mxu0 %v6034_v6  ;;  %5736 = vmatprep.mubr.msk.bf16.mxu0 %vm6237_vm1, %v6236_v9  ;;  %v6044_v6 = vld [vmem:[%s7463_s4 + $0x28] sm:$0xff]  }
0x16fd   : > { %5732 = vmatprep.subr.bf16.mxu0 %v6236_v9 }
0x1700   : > { %5733 = vmatpush3.bf16.msra.mxu0 %v6035_v10 }
0x1701   : > { %5734 = vmatprep.subr.bf16.mxu0 %v6236_v9 }
0x1704   : > { %5735 = vmatpush3.bf16.msra.mxu0 %v6036_v11 }
0x1705   : > { %5750 = vmatprep.subr.bf16.mxu0 %v6236_v9 }
0x1707   : > { %5737 = vmatmul.mubr.msk.bf16.vlgmr.msra.gmra.mrb[56].mxu0 %vm387_vm0, %v6736_v28 }
0x1708   : > { %5752 = vmatprep.mubr.msk.bf16.mxu0 %vm6237_vm1, %v6236_v9 }
0x17c6   : > { %v2465_v12 = vpop.f32.mrb[48].mxu0 }
0x17c7   : > { %v2471_v8 = vpack.c.bf16 %v2465_v12, %v2465_v12  ;;  %v5706_v14 = vpop.f32.mrb[49].mxu0 }
0x17c8   : > { %v2468_v15 = vpop.f32.mrb[50].mxu0 }
0x17c9   : > { %v5707_v16 = vpop.f32.mrb[51].mxu0  ;;  %5711 = vmatmul.mubr.msk.bf16.vlgmr.msra.gmra.mrb[68].mxu1 %vm627_vm2, %v2471_v8 }
0x17ca   : > { %5721 = vmatpush3.bf16.msra.mxu1 %v6038_v13  ;;  %5726 = vmatprep.mubr.msk.bf16.mxu1 %vm6237_vm1, %v6236_v9 }
0x17cb   : > { %5722 = vmatprep.subr.bf16.mxu1 %v6236_v9 }
0x17ce   : > { %5723 = vmatpush3.bf16.msra.mxu1 %v6039_v17  ;;  %v2567_v18 = vpop.f32.mrb[52].mxu0 }
0x17cf   : > { %v5718_v20 = vpop.f32.mrb[53].mxu0  ;;  %5724 = vmatprep.subr.bf16.mxu1 %v6236_v9 }
0x17d0   : > { %v2570_v21 = vpop.f32.mrb[54].mxu0  ;;  %v5074_v20 = vld [vmem:[%s7467_s8 + $0xa] ss:$0 sm:$0xff] }
0x17d1   : > { %v5719_v23 = vpop.f32.mrb[55].mxu0 }
0x17d2   : > { %5725 = vmatpush3.bf16.msra.mxu1 %v6040_v19 }
0x17d3   : > { %5740 = vmatprep.subr.bf16.mxu1 %v6236_v9 }
0x17d5   : > { %5727 = vmatmul.mubr.msk.bf16.vlgmr.msra.gmra.mrb[72].mxu1 %vm387_vm0, %v6736_v28 }
0x17d6   : > { %5741 = vmatpush3.bf16.msra.mxu1 %v6041_v24  ;;  %5746 = vmatprep.mubr.msk.bf16.mxu1 %vm6237_vm1, %v6236_v9 }
0x17d7   : > { %5742 = vmatprep.subr.bf16.mxu1 %v6236_v9 }
0x17da   : > { %v2707_v29 = vpop.f32.mrb[56].mxu0  ;;  %5743 = vmatpush3.bf16.msra.mxu1 %v6042_v26 }
0x17db   : > { %v2708_v31 = vadd.f32 %v5052_v27, %v2707_v29  ;;  %v5738_v32 = vpop.f32.mrb[57].mxu0  ;;  %5744 = vmatprep.subr.bf16.mxu1 %v6236_v9 }
0x17dc   : > { %v2710_v33 = vpop.f32.mrb[58].mxu0 }
0x17dd   : > { %v2784_v25 = vpack.c.bf16 %v2708_v31, %v2708_v31  ;;  %v5739_v34 = vpop.f32.mrb[59].mxu0 }
0x17de   : > { %5745 = vmatpush3.bf16.msra.mxu1 %v6043_v30  ;;  %v6050_v34 = vld [vmem:[%s7464_s5 + $0x44] ss:$8 sps:$4 sm:$0xff]  }
0x17df   : > { %v2789_v35 = vsel %vm627_vm2, %v2784_v25, 0  ;;  %5756 = vmatprep.subr.bf16.mxu1 %v6236_v9  ;;  %v6047_v25 = vld [vmem:[%s7464_s5 + $0x34] ss:$8 sps:$4 sm:$0xff]  }
0x17e0   : > { %5751 = vmatpush3.bf16.xpose.msra.mxu0 %v2789_v35  ;;  %v6048_v35 = vld [vmem:[%s7464_s5 + $0x40] ss:$8 sps:$4 sm:$0xff]  }
0x17e1   : > { %5747 = vmatmul.mubr.msk.bf16.vlgmr.msra.gmra.mrb[76].mxu1 %vm387_vm0, %v6736_v28  ;;  %5762 = vmatprep.subr.bf16.mxu0 %v6236_v9 }
0x17e2   : > { %5758 = vmatprep.mubr.msk.bf16.mxu1 %vm6237_vm1, %v6236_v9 }
0x189c   : > { %v2518_v36 = vpop.f32.mrb[68].mxu1 }
0x189d   : > { %v2568_v37 = vadd.f32 %v2567_v18, %v2518_v36  ;;  %v5712_v38 = vpop.f32.mrb[69].mxu1  ;;  %v6053_v36 = vld [vmem:[%s7464_s5 + $0x54] ss:$8 sps:$4 sm:$0xff]  }
0x189e   : > { %v2521_v39 = vpop.f32.mrb[70].mxu1  ;;  %v6054_v38 = vld [vmem:[%s7466_s7 + $0x60] sm:$0xff]  }
0x189f   : > { %v5713_v40 = vpop.f32.mrb[71].mxu1  ;;  %v6055_v39 = vld [vmem:[%s7466_s7 + $0x68] sm:$0xff]  }
0x18a0   : > { %v6056_v40 = vld [vmem:[%s7466_s7 + $0x70] sm:$0xff]  }
0x18a8   : > { %v2637_v42 = vpop.f32.mrb[72].mxu1 }
0x18a9   : > { %v2638_v44 = vadd.f32 %v5041_v41, %v2637_v42  ;;  %v5728_v45 = vpop.f32.mrb[73].mxu1  ;;  %v6057_v41 = vld [vmem:[%s7466_s7 + $0x78] sm:$0xff]   ;;  %v6058_v42 = vld [vmem:[%s7466_s7 + $0x80] sm:$0xff]  }
0x18aa   : > { %v2640_v46 = vpop.f32.mrb[74].mxu1  ;;  %v6060_v45 = vld [vmem:[%s7466_s7 + $0x90] sm:$0xff]  }
0x18ab   : > { %v2783_v47 = vpack.c.bf16 %v2638_v44, %v2638_v44  ;;  %v5729_v28 = vpop.f32.mrb[75].mxu1  ;;  %v6059_v44 = vld [vmem:[%s7466_s7 + $0x88] sm:$0xff]   ;;  %v6061_v46 = vld [vmem:[%s7466_s7 + $0x98] sm:$0xff]  }
0x18ac   : > { %v6063_v28 = vld [vmem:[%s7466_s7 + $0xa8] sm:$0xff]  }
0x18ad   : > { %5753 = vmatmul.mubr.msk.bf16.vlgmr.msra.gmra.mrb[60].mxu0 %vm627_vm2, %v2783_v47  ;;  %v6062_v47 = vld [vmem:[%s7466_s7 + $0xa0] sm:$0xff]  }
0x18ae   : > { %5764 = vmatprep.mubr.msk.bf16.mxu0 %vm6237_vm1, %v6236_v9  ;;  %5763 = vmatpush3.bf16.msra.mxu0 %v6044_v6 }
0x18af   : > { %3175 = vmatprep.subr.bf16.mxu0 %v6238_v22 }
0x18b4   : > { %v2777_v50 = vpop.f32.mrb[76].mxu1 }
0x18b5   : > { %v2778_v51 = vadd.f32 %v5063_v43, %v2777_v50  ;;  %v5748_v52 = vpop.f32.mrb[77].mxu1 }
0x18b6   : > { %v2780_v53 = vpop.f32.mrb[78].mxu1 }
0x18b7   : > { %v2843_v54 = vpack.c.bf16 %v2778_v51, %v2778_v51  ;;  %v5749_v55 = vpop.f32.mrb[79].mxu1  ;;  %v5075_v53 = vld [vmem:[%s7467_s8 + $0x8] ss:$0 sm:$0xff] }
0x18b8   : > { %v5076_v55 = vld [vmem:[%s7467_s8 + $0x9] ss:$0 sm:$0xff] }
0x18b9   : > { %v2848_v56 = vsel %vm691_vm3, %v2843_v54, 0 }
0x18ba   : > { %5757 = vmatpush3.bf16.msra.mxu1 %v2848_v56 }
0x18bb   : > { %3030 = vmatprep.subr.bf16.mxu1 %v6047_v25 }
0x1980   : > { %v2825_v57 = vpop.f32.mrb[60].mxu0 }
0x1981   : > { %v2826_v59 = vadd.f32 %v6943_v58, %v2825_v57  ;;  %v5754_v60 = vpop.f32.mrb[61].mxu0 }
0x1982   : > { %v2828_v61 = vpop.f32.mrb[62].mxu0  ;;  %v6064_v60 = vld [vmem:[%s7466_s7 + $0xb0] sm:$0xff]  }
0x1983   : > { %v5755_v62 = vpop.f32.mrb[63].mxu0  ;;  %v2831_v63 = vsel %vm674_vm4, %v2826_v59, -inf  ;;  %v6065_v61 = vld [vmem:[%s7466_s7 + $0xb8] sm:$0xff]  }
0x1984   : > { %2832 = vmax.xlane.f32.xlu0 %v2831_v63  ;;  %v5083_v62 = vld [vmem:[%s7465_s6 + $0x1] ss:$4 sm:$0x3] }
0x1985   : > { %v2990_v63 = vrot.slane %v5083_v62, %v6693_v48 }
0x1a11   : > { %v2833_v4 = vpop.xlane.xlu0 %2832 }
0x1a12   : > { %v2834_v0 = vsub.f32 %v2826_v59, %v2833_v4  ;;  %v2994_v4 = vrot.slane %v5083_v62, %v6698_v49  ;;  %v5159_v62 = vld [vmem:[%s7462_s3 + $0x14] ss:$0 sm:$0xff] }
0x1a14   : > { %v2835_v1 = vmul.f32 1.442695, %v2834_v0 }
0x1a16   : > { %6146 = vpow2.f32 %v2835_v1 }
0x1a20   : > { %v6147_v2 = vpop.eup %6146 }
0x1a21   : > { %v2837_v5 = vsel %vm674_vm4, %v6147_v2, 0.0 }
0x1a22   : > { %2838 = vadd.xlane.f32.xlu1 %v2837_v5 }
0x1aaf   : > { %v2839_v7 = vpop.xlane.xlu1 %2838 }
0x1ab0   : > { %6148 = vrcp.f32 %v2839_v7 }
0x1aba   : > { %v6149_v10 = vpop.eup %6148 }
0x1abb   : > { %v2841_v11 = vmul.f32 %v6149_v10, %v6147_v2 }
0x1abd   : > { %v2842_v12 = vpack.c.bf16 %v2841_v11, %v2841_v11 }
0x1abf   : > { %5759 = vmatmul.mubr.msk.bf16.vlgmr.msra.gmra.mrb[80].mxu1 %vm674_vm4, %v2842_v12 }
0x1ac0   : > { %3062 = vmatprep.mubr.bf16.mxu1 %v6238_v22 }
0x1b92   : > { %v2884_v13 = vpop.f32.mrb[80].mxu1 }
0x1b93   : > { %v2890_v8 = vpack.c.bf16 %v2884_v13, %v2884_v13  ;;  %v5760_v14 = vpop.f32.mrb[81].mxu1 }
0x1b94   : > { %v2887_v15 = vpop.f32.mrb[82].mxu1  ;;  %v5128_v14 = vld [vmem:[%s7467_s8 + $0xb] ss:$0 sm:$0xff] }
0x1b95   : > { %v5761_v16 = vpop.f32.mrb[83].mxu1  ;;  %5765 = vmatmul.mubr.msk.bf16.vlgmr.msra.gmra.mrb[64].mxu0 %vm627_vm2, %v2890_v8 }
0x1b96   : > { %3176 = vmatpush1.bf16.msra.mxu0 %v6054_v38 }
0x1b97   : > { %3177 = vmatprep.subr.bf16.mxu0 %v6238_v22 }
0x1b9a   : > { %3178 = vmatpush1.bf16.msra.mxu0 %v6055_v39  ;;  %v6069_v39 = vld [vmem:[%s7461_s2 + $0x1c8] sm:$0xff]  }
0x1b9b   : > { %3179 = vmatprep.subr.bf16.mxu0 %v6238_v22 }
0x1b9e   : > { %3180 = vmatpush1.bf16.msra.mxu0 %v6056_v40 }
0x1b9f   : > { %3181 = vmatprep.subr.bf16.mxu0 %v6238_v22 }
0x1ba2   : > { %3182 = vmatpush1.bf16.msra.mxu0 %v6057_v41  ;;  %v6070_v41 = vld [vmem:[%s7461_s2 + $0x1d0] sm:$0xff]  }
0x1ba3   : > { %3183 = vmatprep.subr.bf16.mxu0 %v6238_v22 }
0x1ba6   : > { %3184 = vmatpush1.bf16.msra.mxu0 %v6058_v42  ;;  %v6071_v42 = vld [vmem:[%s7461_s2 + $0x1d8] sm:$0xff]  }
0x1ba7   : > { %3185 = vmatprep.subr.bf16.mxu0 %v6238_v22 }
0x1baa   : > { %3186 = vmatpush1.bf16.msra.mxu0 %v6059_v44  ;;  %v6072_v44 = vld [vmem:[%s7461_s2 + $0x1e0] sm:$0xff]  }
0x1bab   : > { %3187 = vmatprep.subr.bf16.mxu0 %v6238_v22 }
0x1bae   : > { %3188 = vmatpush1.bf16.msra.mxu0 %v6060_v45  ;;  %v6073_v45 = vld [vmem:[%s7461_s2 + $0x1e8] sm:$0xff]  }
0x1baf   : > { %3189 = vmatprep.subr.bf16.mxu0 %v6238_v22 }
0x1bb2   : > { %3190 = vmatpush1.bf16.msra.mxu0 %v6061_v46  ;;  %v6074_v46 = vld [vmem:[%s7461_s2 + $0x1f0] sm:$0xff]  }
0x1bb3   : > { %3191 = vmatprep.subr.bf16.mxu0 %v6238_v22 }
0x1bb6   : > { %3192 = vmatpush1.bf16.msra.mxu0 %v6062_v47 }
0x1bb7   : > { %3193 = vmatprep.subr.bf16.mxu0 %v6238_v22 }
0x1bba   : > { %3194 = vmatpush1.bf16.msra.mxu0 %v6063_v28 }
0x1bbb   : > { %3195 = vmatprep.subr.bf16.mxu0 %v6238_v22 }
0x1bbe   : > { %3196 = vmatpush1.bf16.msra.mxu0 %v6064_v60 }
0x1bbf   : > { %3197 = vmatprep.subr.bf16.mxu0 %v6238_v22 }
0x1bc2   : > { %3198 = vmatpush1.bf16.msra.mxu0 %v6065_v61 }
0x1bc3   : > { %5804 = vmatprep.subr.bf16.mxu0 %v6236_v9 }
0x1c68   : > { %v2937_v17 = vpop.f32.mrb[64].mxu0 }
0x1c69   : > { %v2943_v18 = vadd.f32 %v2937_v17, %v2568_v37  ;;  %v5766_v19 = vpop.f32.mrb[65].mxu0  ;;  %v6051_v37 = vld [vmem:[%s7464_s5 + $0x50] ss:$8 sps:$4 sm:$0xff]  }
0x1c6a   : > { %v2940_v21 = vpop.f32.mrb[66].mxu0 }
0x1c6b   : > { %v2944_v23 = vadd.f32 %v2943_v18, %v6709_v3  ;;  %v5767_v24 = vpop.f32.mrb[67].mxu0  ;;  %v6045_v3 = vld [vmem:[%s7464_s5 + $0x30] ss:$8 sps:$4 sm:$0xff]  }
0x1c6c   : > { %3031 = vmatpush1.bf16.msra.mxu1 %v6045_v3 }
0x1c6d   : > { %v6959_v26 = vadd.f32 %v5074_v20, %v2944_v23  ;;  %3032 = vmatprep.subr.bf16.mxu1 %v6050_v34  ;;  %v5129_v34 = vld [vmem:[%s7467_s8 + $0xc] ss:$0 sm:$0xff] }
0x1c6f   : > { %v2953_v27 = vsel %vm387_vm0, %v6959_v26, 0.0 }
0x1c70   : > { %2954 = vadd.xlane.f32.xlu0 %v2953_v27  ;;  %3033 = vmatpush1.bf16.msra.mxu1 %v6048_v35 }
0x1c71   : > { %3034 = vmatprep.subr.bf16.mxu1 %v6053_v36  ;;  %v5130_v36 = vld [vmem:[%s7467_s8 + $0xd] ss:$0 sm:$0xff] }
0x1c74   : > { %3035 = vmatpush1.bf16.msra.mxu1 %v6051_v37 }
0x1c75   : > { %5768 = vmatprep.subr.bf16.mxu1 %v6236_v9 }
0x1cfd   : > { %v2955_v29 = vpop.xlane.xlu0 %2954 }
0x1cfe   : > { %v2956_v30 = vmul.f32 0.020833334, %v2955_v29 }
0x1d00   : > { %v2957_v31 = vsub.f32 %v6959_v26, %v2956_v30  ;;  %v6067_v30 = vld [vmem:[%s7461_s2 + $0x1b8] sm:$0xff]  }
0x1d02   : > { %v2958_v32 = vmul.f32 %v2957_v31, %v2957_v31 }
0x1d04   : > { %v2959_v33 = vsel %vm387_vm0, %v2958_v32, 0.0 }
0x1d05   : > { %2960 = vadd.xlane.f32.xlu1 %v2959_v33 }
0x1d92   : > { %v2961_v43 = vpop.xlane.xlu1 %2960 }
0x1d93   : > { %v2962_v50 = vmul.f32 0.020833334, %v2961_v43 }
0x1d95   : > { %v2963_v51 = vadd.f32 1e-05, %v2962_v50 }
0x1d97   : > { %6150 = vrsqrt.f32 %v2963_v51  ;;  %v5148_v51 = vld [vmem:[%s7462_s3 + $0x13] ss:$0 sm:$0xff] }
0x1da1   : > { %v6151_v52 = vpop.eup %6150 }
0x1da2   : > { %v2965_v54 = vmul.f32 %v6151_v52, %v2957_v31  ;;  %v6068_v31 = vld [vmem:[%s7461_s2 + $0x1c0] sm:$0xff]  }
0x1da4   : > { %v2970_v56 = vmul.f32 %v5075_v53, %v2965_v54 }
0x1da6   : > { %v2975_v57 = vadd.f32 %v5076_v55, %v2970_v56 }
0x1da8   : > { %v2976_v59 = vpack.c.bf16 %v2975_v57, %v2975_v57 }
0x1daa   : > { %5090 = vmatmul.mubr.msk.bf16.vlgmr.msra.gmra.mrb[84].mxu1 %vm387_vm0, %v2976_v59  ;;  %v5137_v59 = vld [vmem:[%s7462_s3 + $0x12] ss:$0 sm:$0xff] }
0x1dab   : > { %5774 = vmatprep.mubr.msk.bf16.mxu1 %vm6237_vm1, %v6236_v9 }
0x1e7d   : > { %v3064_v0 = vpop.f32.mrb[84].mxu1 }
0x1e7e   : > { %v3065_v1 = vadd.f32 %v3064_v0, %v2990_v63  ;;  %v3066_v2 = vpop.f32.mrb[85].mxu1  ;;  %v6075_v63 = vld [vmem:[%s7461_s2 + $0x1f8] sm:$0xff]  }
0x1e7f   : > { %v3067_v5 = vadd.f32 %v3066_v2, %v2994_v4  ;;  %v3068_v6 = vpop.f32.mrb[86].mxu1 }
0x1e80   : > { %v3071_v7 = vmax.f32 %v3065_v1, 0.0  ;;  %v3069_v10 = vpop.f32.mrb[87].mxu1  ;;  %v6076_v6 = vld [vmem:[%s7461_s2 + $0x200] sm:$0xff]  }
0x1e81   : > { %v3072_v11 = vmax.f32 %v3067_v5, 0.0 }
0x1e82   : > { %v3073_v13 = vpack.c.bf16 %v3071_v7, %v3071_v7 }
0x1e83   : > { %v3074_v12 = vpack.c.bf16 %v3072_v11, %v3072_v11 }
0x1e85   : > { %5127 = vmatprep.mubr.msk.bf16.mxu0 %vm1753_vm5, %v3074_v12  ;;  %v6077_v12 = vld [vmem:[%s7461_s2 + $0x208] sm:$0xff]  }
0x1e86   : > { %3208 = vmatmul.mubr.bf16.vlgmr.msra.gmra.mrb[68].mxu0 %v3073_v13  ;;  %v6078_v13 = vld [vmem:[%s7461_s2 + $0x228] sm:$0xff]  }
0x1e87   : > { %5806 = vmatprep.mubr.msk.bf16.mxu0 %vm6237_vm1, %v6236_v9 }
0x1f59   : > { %v3209_v8 = vpop.f32.mrb[68].mxu0 }
0x1f5a   : > { %v3215_v15 = vadd.f32 %v3209_v8, %v6959_v26  ;;  %v3211_v16 = vpop.f32.mrb[69].mxu0  ;;  %v6066_v26 = vld [vmem:[%s7461_s2 + $0x1b0] sm:$0xff]  }
0x1f5b   : > { %v3212_v17 = vpop.f32.mrb[70].mxu0  ;;  %5769 = vmatpush3.bf16.msra.mxu1 %v6066_v26  ;;  %v6079_v8 = vld [vmem:[%s7461_s2 + $0x230] sm:$0xff]  }
0x1f5c   : > { %v7053_v18 = vadd.f32 %v5128_v14, %v3215_v15  ;;  %v3213_v19 = vpop.f32.mrb[71].mxu0  ;;  %5770 = vmatprep.subr.bf16.mxu1 %v6236_v9  ;;  %v6080_v14 = vld [vmem:[%s7461_s2 + $0x238] sm:$0xff]  }
0x1f5e   : > { %v3224_v20 = vsel %vm387_vm0, %v7053_v18, 0.0 }
0x1f5f   : > { %3225 = vadd.xlane.f32.xlu0 %v3224_v20  ;;  %5771 = vmatpush3.bf16.msra.mxu1 %v6067_v30 }
0x1f60   : > { %5772 = vmatprep.subr.bf16.mxu1 %v6236_v9 }
0x1f63   : > { %5773 = vmatpush3.bf16.msra.mxu1 %v6068_v31 }
0x1f64   : > { %5778 = vmatprep.subr.bf16.mxu1 %v6236_v9 }
0x1fec   : > { %v3226_v21 = vpop.xlane.xlu0 %3225 }
0x1fed   : > { %v3227_v23 = vmul.f32 0.020833334, %v3226_v21 }
0x1fef   : > { %v3228_v24 = vsub.f32 %v7053_v18, %v3227_v23 }
0x1ff1   : > { %v3229_v27 = vmul.f32 %v3228_v24, %v3228_v24 }
0x1ff3   : > { %v3230_v29 = vsel %vm387_vm0, %v3229_v27, 0.0 }
0x1ff4   : > { %3231 = vadd.xlane.f32.xlu1 %v3230_v29 }
0x2081   : > { %v3232_v32 = vpop.xlane.xlu1 %3231 }
0x2082   : > { %v3233_v33 = vmul.f32 0.020833334, %v3232_v32 }
0x2084   : > { %v3234_v25 = vadd.f32 1e-05, %v3233_v33 }
0x2086   : > { %6152 = vrsqrt.f32 %v3234_v25 }
0x2090   : > { %v6153_v3 = vpop.eup %6152 }
0x2091   : > { %v3236_v35 = vmul.f32 %v6153_v3, %v3228_v24 }
0x2093   : > { %v3241_v37 = vmul.f32 %v5129_v34, %v3236_v35 }
0x2095   : > { %v3246_v38 = vadd.f32 %v5130_v36, %v3241_v37 }
0x2097   : > { %v7080_v40 = vpack.c.bf16 %v3246_v38, %v3246_v38 }
0x2099   : > { %5775 = vmatmul.mubr.msk.bf16.vlgmr.msra.gmra.mrb[88].mxu1 %vm387_vm0, %v7080_v40 }
0x209a   : > { %5779 = vmatpush3.bf16.msra.mxu1 %v6069_v39  ;;  %5784 = vmatprep.mubr.msk.bf16.mxu1 %vm6237_vm1, %v6236_v9  ;;  %v6081_v39 = vld [vmem:[%s7461_s2 + $0x210] sm:$0xff]  }
0x209b   : > { %5780 = vmatprep.subr.bf16.mxu1 %v6236_v9 }
0x209e   : > { %5781 = vmatpush3.bf16.msra.mxu1 %v6070_v41 }
0x209f   : > { %5782 = vmatprep.subr.bf16.mxu1 %v6236_v9 }
0x20a2   : > { %5783 = vmatpush3.bf16.msra.mxu1 %v6071_v42  ;;  %v6082_v42 = vld [vmem:[%s7461_s2 + $0x218] sm:$0xff]  }
0x20a3   : > { %5788 = vmatprep.subr.bf16.mxu1 %v6236_v9 }
0x20a5   : > { %5785 = vmatmul.mubr.msk.bf16.vlgmr.msra.gmra.mrb[92].mxu1 %vm387_vm0, %v7080_v40 }
0x20a6   : > { %5789 = vmatpush3.bf16.msra.mxu1 %v6072_v44  ;;  %5794 = vmatprep.mubr.msk.bf16.mxu1 %vm6237_vm1, %v6236_v9  ;;  %v6083_v44 = vld [vmem:[%s7461_s2 + $0x220] sm:$0xff]  }
0x20a7   : > { %5790 = vmatprep.subr.bf16.mxu1 %v6236_v9 }
0x20aa   : > { %5791 = vmatpush3.bf16.msra.mxu1 %v6073_v45 }
0x20ab   : > { %5792 = vmatprep.subr.bf16.mxu1 %v6236_v9 }
0x20ae   : > { %5793 = vmatpush3.bf16.msra.mxu1 %v6074_v46 }
0x20af   : > { %5798 = vmatprep.subr.bf16.mxu1 %v6236_v9 }
0x20b1   : > { %5795 = vmatmul.mubr.msk.bf16.vlgmr.msra.gmra.mrb[96].mxu1 %vm387_vm0, %v7080_v40 }
0x20b2   : > { %5800 = vmatprep.mubr.msk.bf16.mxu1 %vm6237_vm1, %v6236_v9 }
0x216c   : > { %v3315_v47 = vpop.f32.mrb[88].mxu1 }
0x216d   : > { %v5776_v28 = vpop.f32.mrb[89].mxu1  ;;  %v3316_v61 = vadd.f32 %v5137_v59, %v3315_v47 }
0x216e   : > { %v3318_v43 = vpop.f32.mrb[90].mxu1 }
0x216f   : > { %v5777_v50 = vpop.f32.mrb[91].mxu1  ;;  %v3461_v4 = vpack.c.bf16 %v3316_v61, %v3316_v61  ;;  %v5185_v43 = vld [vmem:[%s7462_s3 + $0x16] ss:$0 sm:$0xff] }
0x2178   : > { %v3385_v52 = vpop.f32.mrb[92].mxu1 }
0x2179   : > { %v3386_v53 = vadd.f32 %v5148_v51, %v3385_v52  ;;  %v5786_v54 = vpop.f32.mrb[93].mxu1 }
0x217a   : > { %v3388_v55 = vpop.f32.mrb[94].mxu1 }
0x217b   : > { %v3462_v56 = vpack.c.bf16 %v3386_v53, %v3386_v53  ;;  %v5787_v57 = vpop.f32.mrb[95].mxu1  ;;  %v5196_v53 = vld [vmem:[%s7462_s3 + $0x17] ss:$0 sm:$0xff] }
0x217c   : > { %v5174_v57 = vld [vmem:[%s7462_s3 + $0x15] ss:$0 sm:$0xff] }
0x217d   : > { %v3467_v60 = vsel %vm627_vm2, %v3462_v56, 0 }
0x217e   : > { %5799 = vmatpush3.bf16.xpose.msra.mxu1 %v3467_v60 }
0x217f   : > { %5810 = vmatprep.subr.bf16.mxu1 %v6236_v9 }
0x2184   : > { %v3455_v0 = vpop.f32.mrb[96].mxu1 }
0x2185   : > { %v3456_v1 = vadd.f32 %v5159_v62, %v3455_v0  ;;  %v5796_v2 = vpop.f32.mrb[97].mxu1  ;;  %5801 = vmatmul.mubr.msk.bf16.vlgmr.msra.gmra.mrb[100].mxu1 %vm627_vm2, %v3461_v4 }
0x2186   : > { %v3458_v5 = vpop.f32.mrb[98].mxu1  ;;  %5811 = vmatpush3.bf16.msra.mxu1 %v6075_v63  ;;  %5816 = vmatprep.mubr.msk.bf16.mxu1 %vm6237_vm1, %v6236_v9 }
0x2187   : > { %v3521_v7 = vpack.c.bf16 %v3456_v1, %v3456_v1  ;;  %v5797_v10 = vpop.f32.mrb[99].mxu1  ;;  %5812 = vmatprep.subr.bf16.mxu1 %v6236_v9 }
0x2189   : > { %v3526_v11 = vsel %vm691_vm3, %v3521_v7, 0 }
0x218a   : > { %5805 = vmatpush3.bf16.msra.mxu0 %v3526_v11  ;;  %5813 = vmatpush3.bf16.msra.mxu1 %v6076_v6 }
0x218b   : > { %5814 = vmatprep.subr.bf16.mxu1 %v6236_v9  ;;  %5820 = vmatprep.subr.bf16.mxu0 %v6236_v9 }
0x218e   : > { %5815 = vmatpush3.bf16.msra.mxu1 %v6077_v12 }
0x218f   : > { %5830 = vmatprep.subr.bf16.mxu1 %v6236_v9 }
0x2191   : > { %5817 = vmatmul.mubr.msk.bf16.vlgmr.msra.gmra.mrb[104].mxu1 %vm387_vm0, %v7080_v40 }
0x2192   : > { %5831 = vmatpush3.bf16.msra.mxu1 %v6078_v13  ;;  %5836 = vmatprep.mubr.msk.bf16.mxu1 %vm6237_vm1, %v6236_v9 }
0x2193   : > { %5832 = vmatprep.subr.bf16.mxu1 %v6236_v9 }
0x2196   : > { %5833 = vmatpush3.bf16.msra.mxu1 %v6079_v8 }
0x2197   : > { %5834 = vmatprep.subr.bf16.mxu1 %v6236_v9 }
0x219a   : > { %5835 = vmatpush3.bf16.msra.mxu1 %v6080_v14  ;;  %v6088_v14 = vld [vmem:[%s7463_s4 + $0x38] sm:$0xff]  }
0x219b   : > { %5852 = vmatprep.subr.bf16.mxu1 %v6236_v9 }
0x219d   : > { %5837 = vmatmul.mubr.msk.bf16.vlgmr.msra.gmra.mrb[108].mxu1 %vm387_vm0, %v7080_v40 }
0x219e   : > { %5854 = vmatprep.mubr.msk.bf16.mxu1 %vm6237_vm1, %v6236_v9  ;;  %5853 = vmatpush3.bf16.msra.mxu1 %v6088_v14 }
0x219f   : > { %5864 = vmatprep.subr.bf16.mxu1 %v6236_v9 }
0x2258   : > { %v3503_v15 = vpop.f32.mrb[100].mxu1 }
0x2259   : > { %v3504_v16 = vadd.f32 %v6943_v58, %v3503_v15  ;;  %v5802_v17 = vpop.f32.mrb[101].mxu1 }
0x225a   : > { %v3506_v19 = vpop.f32.mrb[102].mxu1 }
0x225b   : > { %v5803_v20 = vpop.f32.mrb[103].mxu1  ;;  %v3509_v21 = vsel %vm674_vm4, %v3504_v16, -inf  ;;  %v6084_v19 = vld [vmem:[%s7463_s4 + $0x30] sm:$0xff]  }
0x225c   : > { %3510 = vmax.xlane.f32.xlu0 %v3509_v21  ;;  %v6085_v21 = vld [vmem:[%s7461_s2 + $0x258] sm:$0xff]  }
0x2264   : > { %v3636_v23 = vpop.f32.mrb[104].mxu1 }
0x2265   : > { %v5818_v24 = vpop.f32.mrb[105].mxu1  ;;  %v3637_v61 = vadd.f32 %v5174_v57, %v3636_v23 }
0x2266   : > { %v3639_v27 = vpop.f32.mrb[106].mxu1  ;;  %v6086_v24 = vld [vmem:[%s7461_s2 + $0x260] sm:$0xff]  }
0x2267   : > { %v5819_v29 = vpop.f32.mrb[107].mxu1  ;;  %v3782_v63 = vpack.c.bf16 %v3637_v61, %v3637_v61  ;;  %v6087_v27 = vld [vmem:[%s7461_s2 + $0x268] sm:$0xff]  }
0x2270   : > { %v3776_v26 = vpop.f32.mrb[108].mxu1 }
0x2271   : > { %v5838_v30 = vpop.f32.mrb[109].mxu1  ;;  %v3777_v59 = vadd.f32 %v5196_v53, %v3776_v26  ;;  %v6089_v26 = vld [vmem:[%s7461_s2 + $0x240] sm:$0xff]  }
0x2272   : > { %v3779_v31 = vpop.f32.mrb[110].mxu1 }
0x2273   : > { %v5839_v32 = vpop.f32.mrb[111].mxu1  ;;  %v3842_v62 = vpack.c.bf16 %v3777_v59, %v3777_v59 }
0x2275   : > { %v3847_v4 = vsel %vm691_vm3, %v3842_v62, 0 }
0x22e9   : > { %v3511_v33 = vpop.xlane.xlu0 %3510 }
0x22ea   : > { %v3512_v25 = vsub.f32 %v3504_v16, %v3511_v33 }
0x22ec   : > { %v3513_v3 = vmul.f32 1.442695, %v3512_v25  ;;  %v6090_v25 = vld [vmem:[%s7461_s2 + $0x248] sm:$0xff]  }
0x22ee   : > { %6154 = vpow2.f32 %v3513_v3 }
0x22f8   : > { %v6155_v34 = vpop.eup %6154 }
0x22f9   : > { %v3515_v35 = vsel %vm674_vm4, %v6155_v34, 0.0 }
0x22fa   : > { %3516 = vadd.xlane.f32.xlu1 %v3515_v35 }
0x2387   : > { %v3517_v36 = vpop.xlane.xlu1 %3516 }
0x2388   : > { %6156 = vrcp.f32 %v3517_v36 }
0x2392   : > { %v6157_v37 = vpop.eup %6156 }
0x2393   : > { %v3519_v38 = vmul.f32 %v6157_v37, %v6155_v34  ;;  %v6091_v34 = vld [vmem:[%s7461_s2 + $0x250] sm:$0xff]  }
0x2395   : > { %v3520_v41 = vpack.c.bf16 %v3519_v38, %v3519_v38  ;;  %v6092_v38 = vld [vmem:[%s7461_s2 + $0x270] sm:$0xff]  }
0x2397   : > { %5807 = vmatmul.mubr.msk.bf16.vlgmr.msra.gmra.mrb[72].mxu0 %vm674_vm4, %v3520_v41  ;;  %v5226_v41 = vld [vmem:[%s7462_s3 + $0x19] ss:$0 sm:$0xff] }
0x2398   : > { %5821 = vmatpush3.bf16.msra.mxu0 %v6081_v39  ;;  %5826 = vmatprep.mubr.msk.bf16.mxu0 %vm6237_vm1, %v6236_v9  ;;  %v6093_v39 = vld [vmem:[%s7461_s2 + $0x278] sm:$0xff]  }
0x2399   : > { %5822 = vmatprep.subr.bf16.mxu0 %v6236_v9 }
0x239c   : > { %5823 = vmatpush3.bf16.msra.mxu0 %v6082_v42 }
0x239d   : > { %5824 = vmatprep.subr.bf16.mxu0 %v6236_v9 }
0x23a0   : > { %5825 = vmatpush3.bf16.msra.mxu0 %v6083_v44  ;;  %v6094_v44 = vld [vmem:[%s7461_s2 + $0x280] sm:$0xff]  }
0x23a1   : > { %5840 = vmatprep.subr.bf16.mxu0 %v6236_v9 }
0x23a3   : > { %5827 = vmatmul.mubr.msk.bf16.vlgmr.msra.gmra.mrb[76].mxu0 %vm387_vm0, %v7080_v40 }
0x23a4   : > { %5842 = vmatprep.mubr.msk.bf16.mxu0 %vm6237_vm1, %v6236_v9 }
0x246a   : > { %v3562_v45 = vpop.f32.mrb[72].mxu0 }
0x246b   : > { %v5808_v46 = vpop.f32.mrb[73].mxu0  ;;  %v3568_v23 = vpack.c.bf16 %v3562_v45, %v3562_v45 }
0x246c   : > { %v3565_v47 = vpop.f32.mrb[74].mxu0 }
0x246d   : > { %v5809_v28 = vpop.f32.mrb[75].mxu0 }
0x2476   : > { %v3706_v50 = vpop.f32.mrb[76].mxu0 }
0x2477   : > { %v3707_v51 = vadd.f32 %v5185_v43, %v3706_v50  ;;  %v5828_v52 = vpop.f32.mrb[77].mxu0 }
0x2478   : > { %v3709_v54 = vpop.f32.mrb[78].mxu0 }
0x2479   : > { %v3783_v55 = vpack.c.bf16 %v3707_v51, %v3707_v51  ;;  %v5829_v56 = vpop.f32.mrb[79].mxu0 }
0x247a   : > { %v5215_v56 = vld [vmem:[%s7462_s3 + $0x18] ss:$0 sm:$0xff] }
0x247b   : > { %v3788_v60 = vsel %vm627_vm2, %v3783_v55, 0 }
0x247c   : > { %5841 = vmatpush3.bf16.xpose.msra.mxu0 %v3788_v60 }
0x247d   : > { %5846 = vmatprep.subr.bf16.mxu0 %v6236_v9 }
0x2483   : > { %5843 = vmatmul.mubr.msk.bf16.vlgmr.msra.gmra.mrb[80].mxu0 %vm627_vm2, %v3782_v63  ;;  %v5237_v63 = vld [vmem:[%s7462_s3 + $0x1a] ss:$0 sm:$0xff] }
0x2484   : > { %5847 = vmatpush3.bf16.msra.mxu0 %v3847_v4  ;;  %5848 = vmatprep.mubr.msk.bf16.mxu0 %vm6237_vm1, %v6236_v9 }
0x2485   : > { %5858 = vmatprep.subr.bf16.mxu0 %v6236_v9 }
0x2556   : > { %v3824_v0 = vpop.f32.mrb[80].mxu0 }
0x2557   : > { %v3825_v1 = vadd.f32 %v6943_v58, %v3824_v0  ;;  %v5844_v2 = vpop.f32.mrb[81].mxu0 }
0x2558   : > { %v3827_v5 = vpop.f32.mrb[82].mxu0 }
0x2559   : > { %v5845_v6 = vpop.f32.mrb[83].mxu0  ;;  %v3830_v7 = vsel %vm674_vm4, %v3825_v1, -inf }
0x255a   : > { %3831 = vmax.xlane.f32.xlu0 %v3830_v7 }
0x25e7   : > { %v3832_v10 = vpop.xlane.xlu0 %3831 }
0x25e8   : > { %v3833_v11 = vsub.f32 %v3825_v1, %v3832_v10 }
0x25ea   : > { %v3834_v12 = vmul.f32 1.442695, %v3833_v11 }
0x25ec   : > { %6158 = vpow2.f32 %v3834_v12 }
0x25f6   : > { %v6159_v13 = vpop.eup %6158 }
0x25f7   : > { %v3836_v8 = vsel %vm674_vm4, %v6159_v13, 0.0 }
0x25f8   : > { %3837 = vadd.xlane.f32.xlu1 %v3836_v8 }
0x2685   : > { %v3838_v15 = vpop.xlane.xlu1 %3837 }
0x2686   : > { %6160 = vrcp.f32 %v3838_v15 }
0x2690   : > { %v6161_v16 = vpop.eup %6160 }
0x2691   : > { %v3840_v17 = vmul.f32 %v6161_v16, %v6159_v13 }
0x2693   : > { %v3841_v20 = vpack.c.bf16 %v3840_v17, %v3840_v17 }
0x2695   : > { %5849 = vmatmul.mubr.msk.bf16.vlgmr.msra.gmra.mrb[84].mxu0 %vm674_vm4, %v3841_v20 }
0x2696   : > { %5859 = vmatpush3.bf16.msra.mxu0 %v6084_v19  ;;  %5860 = vmatprep.mubr.msk.bf16.mxu0 %vm6237_vm1, %v6236_v9 }
0x2697   : > { %5874 = vmatprep.subr.bf16.mxu0 %v6236_v9 }
0x269d   : > { %5861 = vmatmul.mubr.msk.bf16.vlgmr.msra.gmra.mrb[88].mxu0 %vm627_vm2, %v3568_v23 }
0x269e   : > { %5875 = vmatpush3.bf16.msra.mxu0 %v6085_v21  ;;  %5880 = vmatprep.mubr.msk.bf16.mxu0 %vm6237_vm1, %v6236_v9  ;;  %v6095_v21 = vld [vmem:[%s7463_s4 + $0x40] sm:$0xff]  }
0x269f   : > { %5876 = vmatprep.subr.bf16.mxu0 %v6236_v9 }
0x26a2   : > { %5877 = vmatpush3.bf16.msra.mxu0 %v6086_v24 }
0x26a3   : > { %5878 = vmatprep.subr.bf16.mxu0 %v6236_v9 }
0x26a6   : > { %5879 = vmatpush3.bf16.msra.mxu0 %v6087_v27 }
0x26a7   : > { %5894 = vmatprep.subr.bf16.mxu0 %v6236_v9 }
0x26a9   : > { %5881 = vmatmul.mubr.msk.bf16.vlgmr.msra.gmra.mrb[92].mxu0 %vm387_vm0, %v7080_v40 }
0x26aa   : > { %5896 = vmatprep.mubr.msk.bf16.mxu0 %vm6237_vm1, %v6236_v9 }
0x2768   : > { %v3883_v29 = vpop.f32.mrb[84].mxu0 }
0x2769   : > { %v3889_v30 = vpack.c.bf16 %v3883_v29, %v3883_v29  ;;  %v5850_v31 = vpop.f32.mrb[85].mxu0 }
0x276a   : > { %v3886_v32 = vpop.f32.mrb[86].mxu0 }
0x276b   : > { %v5851_v33 = vpop.f32.mrb[87].mxu0  ;;  %5855 = vmatmul.mubr.msk.bf16.vlgmr.msra.gmra.mrb[112].mxu1 %vm627_vm2, %v3889_v30 }
0x276c   : > { %5865 = vmatpush3.bf16.msra.mxu1 %v6089_v26  ;;  %5870 = vmatprep.mubr.msk.bf16.mxu1 %vm6237_vm1, %v6236_v9 }
0x276d   : > { %5866 = vmatprep.subr.bf16.mxu1 %v6236_v9 }
0x2770   : > { %5867 = vmatpush3.bf16.msra.mxu1 %v6090_v25  ;;  %v3985_v3 = vpop.f32.mrb[88].mxu0 }
0x2771   : > { %v5862_v35 = vpop.f32.mrb[89].mxu0  ;;  %5868 = vmatprep.subr.bf16.mxu1 %v6236_v9 }
0x2772   : > { %v3988_v36 = vpop.f32.mrb[90].mxu0 }
0x2773   : > { %v5863_v37 = vpop.f32.mrb[91].mxu0 }
0x2774   : > { %5869 = vmatpush3.bf16.msra.mxu1 %v6091_v34  ;;  %v5248_v34 = vld [vmem:[%s7467_s8 + $0x10] ss:$0 sm:$0xff] }
0x2775   : > { %5884 = vmatprep.subr.bf16.mxu1 %v6236_v9 }
0x2777   : > { %5871 = vmatmul.mubr.msk.bf16.vlgmr.msra.gmra.mrb[116].mxu1 %vm387_vm0, %v7080_v40 }
0x2778   : > { %5885 = vmatpush3.bf16.msra.mxu1 %v6092_v38  ;;  %5890 = vmatprep.mubr.msk.bf16.mxu1 %vm6237_vm1, %v6236_v9 }
0x2779   : > { %5886 = vmatprep.subr.bf16.mxu1 %v6236_v9 }
0x277c   : > { %v4125_v42 = vpop.f32.mrb[92].mxu0  ;;  %5887 = vmatpush3.bf16.msra.mxu1 %v6093_v39 }
0x277d   : > { %v4126_v45 = vadd.f32 %v5226_v41, %v4125_v42  ;;  %v5882_v46 = vpop.f32.mrb[93].mxu0  ;;  %5888 = vmatprep.subr.bf16.mxu1 %v6236_v9 }
0x277e   : > { %v4128_v47 = vpop.f32.mrb[94].mxu0 }
0x277f   : > { %v4202_v28 = vpack.c.bf16 %v4126_v45, %v4126_v45  ;;  %v5883_v43 = vpop.f32.mrb[95].mxu0  ;;  %v6098_v47 = vld [vmem:[%s7464_s5 + $0x64] ss:$8 sps:$4 sm:$0xff]  }
0x2780   : > { %5889 = vmatpush3.bf16.msra.mxu1 %v6094_v44  ;;  %v6099_v43 = vld [vmem:[%s7464_s5 + $0x70] ss:$8 sps:$4 sm:$0xff]  }
0x2781   : > { %v4207_v50 = vsel %vm627_vm2, %v4202_v28, 0  ;;  %5900 = vmatprep.subr.bf16.mxu1 %v6236_v9  ;;  %v6101_v28 = vld [vmem:[%s7464_s5 + $0x74] ss:$8 sps:$4 sm:$0xff]  }
0x2782   : > { %5895 = vmatpush3.bf16.xpose.msra.mxu0 %v4207_v50  ;;  %v6104_v50 = vld [vmem:[%s7464_s5 + $0x84] ss:$8 sps:$4 sm:$0xff]  }
0x2783   : > { %5891 = vmatmul.mubr.msk.bf16.vlgmr.msra.gmra.mrb[120].mxu1 %vm387_vm0, %v7080_v40  ;;  %5906 = vmatprep.subr.bf16.mxu0 %v6236_v9 }
0x2784   : > { %5902 = vmatprep.mubr.msk.bf16.mxu1 %vm6237_vm1, %v6236_v9 }
0x283e   : > { %v3936_v51 = vpop.f32.mrb[112].mxu1 }
0x283f   : > { %v3986_v52 = vadd.f32 %v3985_v3, %v3936_v51  ;;  %v5856_v53 = vpop.f32.mrb[113].mxu1  ;;  %v6102_v51 = vld [vmem:[%s7464_s5 + $0x80] ss:$8 sps:$4 sm:$0xff]  }
0x2840   : > { %v3939_v54 = vpop.f32.mrb[114].mxu1  ;;  %v6106_v53 = vld [vmem:[%s7466_s7 + $0xc8] sm:$0xff]  }
0x2841   : > { %v5857_v55 = vpop.f32.mrb[115].mxu1  ;;  %v6107_v54 = vld [vmem:[%s7466_s7 + $0xd0] sm:$0xff]  }
0x2842   : > { %v6108_v55 = vld [vmem:[%s7466_s7 + $0xd8] sm:$0xff]  }
0x284a   : > { %v4055_v57 = vpop.f32.mrb[116].mxu1 }
0x284b   : > { %v4056_v59 = vadd.f32 %v5215_v56, %v4055_v57  ;;  %v5872_v60 = vpop.f32.mrb[117].mxu1  ;;  %v6109_v56 = vld [vmem:[%s7466_s7 + $0xe0] sm:$0xff]   ;;  %v6110_v57 = vld [vmem:[%s7466_s7 + $0xe8] sm:$0xff]  }
0x284c   : > { %v4058_v61 = vpop.f32.mrb[118].mxu1  ;;  %v6112_v60 = vld [vmem:[%s7466_s7 + $0xf8] sm:$0xff]  }
0x284d   : > { %v4201_v62 = vpack.c.bf16 %v4056_v59, %v4056_v59  ;;  %v5873_v40 = vpop.f32.mrb[119].mxu1  ;;  %v6111_v59 = vld [vmem:[%s7466_s7 + $0xf0] sm:$0xff]   ;;  %v6113_v61 = vld [vmem:[%s7466_s7 + $0x100] sm:$0xff]  }
0x284f   : > { %5897 = vmatmul.mubr.msk.bf16.vlgmr.msra.gmra.mrb[96].mxu0 %vm627_vm2, %v4201_v62  ;;  %v6114_v62 = vld [vmem:[%s7466_s7 + $0x108] sm:$0xff]  }
0x2850   : > { %5908 = vmatprep.mubr.msk.bf16.mxu0 %vm6237_vm1, %v6236_v9  ;;  %5907 = vmatpush3.bf16.msra.mxu0 %v6095_v21 }
0x2851   : > { %4593 = vmatprep.subr.bf16.mxu0 %v6238_v22 }
0x2856   : > { %v4195_v4 = vpop.f32.mrb[120].mxu1 }
0x2857   : > { %v4196_v0 = vadd.f32 %v5237_v63, %v4195_v4  ;;  %v5892_v1 = vpop.f32.mrb[121].mxu1 }
0x2858   : > { %v4198_v2 = vpop.f32.mrb[122].mxu1  ;;  %v5249_v1 = vld [vmem:[%s7467_s8 + $0xe] ss:$0 sm:$0xff] }
0x2859   : > { %v4261_v5 = vpack.c.bf16 %v4196_v0, %v4196_v0  ;;  %v5893_v6 = vpop.f32.mrb[123].mxu1 }
0x285b   : > { %v4266_v7 = vsel %vm691_vm3, %v4261_v5, 0  ;;  %v5250_v5 = vld [vmem:[%s7467_s8 + $0xf] ss:$0 sm:$0xff] }
0x285c   : > { %5901 = vmatpush3.bf16.msra.mxu1 %v4266_v7 }
0x285d   : > { %4448 = vmatprep.subr.bf16.mxu1 %v6098_v47 }
0x2922   : > { %v4243_v10 = vpop.f32.mrb[96].mxu0 }
0x2923   : > { %v4244_v11 = vadd.f32 %v6943_v58, %v4243_v10  ;;  %v5898_v12 = vpop.f32.mrb[97].mxu0 }
0x2924   : > { %v4246_v13 = vpop.f32.mrb[98].mxu0  ;;  %v6116_v12 = vld [vmem:[%s7466_s7 + $0x118] sm:$0xff]  }
0x2925   : > { %v5899_v8 = vpop.f32.mrb[99].mxu0  ;;  %v4249_v14 = vsel %vm674_vm4, %v4244_v11, -inf  ;;  %v5257_v13 = vld [vmem:[%s7465_s6 + $0x2] ss:$4 sm:$0x3] }
0x2926   : > { %4250 = vmax.xlane.f32.xlu0 %v4249_v14  ;;  %v4408_v8 = vrot.slane %v5257_v13, %v6693_v48  ;;  %v4412_v14 = vrot.slane %v5257_v13, %v6698_v49  ;;  %v5302_v48 = vld [vmem:[%s7467_s8 + $0x11] ss:$0 sm:$0xff] }
0x29b3   : > { %v4251_v15 = vpop.xlane.xlu0 %4250 }
0x29b4   : > { %v4252_v16 = vsub.f32 %v4244_v11, %v4251_v15  ;;  %v6115_v11 = vld [vmem:[%s7466_s7 + $0x110] sm:$0xff]  }
0x29b6   : > { %v4253_v17 = vmul.f32 1.442695, %v4252_v16 }
0x29b8   : > { %6162 = vpow2.f32 %v4253_v17 }
0x29c2   : > { %v6163_v19 = vpop.eup %6162 }
0x29c3   : > { %v4255_v20 = vsel %vm674_vm4, %v6163_v19, 0.0 }
0x29c4   : > { %4256 = vadd.xlane.f32.xlu1 %v4255_v20 }
0x2a51   : > { %v4257_v58 = vpop.xlane.xlu1 %4256 }
0x2a52   : > { %6164 = vrcp.f32 %v4257_v58 }
0x2a5c   : > { %v6165_v23 = vpop.eup %6164 }
0x2a5d   : > { %v4259_v24 = vmul.f32 %v6165_v23, %v6163_v19 }
0x2a5f   : > { %v4260_v27 = vpack.c.bf16 %v4259_v24, %v4259_v24 }
0x2a61   : > { %5903 = vmatmul.mubr.msk.bf16.vlgmr.msra.gmra.mrb[124].mxu1 %vm674_vm4, %v4260_v27 }
0x2a62   : > { %4480 = vmatprep.mubr.bf16.mxu1 %v6238_v22 }
0x2b34   : > { %v4302_v29 = vpop.f32.mrb[124].mxu1 }
0x2b35   : > { %v4308_v26 = vpack.c.bf16 %v4302_v29, %v4302_v29  ;;  %v5904_v30 = vpop.f32.mrb[125].mxu1 }
0x2b36   : > { %v4305_v31 = vpop.f32.mrb[126].mxu1 }
0x2b37   : > { %v5905_v32 = vpop.f32.mrb[127].mxu1  ;;  %5909 = vmatmul.mubr.msk.bf16.vlgmr.msra.gmra.mrb[100].mxu0 %vm627_vm2, %v4308_v26 }
0x2c0a   : > { %v4355_v33 = vpop.f32.mrb[100].mxu0 }
0x2c0b   : > { %v4361_v25 = vadd.f32 %v4355_v33, %v3986_v52  ;;  %v5910_v3 = vpop.f32.mrb[101].mxu0  ;;  %v6105_v52 = vld [vmem:[%s7466_s7 + $0xc0] sm:$0xff]  }
0x2c0c   : > { %v4358_v35 = vpop.f32.mrb[102].mxu0  ;;  %4594 = vmatpush1.bf16.msra.mxu0 %v6105_v52 }
0x2c0d   : > { %v4362_v36 = vadd.f32 %v4361_v25, %v7053_v18  ;;  %v5911_v37 = vpop.f32.mrb[103].mxu0  ;;  %v6096_v18 = vld [vmem:[%s7464_s5 + $0x60] ss:$8 sps:$4 sm:$0xff]   ;;  %4595 = vmatprep.subr.bf16.mxu0 %v6238_v22 }
0x2c0e   : > { %4449 = vmatpush1.bf16.msra.mxu1 %v6096_v18  ;;  %v6118_v37 = vld [vmem:[%s7468_s9 + $0x8] sm:$0xff]  }
0x2c0f   : > { %v7298_v38 = vadd.f32 %v5248_v34, %v4362_v36  ;;  %4450 = vmatprep.subr.bf16.mxu1 %v6101_v28  ;;  %v6117_v36 = vld [vmem:[%s7468_s9] sm:$0xff]  }
0x2c10   : > { %4596 = vmatpush1.bf16.msra.mxu0 %v6106_v53 }
0x2c11   : > { %v4371_v39 = vsel %vm387_vm0, %v7298_v38, 0.0  ;;  %4597 = vmatprep.subr.bf16.mxu0 %v6238_v22 }
0x2c12   : > { %4372 = vadd.xlane.f32.xlu0 %v4371_v39  ;;  %4451 = vmatpush1.bf16.msra.mxu1 %v6099_v43  ;;  %v5305_v43 = vld [vmem:[%s7469_s10] ss:$0 sm:$0xff] }
0x2c13   : > { %4452 = vmatprep.subr.bf16.mxu1 %v6104_v50 }
0x2c14   : > { %4598 = vmatpush1.bf16.msra.mxu0 %v6107_v54 }
0x2c15   : > { %4599 = vmatprep.subr.bf16.mxu0 %v6238_v22 }
0x2c16   : > { %4453 = vmatpush1.bf16.msra.mxu1 %v6102_v51 }
0x2c17   : > { %5912 = vmatprep.subr.bf16.mxu1 %v6236_v9 }
0x2c18   : > { %4600 = vmatpush1.bf16.msra.mxu0 %v6108_v55 }
0x2c19   : > { %4601 = vmatprep.subr.bf16.mxu0 %v6238_v22 }
0x2c1c   : > { %4602 = vmatpush1.bf16.msra.mxu0 %v6109_v56 }
0x2c1d   : > { %4603 = vmatprep.subr.bf16.mxu0 %v6238_v22 }
0x2c20   : > { %4604 = vmatpush1.bf16.msra.mxu0 %v6110_v57 }
0x2c21   : > { %4605 = vmatprep.subr.bf16.mxu0 %v6238_v22 }
0x2c24   : > { %4606 = vmatpush1.bf16.msra.mxu0 %v6111_v59 }
0x2c25   : > { %4607 = vmatprep.subr.bf16.mxu0 %v6238_v22 }
0x2c28   : > { %4608 = vmatpush1.bf16.msra.mxu0 %v6112_v60 }
0x2c29   : > { %4609 = vmatprep.subr.bf16.mxu0 %v6238_v22 }
0x2c2c   : > { %4610 = vmatpush1.bf16.msra.mxu0 %v6113_v61 }
0x2c2d   : > { %4611 = vmatprep.subr.bf16.mxu0 %v6238_v22 }
0x2c30   : > { %4612 = vmatpush1.bf16.msra.mxu0 %v6114_v62 }
0x2c31   : > { %4613 = vmatprep.subr.bf16.mxu0 %v6238_v22 }
0x2c34   : > { %4614 = vmatpush1.bf16.msra.mxu0 %v6115_v11 }
0x2c35   : > { %4615 = vmatprep.subr.bf16.mxu0 %v6238_v22 }
0x2c38   : > { %4616 = vmatpush1.bf16.msra.mxu0 %v6116_v12 }
0x2c9f   : > { %v4373_v41 = vpop.xlane.xlu0 %4372 }
0x2ca0   : > { %v4374_v42 = vmul.f32 0.020833334, %v4373_v41 }
0x2ca2   : > { %v4375_v44 = vsub.f32 %v7298_v38, %v4374_v42 }
0x2ca4   : > { %v4376_v45 = vmul.f32 %v4375_v44, %v4375_v44 }
0x2ca6   : > { %v4377_v46 = vsel %vm387_vm0, %v4376_v45, 0.0  ;;  %v5303_v45 = vld [vmem:[%s7467_s8 + $0x12] ss:$0 sm:$0xff] }
0x2ca7   : > { %4378 = vadd.xlane.f32.xlu1 %v4377_v46 }
0x2d34   : > { %v4379_v40 = vpop.xlane.xlu1 %4378 }
0x2d35   : > { %v4380_v63 = vmul.f32 0.020833334, %v4379_v40 }
0x2d37   : > { %v4381_v4 = vadd.f32 1e-05, %v4380_v63 }
0x2d39   : > { %6166 = vrsqrt.f32 %v4381_v4 }
0x2d43   : > { %v6167_v0 = vpop.eup %6166 }
0x2d44   : > { %v4383_v2 = vmul.f32 %v6167_v0, %v4375_v44 }
0x2d46   : > { %v4388_v6 = vmul.f32 %v5249_v1, %v4383_v2 }
0x2d48   : > { %v4393_v7 = vadd.f32 %v5250_v5, %v4388_v6 }
0x2d4a   : > { %v4394_v10 = vpack.c.bf16 %v4393_v7, %v4393_v7 }
0x2d4c   : > { %5264 = vmatmul.mubr.msk.bf16.vlgmr.msra.gmra.mrb[128].mxu1 %vm387_vm0, %v4394_v10 }
0x2d4d   : > { %5918 = vmatprep.mubr.msk.bf16.mxu1 %vm6237_vm1, %v6236_v9  ;;  %5913 = vmatpush3.bf16.msra.mxu1 %v6117_v36 }
0x2d4e   : > { %5914 = vmatprep.subr.bf16.mxu1 %v6236_v9 }
0x2d51   : > { %5915 = vmatpush3.bf16.msra.mxu1 %v6118_v37 }
0x2d52   : > { %5916 = vmatprep.subr.bf16.mxu1 %v6236_v9  ;;  %v5304_v9 = vld [vmem:[%s7467_s8 + $0x13] ss:$0 sm:$0xff] }
0x2e1f   : > { %v4482_v15 = vpop.f32.mrb[128].mxu1 }
0x2e20   : > { %v4483_v16 = vadd.f32 %v4482_v15, %v4408_v8  ;;  %v4484_v17 = vpop.f32.mrb[129].mxu1 }
0x2e21   : > { %v4485_v19 = vadd.f32 %v4484_v17, %v4412_v14  ;;  %v4486_v20 = vpop.f32.mrb[130].mxu1 }
0x2e22   : > { %v4489_v21 = vmax.f32 %v4483_v16, 0.0  ;;  %v4487_v22 = vpop.f32.mrb[131].mxu1 }
0x2e23   : > { %v4490_v58 = vmax.f32 %v4485_v19, 0.0 }
0x2e24   : > { %v4491_v24 = vpack.c.bf16 %v4489_v21, %v4489_v21 }
0x2e25   : > { %v4492_v23 = vpack.c.bf16 %v4490_v58, %v4490_v58 }
0x2e27   : > { %5301 = vmatprep.mubr.msk.bf16.mxu0 %vm1753_vm5, %v4492_v23 }
0x2e28   : > { %4626 = vmatmul.mubr.bf16.vlgmr.msra.gmra.mrb[104].mxu0 %v4491_v24 }
0x2efb   : > { %v4627_v27 = vpop.f32.mrb[104].mxu0 }
0x2efc   : > { %v4633_v49 = vadd.f32 %v4627_v27, %v7298_v38  ;;  %v4629_v29 = vpop.f32.mrb[105].mxu0  ;;  %v6119_v38 = vld [vmem:[%s7468_s9 + $0x10] sm:$0xff]  }
0x2efd   : > { %v4630_v26 = vpop.f32.mrb[106].mxu0  ;;  %5917 = vmatpush3.bf16.msra.mxu1 %v6119_v38 }
0x2efe   : > { %v4631_v30 = vpop.f32.mrb[107].mxu0  ;;  %v4639_v31 = vadd.f32 %v5302_v48, %v4633_v49 }
0x2f00   : > { %v4642_v32 = vsel %vm387_vm0, %v4639_v31, 0.0 }
0x2f01   : > { %4643 = vadd.xlane.f32.xlu0 %v4642_v32 }
0x2f8e   : > { %v4644_v33 = vpop.xlane.xlu0 %4643 }
0x2f8f   : > { %v4645_v25 = vmul.f32 0.020833334, %v4644_v33 }
0x2f91   : > { %v4646_v3 = vsub.f32 %v4639_v31, %v4645_v25 }
0x2f93   : > { %v4647_v34 = vmul.f32 %v4646_v3, %v4646_v3 }
0x2f95   : > { %v4648_v35 = vsel %vm387_vm0, %v4647_v34, 0.0 }
0x2f96   : > { %4649 = vadd.xlane.f32.xlu1 %v4648_v35 }
0x3023   : > { %v4650_v39 = vpop.xlane.xlu1 %4649 }
0x3024   : > { %v4651_v41 = vmul.f32 0.020833334, %v4650_v39 }
0x3026   : > { %v4652_v42 = vadd.f32 1e-05, %v4651_v41 }
0x3028   : > { %6168 = vrsqrt.f32 %v4652_v42 }
0x3032   : > { %v6169_v44 = vpop.eup %6168 }
0x3033   : > { %v4654_v46 = vmul.f32 %v6169_v44, %v4646_v3 }
0x3035   : > { %v4659_v47 = vmul.f32 %v5303_v45, %v4654_v46 }
0x3037   : > { %v4664_v18 = vadd.f32 %v5304_v9, %v4659_v47 }
0x3039   : > { %v4665_v28 = vpack.c.bf16 %v4664_v18, %v4664_v18 }
0x303b   : > { %5919 = vmatmul.mubr.msk.bf16.vlgmr.msra.gmra.mrb[132].mxu1 %vm387_vm0, %v4665_v28 }
0x310e   : > { %v4734_v50 = vpop.f32.mrb[132].mxu1 }
0x310f   : > { %v4735_v51 = vadd.f32 %v5305_v43, %v4734_v50  ;;  %v5920_v52 = vpop.f32.mrb[133].mxu1 }
0x3110   : > { %v4737_v53 = vpop.f32.mrb[134].mxu1 }
0x3111   : > { %4740 = vst [vmem:[%s377_s22] sm:$0xff] %v4735_v51  ;;  %v5921_v54 = vpop.f32.mrb[135].mxu1 }
0x3112   : > { %6185 = shalt.err (!%p6182_p3)
}
0x3113   : > { %s6186_s14 = scalar_lea.hbm %s7417_s30, 128  ;;  %s6190_s29 = scalar_lea.hbm %s7470_s11, 256 }
0x3114   : > { %p6187_p4 = scmp.ne.s32.totalorder %s7417_s30, %s6186_s14  ;;  %p6191_p9 = scmp.lt.u32.totalorder %s7417_s30, %s7470_s11 }
0x3115   : > { %p6192_p10 = scmp.lt.u32.totalorder %s6190_s29, %s6186_s14  ;;  %p6194_p12 = scmp.lt.u32.totalorder %s6186_s14, %s7417_s30 }
0x3116   : > { %p6188_p7 = pnand %p6187_p4, %p6338_p5 }
0x3117   : > { %p6193_p11 = por %p6192_p10, %p6191_p9 }
0x3118   : > { %p6189_p8 = pneg %p6188_p7 }
0x3119   : > { %p6195_p13 = por %p6194_p12, %p6193_p11 }
0x311b   : > { %p6196_p0 = pnand %p6195_p13, %p6189_p8 }
0x311d   : > { %6199 = shalt.err (!%p6196_p0)
}
0x311e   : > { %5922 = dma.vmem_to_hbm [thread:$0]  (%p6338_p5), %s7419_s24, 128, %s7417_s30, %s4742_s13  }
0x311f PF: > { %p5928_p1 = scmp.ge.s32.totalorder %s6234_s20, 2  ;;  %s4767_s21 = sand.u32 1, %s6222_s17  }
0x3120   : > { %s4768_s25 = scalar_lea.sflag [#allocation3], %s4767_s21 }
0x3121   : > { %p5925_p2 = pnand %p5928_p1, %p6342_p6 }
0x3123   : > { %6217 = dma.done.wait (!%p5925_p2), %s4768_s25, 128  }
0x3124   : > { %6219 = vsyncadd (!%p5925_p2), %s4768_s25, 4294967168  ;;  %p21_p3 = scmp.ge.s32.totalorder %s6325_s23, 4   ;;  %s7473_s17 = smov %s6226_s18 }
0x3125   : > { %s7474_s18 = smov %s6230_s19  ;;  %s7475_s19 = smov %s6336_s26 }
0x3126   : > { %s7476_s20 = smov %s6325_s23  ;;  %23 = sbr.rel (!%p21_p3) target bundleno = 3 (0x3), region = 139 }
0x312d   :  { %4773 = vsyncpa [#allocation3], 1 }
0x312e   :  { %4775 = vsyncpa [#allocation3 + $0x1], 1 }

</bundles_post_ra>
